<compile_context>
chip_gen: v5e
topology: v5e:2x2
jax: 0.10.0
libtpu: 0.0.40
codegen_flags: <defaults>
</compile_context>

<pallas_src>
import numpy as np

import jax
import jax.numpy as jnp
from jax.experimental import pallas as pl
from jax.experimental.pallas import tpu as pltpu


K_CONV = 5
C_OUT = 32
H_IN = 28
H_CONV = H_IN - K_CONV + 1        # 24
H_POOL = H_CONV // 2              # 12
CONV_K = K_CONV * H_IN            # 140  single conv contraction depth
CONV_COLS = H_CONV * C_OUT        # 768  lane-dense (6*128): col = (w%2)*384 + (w//2)*32 + c
POOL_COLS = H_POOL * C_OUT        # 384  lane-dense (3*128): col = w_out*32 + c
FC1_IN = C_OUT * H_POOL * H_POOL  # 4608
FC1_OUT = 128
NUM_CLASSES = 10
FC2_PAD = 128                     # fc2 output padded to a lane-dense width
MAX_TB = 64                       # images per grid step (multiple of 8)


def _round_up(x, m):
    return ((x + m - 1) // m) * m


# ----------------------------------------------------------------------------
# Fused Pallas kernel: conv1 -> maxpool 2x2 -> bias+ReLU -> fc1+ReLU -> fc2
# ----------------------------------------------------------------------------
def _fused_cnn_kernel(x_ref, t_ref, cb_ref, w1_ref, b1_ref, w2_ref, b2_ref,
                      o_ref, feat_ref):
    """Whole SimpleCNN forward for a tile of TB images; activations stay in VMEM.

    x_ref   : (TB, 24, 140)   bf16  shift-concatenated input windows
    t_ref   : (140, 768)      bf16  stacked banded conv1 weights
    cb_ref  : (1, 384)        f32   conv1 bias per pooled column (col % 32 == channel)
    w1_ref  : (4608, 128)     bf16  fc1 weights permuted to the kernel pooled order
    b1_ref  : (1, 128)        f32   fc1 bias
    w2_ref  : (128, 128)      bf16  fc2 weights padded 10 -> 128 output columns
    b2_ref  : (1, 128)        f32   fc2 bias (padded)
    o_ref   : (TB, 128)       f32   logits (first 10 columns are real)
    feat_ref: (TB, 4608)      bf16  VMEM scratch for the lane-dense fc1 input
    """
    tb = x_ref.shape[0]

    # ---- conv1 as ONE K=140 MXU matmul (bias/ReLU deferred until after pool) ----
    # conv[b*24 + h, (w%2)*384 + (w//2)*32 + c] = raw conv1(b, c, h, w)
    x2d = x_ref[...].reshape(tb * H_CONV, CONV_K)                   # merge leading dims
    conv = jnp.dot(x2d, t_ref[...], preferred_element_type=jnp.float32)  # (TB*24, 768) f32

    # ---- 2x2 max-pool, stride 2 (before bias/ReLU: both commute with max) -------
    # H pairs are adjacent rows; W pairs live in the two 384-wide lane halves.
    conv4 = conv.reshape(tb, H_POOL, 2, CONV_COLS)                  # (TB, 12, 2, 768)
    mh = jnp.max(conv4, axis=2)                                     # (TB, 12, 768)
    pooled = jnp.maximum(mh[:, :, :POOL_COLS], mh[:, :, POOL_COLS:])  # (TB, 12, 384) f32

    # ---- bias + ReLU + bf16 cast on the 4x smaller pooled activation ------------
    pooled2d = pooled.reshape(tb * H_POOL, POOL_COLS)
    pooled2d = jnp.maximum(pooled2d + cb_ref[...], 0.0).astype(jnp.bfloat16)
    pooled = pooled2d.reshape(tb, H_POOL, POOL_COLS)
    # F.dropout(p=0.2, training=False) is identity at inference.
    # TODO(synk): training-mode dropout (stochastic mask via pltpu.prng_*) not implemented.

    # ---- assemble lane-dense (TB, 4608) fc1 input with aligned lane-slice stores -
    for t in range(H_POOL):
        feat_ref[:, t * POOL_COLS:(t + 1) * POOL_COLS] = pooled[:, t, :]

    # ---- fc1 (+bias, +ReLU) as a single K=4608 matmul ----------------------------
    h = jnp.dot(feat_ref[...], w1_ref[...], preferred_element_type=jnp.float32)
    h = jnp.maximum(h + b1_ref[...], 0.0)                           # (TB, 128) f32

    # ---- fc2 (fused, lane-dense padded output) -----------------------------------
    out = jnp.dot(h.astype(jnp.bfloat16), w2_ref[...], preferred_element_type=jnp.float32)
    o_ref[...] = (out + b2_ref[...]).astype(o_ref.dtype)


# ----------------------------------------------------------------------------
# One-time host-side repack of PyTorch-layout params into kernel layout
# ----------------------------------------------------------------------------
def prepare_params(params):
    conv_w = np.asarray(params["conv_w"], np.float32)    # (32, 1, 5, 5)
    conv_b = np.asarray(params["conv_b"], np.float32)    # (32,)
    fc1_w = np.asarray(params["fc1_w"], np.float32)      # (128, 4608)
    fc1_b = np.asarray(params["fc1_b"], np.float32)      # (128,)
    fc2_w = np.asarray(params["fc2_w"], np.float32)      # (10, 128)
    fc2_b = np.asarray(params["fc2_b"], np.float32)      # (10,)

    # Stacked banded conv weights: T[i*28 + (w+j), col] with
    # col = (w%2)*384 + (w//2)*32 + c.  x_shift rows (TB*24, 140) @ T yield the
    # full raw conv output for all 24 output positions and 32 channels at once.
    T = np.zeros((CONV_K, CONV_COLS), np.float32)
    for i in range(K_CONV):
        for j in range(K_CONV):
            for w in range(H_CONV):
                col0 = (w % 2) * POOL_COLS + (w // 2) * C_OUT
                T[i * H_IN + w + j, col0:col0 + C_OUT] = conv_w[:, 0, i, j]

    # Bias per POOLED column: pooled col = w_out*32 + c  =>  bias = conv_b[col % 32].
    cb = np.tile(conv_b, H_POOL).reshape(1, POOL_COLS)

    # fc1 weights permuted so the kernel feature index t*384 + w_out*32 + c matches
    # PyTorch's NCHW flatten index c*144 + t*12 + w_out.
    w1 = fc1_w.T.reshape(C_OUT, H_POOL, H_POOL, FC1_OUT)             # (c, t, w, n)
    w1 = np.transpose(w1, (1, 2, 0, 3)).reshape(FC1_IN, FC1_OUT)     # (t*384+w*32+c, n)

    # fc2 padded to a lane-dense 128-wide output (extra columns are exact zeros).
    w2 = np.zeros((FC1_OUT, FC2_PAD), np.float32)
    w2[:, :NUM_CLASSES] = fc2_w.T
    b2 = np.zeros((1, FC2_PAD), np.float32)
    b2[0, :NUM_CLASSES] = fc2_b

    return {
        "T": jnp.asarray(T, jnp.bfloat16),
        "cb": jnp.asarray(cb, jnp.float32),
        "w1": jnp.asarray(w1, jnp.bfloat16),
        "b1": jnp.asarray(fc1_b.reshape(1, FC1_OUT), jnp.float32),
        "w2": jnp.asarray(w2, jnp.bfloat16),
        "b2": jnp.asarray(b2, jnp.float32),
    }


# ----------------------------------------------------------------------------
# Forward pass wrapper
# ----------------------------------------------------------------------------
def simple_cnn_forward(x_nchw, prep):
    """x_nchw: (B, 1, 28, 28) f32 -> logits (B, 10) f32."""
    B = x_nchw.shape[0]
    x = x_nchw[:, 0, :, :].astype(jnp.bfloat16)                      # (B, 28, 28)

    # Shift-concatenated conv LHS: x_shift[b, h, i*28 + p] = x[b, h+i, p].
    x_shift = jnp.concatenate(
        [x[:, i:i + H_CONV, :] for i in range(K_CONV)], axis=-1)     # (B, 24, 140)

    # Batch tile: big M for the MXU; keep >= 2 grid steps when the batch allows so
    # the "parallel" axis shards across both TensorCores on v7x.
    if B > MAX_TB:
        tb = MAX_TB
    elif B > 16:
        tb = _round_up((B + 1) // 2, 8)
    else:
        tb = B
    bp = _round_up(B, tb)
    if bp != B:
        x_shift = jnp.pad(x_shift, ((0, bp - B), (0, 0), (0, 0)))

    out = pl.pallas_call(
        _fused_cnn_kernel,
        out_shape=jax.ShapeDtypeStruct((bp, FC2_PAD), jnp.float32),
        grid=(bp // tb,),
        in_specs=[
            pl.BlockSpec((tb, H_CONV, CONV_K), lambda b: (b, 0, 0)),
            pl.BlockSpec((CONV_K, CONV_COLS), lambda b: (0, 0)),
            pl.BlockSpec((1, POOL_COLS), lambda b: (0, 0)),
            pl.BlockSpec((FC1_IN, FC1_OUT), lambda b: (0, 0)),
            pl.BlockSpec((1, FC1_OUT), lambda b: (0, 0)),
            pl.BlockSpec((FC1_OUT, FC2_PAD), lambda b: (0, 0)),
            pl.BlockSpec((1, FC2_PAD), lambda b: (0, 0)),
        ],
        out_specs=pl.BlockSpec((tb, FC2_PAD), lambda b: (b, 0)),
        scratch_shapes=[pltpu.VMEM((tb, FC1_IN), jnp.bfloat16)],
        compiler_params=pltpu.CompilerParams(
            dimension_semantics=("parallel",),
            vmem_limit_bytes=40 * 1024 * 1024),
    )(x_shift, prep["T"], prep["cb"], prep["w1"], prep["b1"], prep["w2"], prep["b2"])

    return out[:B, :NUM_CLASSES]


# ----------------------------------------------------------------------------
# Deterministic synthetic parameters (PyTorch shapes) + pure-JAX reference
# ----------------------------------------------------------------------------
def init_params(key):
    ks = jax.random.split(key, 6)
    return {
        "conv_w": 0.05 * jax.random.normal(ks[0], (C_OUT, 1, K_CONV, K_CONV), jnp.float32),
        "conv_b": 0.05 * jax.random.normal(ks[1], (C_OUT,), jnp.float32),
        "fc1_w":  0.02 * jax.random.normal(ks[2], (FC1_OUT, FC1_IN), jnp.float32),
        "fc1_b":  0.02 * jax.random.normal(ks[3], (FC1_OUT,), jnp.float32),
        "fc2_w":  0.05 * jax.random.normal(ks[4], (NUM_CLASSES, FC1_OUT), jnp.float32),
        "fc2_b":  0.05 * jax.random.normal(ks[5], (NUM_CLASSES,), jnp.float32),
    }


def reference_forward(x_nchw, params):
    """Pure-JAX f32 reference matching SimpleCNN.forward (inference)."""
    conv = jax.lax.conv_general_dilated(
        x_nchw, params["conv_w"], window_strides=(1, 1), padding="VALID",
        dimension_numbers=("NCHW", "OIHW", "NCHW"))
    conv = jnp.maximum(conv + params["conv_b"][None, :, None, None], 0.0)
    pooled = jax.lax.reduce_window(conv, -jnp.inf, jax.lax.max,
                                   (1, 1, 2, 2), (1, 1, 2, 2), "VALID")
    feat = pooled.reshape(x_nchw.shape[0], FC1_IN)
    h = jnp.maximum(feat @ params["fc1_w"].T + params["fc1_b"], 0.0)
    return h @ params["fc2_w"].T + params["fc2_b"]


if __name__ == "__main__":
    key = jax.random.PRNGKey(0)
    pkey, xkey = jax.random.split(key)
    params = init_params(pkey)
    prep = prepare_params(params)   # one-time host-side weight repack

    # Input shape implied by the module: MNIST-style (B, 1, 28, 28), small batch.
    x = jax.random.normal(xkey, (2, 1, H_IN, H_IN), jnp.float32)

    fwd = jax.jit(simple_cnn_forward)
    logits = fwd(x, prep)
    jax.block_until_ready(logits)

    assert logits.shape == (2, NUM_CLASSES), logits.shape
    assert logits.dtype == jnp.float32

    # Sanity check vs. pure-JAX f32 reference (loose tolerance: bf16 MXU inputs).
    ref = reference_forward(x, params)
    err = float(jnp.max(jnp.abs(logits - ref)))
    assert err < 0.1, f"max abs error vs reference: {err}"

    print("KERNEL_OK")
</pallas_src>

<mosaic_0001>
module attributes {stable_mosaic.version = 11 : i64} {
  func.func @_fused_cnn_kernel(%arg0: i32, %arg1: memref<2x24x140xbf16, #tpu.memory_space<vmem>>, %arg2: memref<140x768xbf16, #tpu.memory_space<vmem>>, %arg3: memref<1x384xf32, #tpu.memory_space<vmem>>, %arg4: memref<4608x128xbf16, #tpu.memory_space<vmem>>, %arg5: memref<1x128xf32, #tpu.memory_space<vmem>>, %arg6: memref<128x128xbf16, #tpu.memory_space<vmem>>, %arg7: memref<1x128xf32, #tpu.memory_space<vmem>>, %arg8: memref<2x128xf32, #tpu.memory_space<vmem>>, %arg9: memref<2x4608xbf16, #tpu.memory_space<vmem>>) attributes {dimension_semantics = [#tpu.dimension_semantics<parallel>], iteration_bounds = array<i64: 1>, scalar_prefetch = 0 : i64, scratch_operands = 1 : i64, tpu.core_type = #tpu.core_type<tc>, window_params = [{transform_indices = @transform_0, window_bounds = array<i64: 2, 24, 140>}, {pipeline_mode = #tpu.pipeline_mode<synchronous>, transform_indices = @transform_1, window_bounds = array<i64: 140, 768>}, {pipeline_mode = #tpu.pipeline_mode<synchronous>, transform_indices = @transform_2, window_bounds = array<i64: 1, 384>}, {pipeline_mode = #tpu.pipeline_mode<synchronous>, transform_indices = @transform_3, window_bounds = array<i64: 4608, 128>}, {pipeline_mode = #tpu.pipeline_mode<synchronous>, transform_indices = @transform_4, window_bounds = array<i64: 1, 128>}, {pipeline_mode = #tpu.pipeline_mode<synchronous>, transform_indices = @transform_5, window_bounds = array<i64: 128, 128>}, {pipeline_mode = #tpu.pipeline_mode<synchronous>, transform_indices = @transform_6, window_bounds = array<i64: 1, 128>}, {transform_indices = @transform_7, window_bounds = array<i64: 2, 128>}]} {
    %c0 = arith.constant 0 : index
    %c0_0 = arith.constant 0 : index
    %c0_1 = arith.constant 0 : index
    %0 = vector.load %arg1[%c0, %c0_0, %c0_1] : memref<2x24x140xbf16, #tpu.memory_space<vmem>>, vector<2x24x140xbf16>
    %1 = vector.shape_cast %0 : vector<2x24x140xbf16> to vector<48x140xbf16>
    %c0_2 = arith.constant 0 : index
    %c0_3 = arith.constant 0 : index
    %2 = vector.load %arg2[%c0_2, %c0_3] : memref<140x768xbf16, #tpu.memory_space<vmem>>, vector<140x768xbf16>
    %cst = arith.constant dense<0.000000e+00> : vector<48x768xf32>
    %3 = tpu.matmul %1, %2, %cst {dimension_numbers = #tpu.dot_dimension_numbers<[1], [0], [0], [1], [0, 0, 1, 1], [], []>} : vector<48x140xbf16>, vector<140x768xbf16>, vector<48x768xf32> -> vector<48x768xf32>
    %4 = vector.shape_cast %3 : vector<48x768xf32> to vector<2x12x2x768xf32>
    %cst_4 = arith.constant dense<0xFF800000> : vector<2x12x768xf32>
    %5 = vector.multi_reduction <maximumf>, %4, %cst_4 [2] : vector<2x12x2x768xf32> to vector<2x12x768xf32>
    %6 = vector.extract_strided_slice %5 {offsets = [0, 0, 0], sizes = [2, 12, 384], strides = [1, 1, 1]} : vector<2x12x768xf32> to vector<2x12x384xf32>
    %7 = vector.extract_strided_slice %5 {offsets = [0, 0, 384], sizes = [2, 12, 384], strides = [1, 1, 1]} : vector<2x12x768xf32> to vector<2x12x384xf32>
    %8 = arith.maximumf %6, %7 : vector<2x12x384xf32>
    %9 = vector.shape_cast %8 : vector<2x12x384xf32> to vector<24x384xf32>
    %c0_5 = arith.constant 0 : index
    %c0_6 = arith.constant 0 : index
    %10 = vector.load %arg3[%c0_5, %c0_6] : memref<1x384xf32, #tpu.memory_space<vmem>>, vector<1x384xf32>
    %11 = vector.broadcast %10 : vector<1x384xf32> to vector<24x384xf32>
    %12 = arith.addf %9, %11 : vector<24x384xf32>
    %cst_7 = arith.constant 0.000000e+00 : f32
    %13 = vector.broadcast %cst_7 : f32 to vector<24x384xf32>
    %14 = arith.maximumf %12, %13 : vector<24x384xf32>
    %15 = arith.truncf %14 : vector<24x384xf32> to vector<24x384xbf16>
    %16 = vector.shape_cast %15 : vector<24x384xbf16> to vector<2x12x384xbf16>
    %17 = vector.extract_strided_slice %16 {offsets = [0, 0, 0], sizes = [2, 1, 384], strides = [1, 1, 1]} : vector<2x12x384xbf16> to vector<2x1x384xbf16>
    %18 = vector.shape_cast %17 : vector<2x1x384xbf16> to vector<2x384xbf16>
    %c0_8 = arith.constant 0 : index
    %c0_9 = arith.constant 0 : index
    %19 = vector.load %arg9[%c0_8, %c0_9] : memref<2x4608xbf16, #tpu.memory_space<vmem>>, vector<2x384xbf16>
    tpu.vector_store %arg9[%c0_8, %c0_9], %18 {strides = array<i32>} : memref<2x4608xbf16, #tpu.memory_space<vmem>>, vector<2x384xbf16>,
    %20 = vector.extract_strided_slice %16 {offsets = [0, 1, 0], sizes = [2, 1, 384], strides = [1, 1, 1]} : vector<2x12x384xbf16> to vector<2x1x384xbf16>
    %21 = vector.shape_cast %20 : vector<2x1x384xbf16> to vector<2x384xbf16>
    %c0_10 = arith.constant 0 : index
    %c384 = arith.constant 384 : index
    %22 = vector.load %arg9[%c0_10, %c384] : memref<2x4608xbf16, #tpu.memory_space<vmem>>, vector<2x384xbf16>
    tpu.vector_store %arg9[%c0_10, %c384], %21 {strides = array<i32>} : memref<2x4608xbf16, #tpu.memory_space<vmem>>, vector<2x384xbf16>,
    %23 = vector.extract_strided_slice %16 {offsets = [0, 2, 0], sizes = [2, 1, 384], strides = [1, 1, 1]} : vector<2x12x384xbf16> to vector<2x1x384xbf16>
    %24 = vector.shape_cast %23 : vector<2x1x384xbf16> to vector<2x384xbf16>
    %c0_11 = arith.constant 0 : index
    %c768 = arith.constant 768 : index
    %25 = vector.load %arg9[%c0_11, %c768] : memref<2x4608xbf16, #tpu.memory_space<vmem>>, vector<2x384xbf16>
    tpu.vector_store %arg9[%c0_11, %c768], %24 {strides = array<i32>} : memref<2x4608xbf16, #tpu.memory_space<vmem>>, vector<2x384xbf16>,
    %26 = vector.extract_strided_slice %16 {offsets = [0, 3, 0], sizes = [2, 1, 384], strides = [1, 1, 1]} : vector<2x12x384xbf16> to vector<2x1x384xbf16>
    %27 = vector.shape_cast %26 : vector<2x1x384xbf16> to vector<2x384xbf16>
    %c0_12 = arith.constant 0 : index
    %c1152 = arith.constant 1152 : index
    %28 = vector.load %arg9[%c0_12, %c1152] : memref<2x4608xbf16, #tpu.memory_space<vmem>>, vector<2x384xbf16>
    tpu.vector_store %arg9[%c0_12, %c1152], %27 {strides = array<i32>} : memref<2x4608xbf16, #tpu.memory_space<vmem>>, vector<2x384xbf16>,
    %29 = vector.extract_strided_slice %16 {offsets = [0, 4, 0], sizes = [2, 1, 384], strides = [1, 1, 1]} : vector<2x12x384xbf16> to vector<2x1x384xbf16>
    %30 = vector.shape_cast %29 : vector<2x1x384xbf16> to vector<2x384xbf16>
    %c0_13 = arith.constant 0 : index
    %c1536 = arith.constant 1536 : index
    %31 = vector.load %arg9[%c0_13, %c1536] : memref<2x4608xbf16, #tpu.memory_space<vmem>>, vector<2x384xbf16>
    tpu.vector_store %arg9[%c0_13, %c1536], %30 {strides = array<i32>} : memref<2x4608xbf16, #tpu.memory_space<vmem>>, vector<2x384xbf16>,
    %32 = vector.extract_strided_slice %16 {offsets = [0, 5, 0], sizes = [2, 1, 384], strides = [1, 1, 1]} : vector<2x12x384xbf16> to vector<2x1x384xbf16>
    %33 = vector.shape_cast %32 : vector<2x1x384xbf16> to vector<2x384xbf16>
    %c0_14 = arith.constant 0 : index
    %c1920 = arith.constant 1920 : index
    %34 = vector.load %arg9[%c0_14, %c1920] : memref<2x4608xbf16, #tpu.memory_space<vmem>>, vector<2x384xbf16>
    tpu.vector_store %arg9[%c0_14, %c1920], %33 {strides = array<i32>} : memref<2x4608xbf16, #tpu.memory_space<vmem>>, vector<2x384xbf16>,
    %35 = vector.extract_strided_slice %16 {offsets = [0, 6, 0], sizes = [2, 1, 384], strides = [1, 1, 1]} : vector<2x12x384xbf16> to vector<2x1x384xbf16>
    %36 = vector.shape_cast %35 : vector<2x1x384xbf16> to vector<2x384xbf16>
    %c0_15 = arith.constant 0 : index
    %c2304 = arith.constant 2304 : index
    %37 = vector.load %arg9[%c0_15, %c2304] : memref<2x4608xbf16, #tpu.memory_space<vmem>>, vector<2x384xbf16>
    tpu.vector_store %arg9[%c0_15, %c2304], %36 {strides = array<i32>} : memref<2x4608xbf16, #tpu.memory_space<vmem>>, vector<2x384xbf16>,
    %38 = vector.extract_strided_slice %16 {offsets = [0, 7, 0], sizes = [2, 1, 384], strides = [1, 1, 1]} : vector<2x12x384xbf16> to vector<2x1x384xbf16>
    %39 = vector.shape_cast %38 : vector<2x1x384xbf16> to vector<2x384xbf16>
    %c0_16 = arith.constant 0 : index
    %c2688 = arith.constant 2688 : index
    %40 = vector.load %arg9[%c0_16, %c2688] : memref<2x4608xbf16, #tpu.memory_space<vmem>>, vector<2x384xbf16>
    tpu.vector_store %arg9[%c0_16, %c2688], %39 {strides = array<i32>} : memref<2x4608xbf16, #tpu.memory_space<vmem>>, vector<2x384xbf16>,
    %41 = vector.extract_strided_slice %16 {offsets = [0, 8, 0], sizes = [2, 1, 384], strides = [1, 1, 1]} : vector<2x12x384xbf16> to vector<2x1x384xbf16>
    %42 = vector.shape_cast %41 : vector<2x1x384xbf16> to vector<2x384xbf16>
    %c0_17 = arith.constant 0 : index
    %c3072 = arith.constant 3072 : index
    %43 = vector.load %arg9[%c0_17, %c3072] : memref<2x4608xbf16, #tpu.memory_space<vmem>>, vector<2x384xbf16>
    tpu.vector_store %arg9[%c0_17, %c3072], %42 {strides = array<i32>} : memref<2x4608xbf16, #tpu.memory_space<vmem>>, vector<2x384xbf16>,
    %44 = vector.extract_strided_slice %16 {offsets = [0, 9, 0], sizes = [2, 1, 384], strides = [1, 1, 1]} : vector<2x12x384xbf16> to vector<2x1x384xbf16>
    %45 = vector.shape_cast %44 : vector<2x1x384xbf16> to vector<2x384xbf16>
    %c0_18 = arith.constant 0 : index
    %c3456 = arith.constant 3456 : index
    %46 = vector.load %arg9[%c0_18, %c3456] : memref<2x4608xbf16, #tpu.memory_space<vmem>>, vector<2x384xbf16>
    tpu.vector_store %arg9[%c0_18, %c3456], %45 {strides = array<i32>} : memref<2x4608xbf16, #tpu.memory_space<vmem>>, vector<2x384xbf16>,
    %47 = vector.extract_strided_slice %16 {offsets = [0, 10, 0], sizes = [2, 1, 384], strides = [1, 1, 1]} : vector<2x12x384xbf16> to vector<2x1x384xbf16>
    %48 = vector.shape_cast %47 : vector<2x1x384xbf16> to vector<2x384xbf16>
    %c0_19 = arith.constant 0 : index
    %c3840 = arith.constant 3840 : index
    %49 = vector.load %arg9[%c0_19, %c3840] : memref<2x4608xbf16, #tpu.memory_space<vmem>>, vector<2x384xbf16>
    tpu.vector_store %arg9[%c0_19, %c3840], %48 {strides = array<i32>} : memref<2x4608xbf16, #tpu.memory_space<vmem>>, vector<2x384xbf16>,
    %50 = vector.extract_strided_slice %16 {offsets = [0, 11, 0], sizes = [2, 1, 384], strides = [1, 1, 1]} : vector<2x12x384xbf16> to vector<2x1x384xbf16>
    %51 = vector.shape_cast %50 : vector<2x1x384xbf16> to vector<2x384xbf16>
    %c0_20 = arith.constant 0 : index
    %c4224 = arith.constant 4224 : index
    %52 = vector.load %arg9[%c0_20, %c4224] : memref<2x4608xbf16, #tpu.memory_space<vmem>>, vector<2x384xbf16>
    tpu.vector_store %arg9[%c0_20, %c4224], %51 {strides = array<i32>} : memref<2x4608xbf16, #tpu.memory_space<vmem>>, vector<2x384xbf16>,
    %c0_21 = arith.constant 0 : index
    %c0_22 = arith.constant 0 : index
    %53 = vector.load %arg9[%c0_21, %c0_22] : memref<2x4608xbf16, #tpu.memory_space<vmem>>, vector<2x4608xbf16>
    %c0_23 = arith.constant 0 : index
    %c0_24 = arith.constant 0 : index
    %54 = vector.load %arg4[%c0_23, %c0_24] : memref<4608x128xbf16, #tpu.memory_space<vmem>>, vector<4608x128xbf16>
    %cst_25 = arith.constant dense<0.000000e+00> : vector<2x128xf32>
    %55 = tpu.matmul %53, %54, %cst_25 {dimension_numbers = #tpu.dot_dimension_numbers<[1], [0], [0], [1], [0, 0, 1, 1], [], []>} : vector<2x4608xbf16>, vector<4608x128xbf16>, vector<2x128xf32> -> vector<2x128xf32>
    %c0_26 = arith.constant 0 : index
    %c0_27 = arith.constant 0 : index
    %56 = vector.load %arg5[%c0_26, %c0_27] : memref<1x128xf32, #tpu.memory_space<vmem>>, vector<1x128xf32>
    %57 = vector.broadcast %56 : vector<1x128xf32> to vector<2x128xf32>
    %58 = arith.addf %55, %57 : vector<2x128xf32>
    %cst_28 = arith.constant 0.000000e+00 : f32
    %59 = vector.broadcast %cst_28 : f32 to vector<2x128xf32>
    %60 = arith.maximumf %58, %59 : vector<2x128xf32>
    %61 = arith.truncf %60 : vector<2x128xf32> to vector<2x128xbf16>
    %c0_29 = arith.constant 0 : index
    %c0_30 = arith.constant 0 : index
    %62 = vector.load %arg6[%c0_29, %c0_30] : memref<128x128xbf16, #tpu.memory_space<vmem>>, vector<128x128xbf16>
    %cst_31 = arith.constant dense<0.000000e+00> : vector<2x128xf32>
    %63 = tpu.matmul %61, %62, %cst_31 {dimension_numbers = #tpu.dot_dimension_numbers<[1], [0], [0], [1], [0, 0, 1, 1], [], []>} : vector<2x128xbf16>, vector<128x128xbf16>, vector<2x128xf32> -> vector<2x128xf32>
    %c0_32 = arith.constant 0 : index
    %c0_33 = arith.constant 0 : index
    %64 = vector.load %arg7[%c0_32, %c0_33] : memref<1x128xf32, #tpu.memory_space<vmem>>, vector<1x128xf32>
    %65 = vector.broadcast %64 : vector<1x128xf32> to vector<2x128xf32>
    %66 = arith.addf %63, %65 : vector<2x128xf32>
    %c0_34 = arith.constant 0 : index
    %c0_35 = arith.constant 0 : index
    %67 = vector.load %arg8[%c0_34, %c0_35] : memref<2x128xf32, #tpu.memory_space<vmem>>, vector<2x128xf32>
    tpu.vector_store %arg8[%c0_34, %c0_35], %66 {strides = array<i32>} : memref<2x128xf32, #tpu.memory_space<vmem>>, vector<2x128xf32>,
    return
  }
  func.func @transform_0(%arg0: i32) -> (i32, i32, i32) {
    %c0_i32 = arith.constant 0 : i32
    %c0_i32_0 = arith.constant 0 : i32
    %c0_i32_1 = arith.constant 0 : i32
    return %arg0, %c0_i32, %c0_i32_0 : i32, i32, i32
  }
  func.func @transform_1(%arg0: i32) -> (i32, i32) {
    %c0_i32 = arith.constant 0 : i32
    %c0_i32_0 = arith.constant 0 : i32
    %c0_i32_1 = arith.constant 0 : i32
    return %c0_i32, %c0_i32_0 : i32, i32
  }
  func.func @transform_2(%arg0: i32) -> (i32, i32) {
    %c0_i32 = arith.constant 0 : i32
    %c0_i32_0 = arith.constant 0 : i32
    %c0_i32_1 = arith.constant 0 : i32
    return %c0_i32, %c0_i32_0 : i32, i32
  }
  func.func @transform_3(%arg0: i32) -> (i32, i32) {
    %c0_i32 = arith.constant 0 : i32
    %c0_i32_0 = arith.constant 0 : i32
    %c0_i32_1 = arith.constant 0 : i32
    return %c0_i32, %c0_i32_0 : i32, i32
  }
  func.func @transform_4(%arg0: i32) -> (i32, i32) {
    %c0_i32 = arith.constant 0 : i32
    %c0_i32_0 = arith.constant 0 : i32
    %c0_i32_1 = arith.constant 0 : i32
    return %c0_i32, %c0_i32_0 : i32, i32
  }
  func.func @transform_5(%arg0: i32) -> (i32, i32) {
    %c0_i32 = arith.constant 0 : i32
    %c0_i32_0 = arith.constant 0 : i32
    %c0_i32_1 = arith.constant 0 : i32
    return %c0_i32, %c0_i32_0 : i32, i32
  }
  func.func @transform_6(%arg0: i32) -> (i32, i32) {
    %c0_i32 = arith.constant 0 : i32
    %c0_i32_0 = arith.constant 0 : i32
    %c0_i32_1 = arith.constant 0 : i32
    return %c0_i32, %c0_i32_0 : i32, i32
  }
  func.func @transform_7(%arg0: i32) -> (i32, i32) {
    %c0_i32 = arith.constant 0 : i32
    %c0_i32_0 = arith.constant 0 : i32
    return %arg0, %c0_i32 : i32, i32
  }
}

</mosaic_0001>

<bundles_post_ra>
// kernel: simple_cnn_forward.1
= control target key start
LH: loop header
LB: loop body
LE: loop exit
PB: predicated region body
PF: predicated region fallthrough
CT: control target
= control target key end

     0   :  { %12 = vsyncpa [#allocation4], 0  ;;  %s10404_s0 = inlined_call_operand.vmem [shape: bf16[2,24,140], index: 0, kind: input, shape index: {}]   ;;  %s10405_s1 = inlined_call_operand.hbm [shape: bf16[140,768], index: 1, kind: input, shape index: {}]   ;;  %s10406_s2 = inlined_call_operand.hbm [shape: f32[1,384], index: 2, kind: input, shape index: {}]   ;;  %s10407_s3 = inlined_call_operand.hbm [shape: bf16[4608,128], index: 3, kind: input, shape index: {}]   ;;  %s10408_s4 = inlined_call_operand.hbm [shape: f32[1,128], index: 4, kind: input, shape index: {}]   ;;  %s10409_s5 = inlined_call_operand.hbm [shape: bf16[128,128], index: 5, kind: input, shape index: {}]   ;;  %s10410_s6 = inlined_call_operand.hbm [shape: f32[1,128], index: 6, kind: input, shape index: {}]   ;;  %s10411_s7 = inlined_call_operand.hbm [shape: f32[2,128], index: 7, kind: output, shape index: {}]  }
   0x1   :  { %13 = vsyncpa [#allocation7], 0 }
   0x2   :  { %14 = vsyncpa [#allocation10], 0 }
   0x3   :  { %15 = vsyncpa [#allocation13], 0  ;;  %s37_s26 = sshll.u32 %s10406_s2, 4  ;;  %s38_s26 = int_to_ptr.hbm [resolvable:$true] %s37_s26 }
   0x4   :  { %16 = vsyncpa [#allocation5], 0  ;;  %s8290_s27 = smov [#allocation6]   ;;  %s61_s8 = sshll.u32 %s10408_s4, 4  ;;  %s62_s8 = int_to_ptr.hbm [resolvable:$true] %s61_s8 }
   0x5   :  { %s39_s28 = sshll.u32 %s8290_s27, 4  ;;  %s8291_s9 = smov [#allocation9]   ;;  %s40_s28 = int_to_ptr.vmem [resolvable:$true] %s39_s28 }
   0x6   :  { %42 = dma.hbm_to_vmem [thread:$0]  %s38_s26, 48, %s40_s28, [#allocation7]  }
   0x7   :  { %s63_s10 = sshll.u32 %s8291_s9, 4  ;;  %s23_s13 = sshll.u32 %s10405_s1, 4  ;;  %s64_s10 = int_to_ptr.vmem [resolvable:$true] %s63_s10  ;;  %s24_s13 = int_to_ptr.hbm [resolvable:$true] %s23_s13 }
   0x8   :  { %66 = dma.hbm_to_vmem [thread:$0]  %s62_s8, 16, %s64_s10, [#allocation10]  }
   0x9   :  { %s8292_s2 = smov [#allocation3]   ;;  %s47_s17 = sshll.u32 %s10407_s3, 4  ;;  %s48_s17 = int_to_ptr.hbm [resolvable:$true] %s47_s17 }
   0xa   :  { %s25_s14 = sshll.u32 %s8292_s2, 4  ;;  %s8293_s18 = smov 384   ;;  %s26_s14 = int_to_ptr.vmem [resolvable:$true] %s25_s14 }
   0xb   :  { %s8294_s4 = smov 24   ;;  %s8295_s19 = smov [#allocation8]  }
   0xc   :  { %31 = dma.hbm_to_vmem [thread:$0]  %s24_s13, 6912, %s26_s14, [#allocation4], %s8293_s18, %s8293_s18, %s8294_s4  }
   0xd   :  { %s49_s20 = sshll.u32 %s8295_s19, 4  ;;  %s8296_s21 = smov 64   ;;  %s50_s20 = int_to_ptr.vmem [resolvable:$true] %s49_s20 }
   0xe   :  { %s8297_s22 = smov 4   ;;  %s71_s24 = sshll.u32 %s10409_s5, 4  ;;  %s72_s24 = int_to_ptr.hbm [resolvable:$true] %s71_s24 }
   0xf   :  { %55 = dma.hbm_to_vmem [thread:$0]  %s48_s17, 36864, %s50_s20, [#allocation7], %s8296_s21, %s8296_s21, %s8297_s22  }
  0x10   :  { %s8298_s25 = smov [#allocation11]   ;;  %s85_s28 = sshll.u32 %s10410_s6, 4  ;;  %s86_s28 = int_to_ptr.hbm [resolvable:$true] %s85_s28 }
  0x11   :  { %s73_s26 = sshll.u32 %s8298_s25, 4  ;;  %s8299_s29 = smov [#allocation12]   ;;  %s74_s26 = int_to_ptr.vmem [resolvable:$true] %s73_s26 }
  0x12   :  { %79 = dma.hbm_to_vmem [thread:$0]  %s72_s24, 1024, %s74_s26, [#allocation10], %s8296_s21, %s8296_s21, %s8297_s22  }
  0x13   :  { %s87_s30 = sshll.u32 %s8299_s29, 4  ;;  %s88_s30 = int_to_ptr.vmem [resolvable:$true] %s87_s30 }
  0x14   :  { %90 = dma.hbm_to_vmem [thread:$0]  %s86_s28, 16, %s88_s30, [#allocation13]  }
  0x15   :  { %8280 = dma.done.wait [#allocation4], 6912  }
  0x16   :  { %8281 = vsyncadd [#allocation4], 4294960384 }
  0x17   :  { %8282 = dma.done.wait [#allocation7], 36912  }
  0x18   :  { %8283 = vsyncadd [#allocation7], 4294930384 }
  0x19   :  { %8284 = dma.done.wait [#allocation10], 1040  }
  0x1a   :  { %8285 = vsyncadd [#allocation10], 4294966256 }
  0x1b   :  { %8286 = dma.done.wait [#allocation13], 16  }
  0x1c   :  { %8287 = vsyncadd [#allocation13], 4294967280  ;;  %v6494_v0 = vld [vmem:[#allocation3 + $0x150] sm:$0xf]  ;;  %v7793_v1 = vld [vmem:[#allocation3 + $0x164] sm:$0xf0] }
  0x1d   :  { %v7790_v2 = vld [vmem:[#allocation3 + $0x154] sm:$0xf]  ;;  %v6495_v3 = vor.u32 %v7793_v1, %v6494_v0  ;;  %v6496_v4 = vld [vmem:[#allocation3 + $0x168] sm:$0xf0]  ;;  %v6470_v5 = vld [vmem:[#allocation3 + $0x120] sm:$0xf] }
  0x1e   :  { %v7787_v6 = vld [vmem:[#allocation3 + $0x134] sm:$0xf0]  ;;  %v6499_v7 = vor.u32 %v7790_v2, %v6496_v4  ;;  %v7784_v8 = vld [vmem:[#allocation3 + $0x124] sm:$0xf]  ;;  %v6472_v9 = vld [vmem:[#allocation3 + $0x138] sm:$0xf0] }
  0x1f   :  { %v6518_v10 = vld [vmem:[#allocation3 + $0x180] sm:$0xf]  ;;  %496 = vmatpush.bf16.msra.mxu0 %v6495_v3  ;;  %v6471_v11 = vor.u32 %v7787_v6, %v6470_v5  ;;  %v7799_v12 = vld [vmem:[#allocation3 + $0x194] sm:$0x30]  ;;  %vm477_vm0 = vcmask 1045504   ;;  %v6475_v13 = vor.u32 %v7784_v8, %v6472_v9  ;;  %vm467_vm1 = vcmask 97280  }
  0x20   :  { %544 = vmatpush.bf16.msra.mxu2 %v6499_v7  ;;  %v6519_v14 = vor.u32 %v7799_v12, %v6518_v10  ;;  %v6446_v15 = vld [vmem:[#allocation3 + $0xf0] sm:$0xf]  ;;  %v7781_v16 = vld [vmem:[#allocation3 + $0x104] sm:$0xf0]  ;;  %v7746_v17 = vld [vmem:[%s10404_s0 + $0x24] sm:$0xf] }
  0x21   :  { %v7778_v18 = vld [vmem:[#allocation3 + $0xf4] sm:$0xf]  ;;  %v6448_v19 = vld [vmem:[#allocation3 + $0x108] sm:$0xf0]  ;;  %v6320_v20 = vld [vmem:[%s10404_s0 + $0x28] sm:$0xf0]  ;;  %v6447_v23 = vor.u32 %v7781_v16, %v6446_v15 }
  0x22   :  { %v479_v21 = vsel %vm477_vm0, %v6519_v14, 0  ;;  %v8366_v22 = vor.u32 %v7746_v17, %v6320_v20  ;;  %v6451_v24 = vor.u32 %v7778_v18, %v6448_v19  ;;  %v6422_v25 = vld [vmem:[#allocation3 + $0xc0] sm:$0xf]  ;;  %v7775_v26 = vld [vmem:[#allocation3 + $0xd4] sm:$0xf0]  ;;  %vm844_vm2 = vcmask 1041408  }
  0x23   :  { %497 = vmatpush.bf16.msra.mxu0 %v6471_v11  ;;  %8098 = vmatpush.bf16.msra.mxu3 %v479_v21  ;;  %v7772_v27 = vld [vmem:[#allocation3 + $0xc4] sm:$0xf]  ;;  %v6424_v28 = vld [vmem:[#allocation3 + $0xd8] sm:$0xf0]  ;;  %v6423_v31 = vor.u32 %v7775_v26, %v6422_v25  ;;  %v7742_v33 = vld [vmem:[%s10404_s0 + $0x4] sm:$0xf] }
  0x24   :  { %545 = vmatpush.bf16.msra.mxu2 %v6475_v13  ;;  %527 = vmatpush.bf16.msra.mxu1 %v479_v21  ;;  %v7796_v29 = vld [vmem:[#allocation3 + $0x184] sm:$0xf]  ;;  %v6520_v30 = vld [vmem:[#allocation3 + $0x198] sm:$0x30]  ;;  %v6427_v34 = vor.u32 %v7772_v27, %v6424_v28  ;;  %v6398_v35 = vld [vmem:[#allocation3 + $0x90] sm:$0xf] }
  0x25   :  { %v6523_v32 = vor.u32 %v7796_v29, %v6520_v30  ;;  %v7769_v36 = vld [vmem:[#allocation3 + $0xa4] sm:$0xf0]  ;;  %v6304_v37 = vld [vmem:[%s10404_s0 + $0x8] sm:$0xf0]  ;;  %v7766_v38 = vld [vmem:[#allocation3 + $0x94] sm:$0xf] }
  0x26   :  { %6542 = vmatmul.msk.bf16.vlgmr.msra.gmra.mxu3 %vm467_vm1, %v8366_v22  ;;  %v6400_v39 = vld [vmem:[#allocation3 + $0xa8] sm:$0xf0]  ;;  %v8377_v41 = vor.u32 %v7742_v33, %v6304_v37  ;;  %v6399_v42 = vor.u32 %v7769_v36, %v6398_v35  ;;  %v6374_v43 = vld [vmem:[#allocation3 + $0x60] sm:$0xf]  ;;  %v7763_v44 = vld [vmem:[#allocation3 + $0x74] sm:$0xf0] }
  0x27   :  { %498 = vmatpush.bf16.msra.mxu0 %v6447_v23  ;;  %v482_v40 = vsel %vm477_vm0, %v6523_v32, 0  ;;  %v6403_v45 = vor.u32 %v7766_v38, %v6400_v39  ;;  %v7760_v46 = vld [vmem:[#allocation3 + $0x64] sm:$0xf]  ;;  %v6376_v47 = vld [vmem:[#allocation3 + $0x78] sm:$0xf0]  ;;  %v6375_v51 = vor.u32 %v7763_v44, %v6374_v43  ;;  %vm846_vm3 = vcmask 1045508  }
  0x28   :  { %546 = vmatpush.bf16.msra.mxu2 %v6451_v24  ;;  %575 = vmatpush.bf16.msrb.mxu3 %v482_v40  ;;  %v6502_v48 = vld [vmem:[#allocation3 + $0x158] sm:$0xf]  ;;  %v7794_v49 = vld [vmem:[#allocation3 + $0x16c] sm:$0xf0]  ;;  %v6478_v52 = vld [vmem:[#allocation3 + $0x128] sm:$0xf]  ;;  %v6379_v54 = vor.u32 %v7760_v46, %v6376_v47 }
  0x29   :  { %6540 = vmatmul.msk.bf16.vlgmr.msra.gmra.mxu1 %vm467_vm1, %v8377_v41  ;;  %v6503_v50 = vor.u32 %v7794_v49, %v6502_v48  ;;  %v7788_v53 = vld [vmem:[#allocation3 + $0x13c] sm:$0xf0]  ;;  %v6350_v55 = vld [vmem:[#allocation3 + $0x30] sm:$0xf]  ;;  %v7757_v56 = vld [vmem:[#allocation3 + $0x44] sm:$0xf0] }
  0x2a   :  { %v7754_v57 = vld [vmem:[#allocation3 + $0x34] sm:$0xf]  ;;  %v6479_v58 = vor.u32 %v7788_v53, %v6478_v52  ;;  %v6352_v59 = vld [vmem:[#allocation3 + $0x48] sm:$0xf0]  ;;  %v6454_v60 = vld [vmem:[#allocation3 + $0xf8] sm:$0xf]  ;;  %v6351_v62 = vor.u32 %v7757_v56, %v6350_v55 }
  0x2b   :  { %499 = vmatpush.bf16.msra.mxu0 %v6423_v31  ;;  %592 = vmatpush.bf16.msrb.mxu1 %v6503_v50  ;;  %v7782_v61 = vld [vmem:[#allocation3 + $0x10c] sm:$0xf0]  ;;  %v6326_v63 = vld [vmem:[#allocation3] sm:$0xf]  ;;  %v6355_v0 = vor.u32 %v7754_v57, %v6352_v59  ;;  %v7751_v1 = vld [vmem:[#allocation3 + $0x14] sm:$0xf0] }
  0x2c   :  { %547 = vmatpush.bf16.msra.mxu2 %v6427_v34  ;;  %v7748_v2 = vld [vmem:[#allocation3 + $0x4] sm:$0xf]  ;;  %v6328_v3 = vld [vmem:[#allocation3 + $0x18] sm:$0xf0]  ;;  %v6455_v4 = vor.u32 %v7782_v61, %v6454_v60  ;;  %v7744_v5 = vld [vmem:[%s10404_s0 + $0x14] sm:$0xf]  ;;  %v6327_v11 = vor.u32 %v7751_v1, %v6326_v63 }
  0x2d   :  { %v7791_v6 = vld [vmem:[#allocation3 + $0x15c] sm:$0xf]  ;;  %v6504_v7 = vld [vmem:[#allocation3 + $0x170] sm:$0xf0]  ;;  %v6312_v8 = vld [vmem:[%s10404_s0 + $0x18] sm:$0xf0]  ;;  %v6331_v14 = vor.u32 %v7748_v2, %v6328_v3 }
  0x2e   :  { %v6430_v9 = vld [vmem:[#allocation3 + $0xc8] sm:$0xf]  ;;  %v7776_v10 = vld [vmem:[#allocation3 + $0xdc] sm:$0xf0]  ;;  %v6302_v12 = vld [vmem:[%s10404_s0] sm:$0xf]  ;;  %v6507_v15 = vor.u32 %v7791_v6, %v6504_v7  ;;  %v8395_v16 = vor.u32 %v7744_v5, %v6312_v8 }
  0x2f   :  { %500 = vmatpush.bf16.msra.mxu0 %v6399_v42  ;;  %593 = vmatpush.bf16.msrb.mxu1 %v6479_v58  ;;  %v7743_v13 = vld [vmem:[%s10404_s0 + $0x4] sm:$0xf0]  ;;  %v7785_v17 = vld [vmem:[#allocation3 + $0x12c] sm:$0xf]  ;;  %v6480_v18 = vld [vmem:[#allocation3 + $0x140] sm:$0xf0]  ;;  %v6431_v19 = vor.u32 %v7776_v10, %v6430_v9 }
  0x30   :  { %548 = vmatpush.bf16.msra.mxu2 %v6403_v45  ;;  %v8397_v20 = vor.u32 %v7743_v13, %v6302_v12  ;;  %v6483_v21 = vor.u32 %v7785_v17, %v6480_v18  ;;  %v7779_v23 = vld [vmem:[#allocation3 + $0xfc] sm:$0xf]  ;;  %v6456_v24 = vld [vmem:[#allocation3 + $0x110] sm:$0xf0]  ;;  %v6406_v25 = vld [vmem:[#allocation3 + $0x98] sm:$0xf] }
  0x31   :  { %v7770_v26 = vld [vmem:[#allocation3 + $0xac] sm:$0xf0]  ;;  %v6382_v28 = vld [vmem:[#allocation3 + $0x68] sm:$0xf]  ;;  %v7764_v29 = vld [vmem:[#allocation3 + $0x7c] sm:$0xf0]  ;;  %v6459_v30 = vor.u32 %v7779_v23, %v6456_v24 }
  0x32   :  { %v6407_v27 = vor.u32 %v7770_v26, %v6406_v25  ;;  %v6526_v31 = vld [vmem:[#allocation3 + $0x188] sm:$0xf]  ;;  %v7800_v32 = vld [vmem:[#allocation3 + $0x19c] sm:$0x30]  ;;  %v7773_v33 = vld [vmem:[#allocation3 + $0xcc] sm:$0xf]  ;;  %v6383_v35 = vor.u32 %v7764_v29, %v6382_v28 }
  0x33   :  { %501 = vmatpush.bf16.msra.mxu0 %v6375_v51  ;;  %594 = vmatpush.bf16.msrb.mxu1 %v6455_v4  ;;  %v6432_v34 = vld [vmem:[#allocation3 + $0xe0] sm:$0xf0]  ;;  %v6527_v36 = vor.u32 %v7800_v32, %v6526_v31  ;;  %v6358_v37 = vld [vmem:[#allocation3 + $0x38] sm:$0xf]  ;;  %v7758_v38 = vld [vmem:[#allocation3 + $0x4c] sm:$0xf0] }
  0x34   :  { %549 = vmatpush.bf16.msra.mxu2 %v6379_v54  ;;  %v6435_v40 = vor.u32 %v7773_v33, %v6432_v34  ;;  %v7767_v42 = vld [vmem:[#allocation3 + $0x9c] sm:$0xf]  ;;  %v6408_v43 = vld [vmem:[#allocation3 + $0xb0] sm:$0xf0]  ;;  %v6359_v44 = vor.u32 %v7758_v38, %v6358_v37  ;;  %v6310_v45 = vld [vmem:[%s10404_s0 + $0x10] sm:$0xf] }
  0x35   :  { %v485_v39 = vsel %vm477_vm0, %v6527_v36, 0  ;;  %v6334_v46 = vld [vmem:[#allocation3 + $0x8] sm:$0xf]  ;;  %v7752_v47 = vld [vmem:[#allocation3 + $0x1c] sm:$0xf0]  ;;  %v6411_v51 = vor.u32 %v7767_v42, %v6408_v43  ;;  %vm851_vm4 = vcmask 1043458  }
  0x36   :  { %6543 = vmatmul.msk.bf16.vlgmr.msrb.gmra.mxu3 %vm467_vm1, %v8377_v41  ;;  %v7745_v48 = vld [vmem:[%s10404_s0 + $0x14] sm:$0xf0]  ;;  %v6528_v50 = vld [vmem:[#allocation3 + $0x1a0] sm:$0x30]  ;;  %v6335_v55 = vor.u32 %v7752_v47, %v6334_v46  ;;  %v7755_v59 = vld [vmem:[#allocation3 + $0x3c] sm:$0xf] }
  0x37   :  { %502 = vmatpush.bf16.msra.mxu0 %v6351_v62  ;;  %595 = vmatpush.bf16.msrb.mxu1 %v6431_v19  ;;  %v7797_v49 = vld [vmem:[#allocation3 + $0x18c] sm:$0xf]  ;;  %v6384_v54 = vld [vmem:[#allocation3 + $0x80] sm:$0xf0]  ;;  %v8412_v56 = vor.u32 %v7745_v48, %v6310_v45  ;;  %v6360_v60 = vld [vmem:[#allocation3 + $0x50] sm:$0xf0] }
  0x38   :  { %550 = vmatpush.bf16.msra.mxu2 %v6355_v0  ;;  %623 = vmatpush.bf16.msra.mxu3 %v485_v39  ;;  %v6531_v52 = vor.u32 %v7797_v49, %v6528_v50  ;;  %v7761_v53 = vld [vmem:[#allocation3 + $0x6c] sm:$0xf]  ;;  %v6363_v61 = vor.u32 %v7755_v59, %v6360_v60  ;;  %v6336_v63 = vld [vmem:[#allocation3 + $0x20] sm:$0xf0]  ;;  %v6318_v1 = vld [vmem:[%s10404_s0 + $0x20] sm:$0xf] }
  0x39   :  { %6541 = vmatmul.msk.bf16.gmra.mxu1 %vm467_vm1, %v8395_v16  ;;  %v6387_v58 = vor.u32 %v7761_v53, %v6384_v54  ;;  %v7749_v62 = vld [vmem:[#allocation3 + $0xc] sm:$0xf]  ;;  %v7747_v2 = vld [vmem:[%s10404_s0 + $0x24] sm:$0xf0]  ;;  %v6510_v4 = vld [vmem:[#allocation3 + $0x160] sm:$0xf] }
  0x3a   :  { %v488_v57 = vsel %vm477_vm0, %v6531_v52, 0  ;;  %v6339_v0 = vor.u32 %v7749_v62, %v6336_v63  ;;  %v8426_v3 = vor.u32 %v7747_v2, %v6318_v1  ;;  %v7795_v5 = vld [vmem:[#allocation3 + $0x174] sm:$0xf0]  ;;  %v7792_v6 = vld [vmem:[#allocation3 + $0x164] sm:$0xf]  ;;  %vm848_vm5 = vcmask 1043456  }
  0x3b   :  { %503 = vmatpush.bf16.msra.mxu0 %v6327_v11  ;;  %596 = vmatpush.bf16.msrb.mxu1 %v6407_v27  ;;  %v6511_v7 = vor.u32 %v7795_v5, %v6510_v4  ;;  %v6512_v8 = vld [vmem:[#allocation3 + $0x178] sm:$0xf0]  ;;  %v6486_v10 = vld [vmem:[#allocation3 + $0x130] sm:$0xf]  ;;  %v7789_v11 = vld [vmem:[#allocation3 + $0x144] sm:$0xf0] }
  0x3c   :  { %551 = vmatpush.bf16.msra.mxu2 %v6331_v14  ;;  %v6515_v9 = vor.u32 %v7792_v6, %v6512_v8  ;;  %v7786_v12 = vld [vmem:[#allocation3 + $0x134] sm:$0xf]  ;;  %v6488_v13 = vld [vmem:[#allocation3 + $0x148] sm:$0xf0]  ;;  %v6487_v14 = vor.u32 %v7789_v11, %v6486_v10  ;;  %v6462_v17 = vld [vmem:[#allocation3 + $0x100] sm:$0xf] }
  0x3d   :  { %v7783_v18 = vld [vmem:[#allocation3 + $0x114] sm:$0xf0]  ;;  %v7780_v19 = vld [vmem:[#allocation3 + $0x104] sm:$0xf]  ;;  %v6438_v25 = vld [vmem:[#allocation3 + $0xd0] sm:$0xf] }
  0x3e   :  { %504 = vmatmul.bf16.vlgmr.msra.gmra.mxu0 %v8397_v20  ;;  %v6463_v23 = vor.u32 %v7783_v18, %v6462_v17  ;;  %v7777_v26 = vld [vmem:[#allocation3 + $0xe4] sm:$0xf0]  ;;  %v7774_v27 = vld [vmem:[#allocation3 + $0xd4] sm:$0xf]  ;;  %v6440_v28 = vld [vmem:[#allocation3 + $0xe8] sm:$0xf0] }
  0x3f   :  { %640 = vmatpush.bf16.msrb.mxu0 %v6507_v15  ;;  %552 = vmatmul.bf16.vlgmr.msra.gmra.mxu2 %v8397_v20  ;;  %v6491_v15 = vor.u32 %v7786_v12, %v6488_v13  ;;  %v6439_v29 = vor.u32 %v7777_v26, %v6438_v25  ;;  %v6414_v31 = vld [vmem:[#allocation3 + $0xa0] sm:$0xf]  ;;  %v7771_v32 = vld [vmem:[#allocation3 + $0xb4] sm:$0xf0]  ;;  %v7768_v33 = vld [vmem:[#allocation3 + $0xa4] sm:$0xf] }
  0x40   :  { %597 = vmatpush.bf16.msrb.mxu1 %v6383_v35  ;;  %671 = vmatpush.bf16.msrb.mxu2 %v488_v57  ;;  %v6415_v34 = vor.u32 %v7771_v32, %v6414_v31  ;;  %v6416_v35 = vld [vmem:[#allocation3 + $0xb8] sm:$0xf0]  ;;  %v6390_v37 = vld [vmem:[#allocation3 + $0x70] sm:$0xf]  ;;  %v7765_v38 = vld [vmem:[#allocation3 + $0x84] sm:$0xf0] }
  0x41   :  { %v6419_v36 = vor.u32 %v7768_v33, %v6416_v35  ;;  %v7762_v39 = vld [vmem:[#allocation3 + $0x74] sm:$0xf]  ;;  %v6534_v42 = vld [vmem:[#allocation3 + $0x190] sm:$0xf]  ;;  %v7801_v43 = vld [vmem:[#allocation3 + $0x1a4] sm:$0x30] }
  0x42   :  { %v6535_v46 = vor.u32 %v7801_v43, %v6534_v42  ;;  %v6366_v47 = vld [vmem:[#allocation3 + $0x40] sm:$0xf]  ;;  %v7759_v48 = vld [vmem:[#allocation3 + $0x54] sm:$0xf0]  ;;  %v7756_v49 = vld [vmem:[#allocation3 + $0x44] sm:$0xf] }
  0x43   :  { %641 = vmatpush.bf16.msrb.mxu0 %v6483_v21  ;;  %v6464_v21 = vld [vmem:[#allocation3 + $0x118] sm:$0xf0]  ;;  %v6367_v52 = vor.u32 %v7759_v48, %v6366_v47  ;;  %v6342_v54 = vld [vmem:[#allocation3 + $0x10] sm:$0xf]  ;;  %v7750_v57 = vld [vmem:[#allocation3 + $0x14] sm:$0xf] }
  0x44   :  { %598 = vmatpush.bf16.msrb.mxu1 %v6359_v44  ;;  %v6467_v24 = vor.u32 %v7780_v19, %v6464_v21  ;;  %v6391_v44 = vor.u32 %v7765_v38, %v6390_v37  ;;  %v6368_v50 = vld [vmem:[#allocation3 + $0x58] sm:$0xf0]  ;;  %v7798_v59 = vld [vmem:[#allocation3 + $0x194] sm:$0xf]  ;;  %v6536_v60 = vld [vmem:[#allocation3 + $0x1a8] sm:$0x30] }
  0x45   :  { %v6371_v53 = vor.u32 %v7756_v49, %v6368_v50  ;;  %vm854_vm6 = vcmask 1045506   ;;  %vm2608_vm7 = vcmask 1040384   ;;  %vm2612_vm8 = vcmask 1042434   ;;  %s8300_s0 = smov [#allocation14]   ;;  %s6287_s29 = sshll.u32 %s10411_s7, 4  ;;  %s6288_s29 = int_to_ptr.hbm [resolvable:$true] %s6287_s29 }
  0x46   :  { %6544 = vmatmul.msk.bf16.gmra.mxu3 %vm467_vm1, %v8395_v16  ;;  %vm2642_vm9 = vcmask 1041409   ;;  %s6285_s27 = sshll.u32 %s8300_s0, 4  ;;  %s6286_s27 = int_to_ptr.vmem [resolvable:$true] %s6285_s27 }
  0x47   :  { %642 = vmatpush.bf16.msrb.mxu0 %v6459_v30  ;;  %v6443_v30 = vor.u32 %v7774_v27, %v6440_v28 }
  0x48   :  { %599 = vmatpush.bf16.msrb.mxu1 %v6335_v55  ;;  %v7753_v55 = vld [vmem:[#allocation3 + $0x24] sm:$0xf0] }
  0x49   :  { %v6343_v62 = vor.u32 %v7753_v55, %v6342_v54 }
  0x4b   :  { %643 = vmatpush.bf16.msrb.mxu0 %v6435_v40  ;;  %600 = vmatmul.bf16.vlgmr.msrb.gmra.mxu1 %v8397_v20  ;;  %v6392_v40 = vld [vmem:[#allocation3 + $0x88] sm:$0xf0] }
  0x4c   :  { %688 = vmatpush.bf16.msra.mxu1 %v6511_v7  ;;  %v6395_v45 = vor.u32 %v7762_v39, %v6392_v40 }
  0x4e   :  { %509 = vmatmul.bf16.gmra.mxu0 %v8412_v56 }
  0x4f   :  { %644 = vmatpush.bf16.msrb.mxu0 %v6411_v51  ;;  %557 = vmatmul.bf16.gmra.mxu2 %v8412_v56  ;;  %v491_v51 = vsel %vm477_vm0, %v6535_v46, 0 }
  0x50   :  { %689 = vmatpush.bf16.msra.mxu1 %v6487_v14  ;;  %719 = vmatpush.bf16.msrb.mxu3 %v491_v51 }
  0x53   :  { %645 = vmatpush.bf16.msrb.mxu0 %v6387_v58  ;;  %v6344_v58 = vld [vmem:[#allocation3 + $0x28] sm:$0xf0] }
  0x54   :  { %690 = vmatpush.bf16.msra.mxu1 %v6463_v23  ;;  %v6347_v63 = vor.u32 %v7750_v57, %v6344_v58 }
  0x56   :  { %6545 = vmatmul.msk.bf16.gmra.mxu3 %vm467_vm1, %v8366_v22 }
  0x57   :  { %646 = vmatpush.bf16.msrb.mxu0 %v6363_v61  ;;  %v6539_v61 = vor.u32 %v7798_v59, %v6536_v60 }
  0x58   :  { %691 = vmatpush.bf16.msra.mxu1 %v6439_v29 }
  0x5b   :  { %647 = vmatpush.bf16.msrb.mxu0 %v6339_v0  ;;  %605 = vmatmul.bf16.gmra.mxu1 %v8412_v56  ;;  %v494_v0 = vsel %vm477_vm0, %v6539_v61, 0 }
  0x5c   :  { %692 = vmatpush.bf16.msra.mxu1 %v6415_v34  ;;  %767 = vmatpush.bf16.msra.mxu2 %v494_v0 }
  0x5e   :  { %514 = vmatmul.bf16.gmra.mxu0 %v8426_v3 }
  0x5f   :  { %562 = vmatmul.bf16.gmra.mxu2 %v8426_v3  ;;  %736 = vmatpush.bf16.msra.mxu0 %v6515_v9 }
  0x60   :  { %693 = vmatpush.bf16.msra.mxu1 %v6391_v44 }
  0x63   :  { %737 = vmatpush.bf16.msra.mxu0 %v6491_v15 }
  0x64   :  { %694 = vmatpush.bf16.msra.mxu1 %v6367_v52 }
  0x66   :  { %6546 = vmatmul.msk.bf16.vlgmr.msra.gmra.mxu3 %vm467_vm1, %v8377_v41 }
  0x67   :  { %738 = vmatpush.bf16.msra.mxu0 %v6467_v24 }
  0x68   :  { %695 = vmatpush.bf16.msra.mxu1 %v6343_v62 }
  0x6b   :  { %739 = vmatpush.bf16.msra.mxu0 %v6443_v30  ;;  %610 = vmatmul.bf16.gmra.mxu1 %v8426_v3 }
  0x6e   :  { %648 = vmatmul.bf16.vlgmr.msrb.gmra.mxu0 %v8397_v20 }
  0x6f   :  { %6549 = vmatmul.msk.bf16.vlgmr.msrb.gmra.mxu2 %vm467_vm1, %v8377_v41  ;;  %740 = vmatpush.bf16.msra.mxu0 %v6419_v36 }
  0x73   :  { %741 = vmatpush.bf16.msra.mxu0 %v6395_v45 }
  0x76   :  { %6547 = vmatmul.msk.bf16.gmra.mxu3 %vm467_vm1, %v8395_v16 }
  0x77   :  { %742 = vmatpush.bf16.msra.mxu0 %v6371_v53 }
  0x7b   :  { %743 = vmatpush.bf16.msra.mxu0 %v6347_v63  ;;  %696 = vmatmul.bf16.vlgmr.msra.gmra.mxu1 %v8397_v20 }
  0x7e   :  { %653 = vmatmul.bf16.gmra.mxu0 %v8412_v56 }
  0x7f   :  { %6550 = vmatmul.msk.bf16.gmra.mxu2 %vm467_vm1, %v8395_v16 }
  0x86   :  { %6548 = vmatmul.msk.bf16.gmra.mxu3 %vm467_vm1, %v8366_v22 }
  0x8b   :  { %701 = vmatmul.bf16.gmra.mxu1 %v8412_v56 }
  0x8e   :  { %658 = vmatmul.bf16.gmra.mxu0 %v8426_v3 }
  0x8f   :  { %6551 = vmatmul.msk.bf16.gmra.mxu2 %vm467_vm1, %v8366_v22 }
  0x96   :  { %6552 = vmatmul.msk.bf16.vlgmr.msrb.gmra.mxu3 %vm467_vm1, %v8377_v41 }
  0x9b   :  { %706 = vmatmul.bf16.gmra.mxu1 %v8426_v3 }
  0x9e   :  { %744 = vmatmul.bf16.vlgmr.msra.gmra.mxu0 %v8397_v20 }
  0x9f   :  { %6555 = vmatmul.msk.bf16.vlgmr.msra.gmra.mxu2 %vm467_vm1, %v8377_v41 }
  0xa6   :  { %6553 = vmatmul.msk.bf16.gmra.mxu3 %vm467_vm1, %v8395_v16  ;;  %v529_v20 = vpop.f32.mrf.mxu1 }
  0xa9   :  { %v539_v1 = vpop.f32.mrf.mxu3 }
  0xae   :  { %749 = vmatmul.bf16.gmra.mxu0 %v8412_v56  ;;  %v8469_v41 = vpop.f32.mrf.mxu1 }
  0xaf   :  { %6556 = vmatmul.msk.bf16.gmra.mxu2 %vm467_vm1, %v8395_v16 }
  0xb1   :  { %v8462_v2 = vpop.f32.mrf.mxu3 }
  0xb6   :  { %6554 = vmatmul.msk.bf16.gmra.mxu3 %vm467_vm1, %v8366_v22  ;;  %v534_v10 = vpop.f32.mrf.mxu1 }
  0xb9   :  { %v577_v4 = vpop.f32.mrf.mxu3 }
  0xbb   :  { %v505_v5 = vpop.f32.mrf.mxu0 }
  0xbc   :  { %v530_v50 = vadd.f32 %v529_v20, %v505_v5 }
  0xbe   :  { %754 = vmatmul.bf16.gmra.mxu0 %v8426_v3  ;;  %v8493_v21 = vpop.f32.mrf.mxu1 }
  0xbf   :  { %6557 = vmatmul.msk.bf16.gmra.mxu2 %vm467_vm1, %v8366_v22 }
  0xc1   :  { %v8471_v6 = vpop.f32.mrf.mxu3 }
  0xc2   :  { %v553_v56 = vpop.f32.mrf.mxu2 }
  0xc3   :  { %v8473_v7 = vpop.f32.mrf.mxu0  ;;  %v578_v42 = vadd.f32 %v577_v4, %v553_v56 }
  0xc5   :  { %v820_v46 = vrot.slane %v578_v42, 6 }
  0xc7   :  { %v845_v53 = vsel %vm844_vm2, %v530_v50, %v820_v46  ;;  %v852_v60 = vsel %vm851_vm4, %v530_v50, %v820_v46 }
  0xc8   :  { %v601_v28 = vpop.f32.mrf.mxu1 }
  0xc9   :  { %v582_v16 = vpop.f32.mrf.mxu3 }
  0xca   :  { %v8475_v8 = vpop.f32.mrf.mxu2 }
  0xcb   :  { %v510_v9 = vpop.f32.mrf.mxu0 }
  0xcc   :  { %v535_v11 = vadd.f32 %v534_v10, %v510_v9  ;;  %v859_v10 = vsel %vm846_vm3, %v530_v50, %v820_v46 }
  0xd0   :  { %v8515_v40 = vpop.f32.mrf.mxu1 }
  0xd1   :  { %v8477_v12 = vpop.f32.mrf.mxu3 }
  0xd2   :  { %v558_v13 = vpop.f32.mrf.mxu2 }
  0xd3   :  { %v583_v3 = vadd.f32 %v582_v16, %v558_v13  ;;  %v8479_v14 = vpop.f32.mrf.mxu0 }
  0xd5   :  { %v828_v22 = vrot.slane %v583_v3, 6 }
  0xd7   :  { %v8482_v15 = vsel %vm844_vm2, %v535_v11, %v828_v22  ;;  %v8485_v17 = vsel %vm851_vm4, %v535_v11, %v828_v22  ;;  %v8488_v18 = vsel %vm846_vm3, %v535_v11, %v828_v22  ;;  %v8491_v19 = vsel %vm477_vm0, %v828_v22, %v535_v11 }
  0xd8   :  { %v606_v52 = vpop.f32.mrf.mxu1 }
  0xd9   :  { %v587_v23 = vpop.f32.mrf.mxu3 }
  0xda   :  { %v8495_v24 = vpop.f32.mrf.mxu2 }
  0xdb   :  { %v515_v25 = vpop.f32.mrf.mxu0 }
  0xdc   :  { %v540_v26 = vadd.f32 %v539_v1, %v515_v25 }
  0xe0   :  { %v8525_v1 = vpop.f32.mrf.mxu1 }
  0xe1   :  { %v8497_v27 = vpop.f32.mrf.mxu3 }
  0xe2   :  { %v563_v29 = vpop.f32.mrf.mxu2 }
  0xe3   :  { %v588_v30 = vadd.f32 %v587_v23, %v563_v29  ;;  %v8499_v31 = vpop.f32.mrf.mxu0 }
  0xe5   :  { %v836_v32 = vrot.slane %v588_v30, 6 }
  0xe7   :  { %v8502_v33 = vsel %vm844_vm2, %v540_v26, %v836_v32  ;;  %v8505_v34 = vsel %vm851_vm4, %v540_v26, %v836_v32  ;;  %v8508_v35 = vsel %vm846_vm3, %v540_v26, %v836_v32  ;;  %v8511_v36 = vsel %vm477_vm0, %v836_v32, %v540_v26 }
  0xe9   :  { %v625_v37 = vpop.f32.mrf.mxu3 }
  0xea   :  { %v8513_v38 = vpop.f32.mrf.mxu2  ;;  %v626_v43 = vadd.f32 %v625_v37, %v601_v28 }
  0xeb   :  { %v649_v39 = vpop.f32.mrf.mxu0 }
  0xec   :  { %v821_v47 = vrot.slane %v626_v43, 4 }
  0xf1   :  { %v8517_v44 = vpop.f32.mrf.mxu3 }
  0xf2   :  { %v673_v45 = vpop.f32.mrf.mxu2 }
  0xf3   :  { %v674_v48 = vadd.f32 %v673_v45, %v649_v39  ;;  %v651_v49 = vpop.f32.mrf.mxu0 }
  0xf5   :  { %v822_v51 = vrot.slane %v674_v48, 2 }
  0xf7   :  { %v847_v54 = vsel %vm846_vm3, %v821_v47, %v822_v51  ;;  %v853_v57 = vsel %vm477_vm0, %v822_v51, %v821_v47  ;;  %v860_v20 = vsel %vm844_vm2, %v821_v47, %v822_v51 }
  0xf8   :  { %v849_v55 = vsel %vm848_vm5, %v845_v53, %v847_v54  ;;  %v855_v62 = vsel %vm854_vm6, %v852_v60, %v853_v57  ;;  %v861_v13 = vsel %vm848_vm5, %v860_v20, %v859_v10  ;;  %v865_v57 = vsel %vm477_vm0, %v820_v46, %v530_v50 }
  0xf9   :  { %981 = vst [vmem:[#allocation1] ss:$4 sm:$0xff] %v849_v55  ;;  %v630_v58 = vpop.f32.mrf.mxu3  ;;  %v856_v63 = vrot.slane %v855_v62, 2  ;;  %v862_v26 = vrot.slane %v861_v13, 4  ;;  %v628_v10 = vadd.f32 %v8517_v44, %v8515_v40 }
  0xfa   :  { %v675_v59 = vpop.f32.mrf.mxu2  ;;  %v631_v0 = vadd.f32 %v630_v58, %v606_v52  ;;  %v611_v52 = vpop.f32.mrf.mxu1 }
  0xfb   :  { %v654_v61 = vpop.f32.mrf.mxu0  ;;  %v825_v13 = vrot.slane %v628_v10, 4 }
  0xfc   :  { %v829_v3 = vrot.slane %v631_v0, 4 }
 0x100   :  { %v8528_v4 = vld.sshfl [vmem:[#allocation1] sm:$0xff pattern:$0x73625140]  ;;  %v8530_v5 = vld.sshfl [vmem:[#allocation1 + $0x8] sm:$0xff pattern:$0x73625140] }
 0x101   :  { %v8532_v56 = vld.sshfl [vmem:[#allocation1 + $0x10] sm:$0xff pattern:$0x73625140]  ;;  %v8534_v16 = vld.sshfl [vmem:[#allocation1 + $0x18] sm:$0xff pattern:$0x73625140]  ;;  %v8536_v9 = vpop.f32.mrf.mxu3 }
 0x102   :  { %990 = vst [vmem:[#allocation1] ss:$4 sm:$0xff] %v856_v63  ;;  %v678_v11 = vpop.f32.mrf.mxu2  ;;  %v580_v63 = vadd.f32 %v8471_v6, %v8475_v8 }
 0x103   :  { %v679_v22 = vadd.f32 %v678_v11, %v654_v61  ;;  %v8540_v23 = vpop.f32.mrf.mxu0  ;;  %v676_v61 = vadd.f32 %v675_v59, %v651_v49 }
 0x104   :  { %v824_v59 = vrot.slane %v580_v63, 6 }
 0x105   :  { %v830_v25 = vrot.slane %v679_v22, 2  ;;  %v826_v11 = vrot.slane %v676_v61, 2 }
 0x107   :  { %v894_v28 = vsel %vm846_vm3, %v829_v3, %v830_v25  ;;  %v898_v29 = vsel %vm477_vm0, %v830_v25, %v829_v3  ;;  %v904_v30 = vsel %vm844_vm2, %v829_v3, %v830_v25  ;;  %v910_v32 = vsel %vm851_vm4, %v829_v3, %v830_v25 }
 0x108   :  { %v8548_v37 = vsel %vm848_vm5, %v8482_v15, %v894_v28  ;;  %v8552_v39 = vsel %vm854_vm6, %v8485_v17, %v898_v29  ;;  %v8556_v42 = vsel %vm848_vm5, %v904_v30, %v8488_v18  ;;  %v8560_v43 = vsel %vm854_vm6, %v910_v32, %v8491_v19  ;;  %v8612_v30 = vpop.f32.mrf.mxu1 }
 0x109   :  { %v8562_v45 = vld.sshfl [vmem:[#allocation1] sm:$0xff pattern:$0x73625140]  ;;  %v8564_v48 = vld.sshfl [vmem:[#allocation1 + $0x8] sm:$0xff pattern:$0x73625140]  ;;  %v635_v53 = vpop.f32.mrf.mxu3  ;;  %v866_v18 = vsel %vm851_vm4, %v821_v47, %v822_v51  ;;  %v532_v29 = vadd.f32 %v8469_v41, %v8473_v7  ;;  %v876_v7 = vsel %vm477_vm0, %v826_v11, %v825_v13 }
 0x10a   :  { %10427 = vst [vmem:[#allocation20_spill] sm:$0xff] %v8562_v45  ;;  %v8566_v15 = vld.sshfl [vmem:[#allocation1 + $0x10] sm:$0xff pattern:$0x73625140]  ;;  %v8570_v17 = vpop.f32.mrf.mxu2  ;;  %v636_v55 = vadd.f32 %v635_v53, %v611_v52  ;;  %v867_v19 = vsel %vm854_vm6, %v866_v18, %v865_v57 }
 0x10b   :  { %10428 = vst [vmem:[#allocation21_spill] sm:$0xff] %v8564_v48  ;;  %v8568_v54 = vld.sshfl [vmem:[#allocation1 + $0x18] sm:$0xff pattern:$0x73625140]  ;;  %v659_v58 = vpop.f32.mrf.mxu0  ;;  %v868_v60 = vrot.slane %v867_v19, 6  ;;  %v875_v18 = vsel %vm851_vm4, %v532_v29, %v824_v59 }
 0x10c   :  { %10429 = vst [vmem:[#allocation22_spill] sm:$0xff] %v8566_v15  ;;  %v837_v62 = vrot.slane %v636_v55, 4  ;;  %v877_v57 = vsel %vm854_vm6, %v875_v18, %v876_v7 }
 0x10d   :  { %10430 = vst [vmem:[#allocation23_spill] sm:$0xff] %v8568_v54 }
 0x10e   :  { %998 = vst [vmem:[#allocation1] ss:$4 sm:$0xff] %v862_v26 }
 0x110   :  { %v697_v61 = vpop.f32.mrf.mxu1 }
 0x111   :  { %v8614_v32 = vpop.f32.mrf.mxu3 }
 0x112   :  { %v683_v47 = vpop.f32.mrf.mxu2 }
 0x113   :  { %v684_v50 = vadd.f32 %v683_v47, %v659_v58  ;;  %v8607_v28 = vpop.f32.mrf.mxu0 }
 0x115   :  { %v8577_v0 = vld.sshfl [vmem:[#allocation1] sm:$0xff pattern:$0x73625140]  ;;  %v8579_v20 = vld.sshfl [vmem:[#allocation1 + $0x8] sm:$0xff pattern:$0x73625140] }
 0x116   :  { %10431 = vst [vmem:[#allocation24_spill] sm:$0xff] %v8577_v0  ;;  %v8583_v51 = vld.sshfl [vmem:[#allocation1 + $0x10] sm:$0xff pattern:$0x73625140]  ;;  %v838_v49 = vrot.slane %v684_v50, 2 }
 0x117   :  { %10432 = vst [vmem:[#allocation25_spill] sm:$0xff] %v8579_v20  ;;  %v8585_v46 = vld.sshfl [vmem:[#allocation1 + $0x18] sm:$0xff pattern:$0x73625140] }
 0x118   :  { %10433 = vst [vmem:[#allocation26_spill] sm:$0xff] %v8583_v51  ;;  %v938_v6 = vsel %vm846_vm3, %v837_v62, %v838_v49  ;;  %v942_v8 = vsel %vm477_vm0, %v838_v49, %v837_v62  ;;  %v948_v3 = vsel %vm844_vm2, %v837_v62, %v838_v49  ;;  %v954_v22 = vsel %vm851_vm4, %v837_v62, %v838_v49 }
 0x119   :  { %10434 = vst [vmem:[#allocation27_spill] sm:$0xff] %v8585_v46  ;;  %v8593_v40 = vsel %vm848_vm5, %v8502_v33, %v938_v6  ;;  %v8597_v44 = vsel %vm854_vm6, %v8505_v34, %v942_v8  ;;  %v8601_v25 = vsel %vm848_vm5, %v948_v3, %v8508_v35  ;;  %v8605_v26 = vsel %vm854_vm6, %v954_v22, %v8511_v36  ;;  %v721_v62 = vpop.f32.mrf.mxu3 }
 0x11a   :  { %1006 = vst [vmem:[#allocation1] ss:$4 sm:$0xff] %v868_v60  ;;  %v872_v33 = vsel %vm846_vm3, %v825_v13, %v826_v11  ;;  %v8616_v34 = vpop.f32.mrf.mxu2  ;;  %v871_v35 = vsel %vm844_vm2, %v532_v29, %v824_v59  ;;  %v878_v60 = vrot.slane %v877_v57, 2  ;;  %v722_v50 = vadd.f32 %v721_v62, %v697_v61 }
 0x11b   :  { %v873_v41 = vsel %vm848_vm5, %v871_v35, %v872_v33  ;;  %v745_v19 = vpop.f32.mrf.mxu0  ;;  %v882_v8 = vsel %vm844_vm2, %v825_v13, %v826_v11  ;;  %v881_v22 = vsel %vm846_vm3, %v532_v29, %v824_v59 }
 0x11c   :  { %v883_v35 = vsel %vm848_vm5, %v882_v8, %v881_v22  ;;  %v887_v8 = vsel %vm477_vm0, %v824_v59, %v532_v29 }
 0x121   :  { %v8619_v52 = vld.sshfl [vmem:[#allocation1] sm:$0xff pattern:$0x73625140]  ;;  %v8621_v53 = vld.sshfl [vmem:[#allocation1 + $0x8] sm:$0xff pattern:$0x73625140] }
 0x122   :  { %10435 = vst [vmem:[#allocation28_spill] sm:$0xff] %v8619_v52  ;;  %v8623_v36 = vld.sshfl [vmem:[#allocation1 + $0x10] sm:$0xff pattern:$0x73625140]  ;;  %v769_v58 = vpop.f32.mrf.mxu2 }
 0x123   :  { %10436 = vst [vmem:[#allocation29_spill] sm:$0xff] %v8621_v53  ;;  %v8625_v55 = vld.sshfl [vmem:[#allocation1 + $0x18] sm:$0xff pattern:$0x73625140]  ;;  %v770_v63 = vadd.f32 %v769_v58, %v745_v19 }
 0x124   :  { %10437 = vst [vmem:[#allocation30_spill] sm:$0xff] %v8623_v36 }
 0x125   :  { %10438 = vst [vmem:[#allocation31_spill] sm:$0xff] %v8625_v55  ;;  %v823_v3 = vrot.slane %v770_v63, 6 }
 0x126   :  { %1014 = vst [vmem:[#allocation1] ss:$4 sm:$0xff] %v873_v41  ;;  %v884_v41 = vrot.slane %v883_v35, 4 }
 0x127   :  { %v850_v33 = vsel %vm844_vm2, %v722_v50, %v823_v3  ;;  %v857_v7 = vsel %vm851_vm4, %v722_v50, %v823_v3  ;;  %v863_v35 = vsel %vm846_vm3, %v722_v50, %v823_v3  ;;  %v869_v59 = vsel %vm477_vm0, %v823_v3, %v722_v50  ;;  %v699_v50 = vpop.f32.mrf.mxu1  ;;  %v723_v3 = vpop.f32.mrf.mxu3 }
 0x128   :  { %983 = vst [vmem:[#allocation1 + $0x20] ss:$4 sm:$0xff] %v850_v33  ;;  %v858_v61 = vrot.slane %v857_v7, 2 }
 0x12d   :  { %v8631_v10 = vld.sshfl [vmem:[#allocation1] sm:$0xff pattern:$0x73625140]  ;;  %v8633_v47 = vld.sshfl [vmem:[#allocation1 + $0x8] sm:$0xff pattern:$0x73625140] }
 0x12e   :  { %10439 = vst [vmem:[#allocation32_spill] sm:$0xff] %v8631_v10  ;;  %v8635_v49 = vld.sshfl [vmem:[#allocation1 + $0x10] sm:$0xff pattern:$0x73625140] }
 0x12f   :  { %10440 = vst [vmem:[#allocation33_spill] sm:$0xff] %v8633_v47  ;;  %v8637_v6 = vld.sshfl [vmem:[#allocation1 + $0x18] sm:$0xff pattern:$0x73625140] }
 0x130   :  { %10441 = vst [vmem:[#allocation34_spill] sm:$0xff] %v8635_v49  ;;  %v8653_v62 = vld.sshfl [vmem:[#allocation1 + $0x20] sm:$0xff pattern:$0x73625140] }
 0x131   :  { %10442 = vst [vmem:[#allocation35_spill] sm:$0xff] %v8637_v6  ;;  %v8655_v63 = vld.sshfl [vmem:[#allocation1 + $0x28] sm:$0xff pattern:$0x73625140] }
 0x132   :  { %1022 = vst [vmem:[#allocation1] ss:$4 sm:$0xff] %v878_v60  ;;  %v888_v60 = vsel %vm851_vm4, %v825_v13, %v826_v11  ;;  %v864_v13 = vrot.slane %v863_v35, 4 }
 0x133   :  { %10447 = vst [vmem:[#allocation40_spill] sm:$0xff] %v8655_v63  ;;  %v889_v22 = vsel %vm854_vm6, %v888_v60, %v887_v8 }
 0x134   :  { %991 = vst [vmem:[#allocation1 + $0x20] ss:$4 sm:$0xff] %v858_v61  ;;  %v890_v33 = vrot.slane %v889_v22, 6  ;;  %v771_v22 = vpop.f32.mrf.mxu2 }
 0x139   :  { %v8644_v18 = vld.sshfl [vmem:[#allocation1] sm:$0xff pattern:$0x73625140]  ;;  %v8646_v57 = vld.sshfl [vmem:[#allocation1 + $0x8] sm:$0xff pattern:$0x73625140] }
 0x13a   :  { %10443 = vst [vmem:[#allocation36_spill] sm:$0xff] %v8644_v18  ;;  %v8648_v19 = vld.sshfl [vmem:[#allocation1 + $0x10] sm:$0xff pattern:$0x73625140] }
 0x13b   :  { %10444 = vst [vmem:[#allocation37_spill] sm:$0xff] %v8646_v57  ;;  %v8650_v58 = vld.sshfl [vmem:[#allocation1 + $0x18] sm:$0xff pattern:$0x73625140] }
 0x13c   :  { %10445 = vst [vmem:[#allocation38_spill] sm:$0xff] %v8648_v19  ;;  %v8670_v7 = vld.sshfl [vmem:[#allocation1 + $0x28] sm:$0xff pattern:$0x73625140] }
 0x13d   :  { %10446 = vst [vmem:[#allocation39_spill] sm:$0xff] %v8650_v58 }
 0x13e   :  { %1030 = vst [vmem:[#allocation1] ss:$4 sm:$0xff] %v884_v41  ;;  %v8668_v41 = vld.sshfl [vmem:[#allocation1 + $0x20] sm:$0xff pattern:$0x73625140] }
 0x13f   :  { %10452 = vst [vmem:[#allocation45_spill] sm:$0xff] %v8668_v41 }
 0x140   :  { %10453 = vst [vmem:[#allocation46_spill] sm:$0xff] %v8670_v7 }
 0x141   :  { %999 = vst [vmem:[#allocation1 + $0x20] ss:$4 sm:$0xff] %v864_v13 }
 0x145   :  { %v8660_v57 = vld.sshfl [vmem:[#allocation1] sm:$0xff pattern:$0x73625140]  ;;  %v8662_v19 = vld.sshfl [vmem:[#allocation1 + $0x8] sm:$0xff pattern:$0x73625140] }
 0x146   :  { %10448 = vst [vmem:[#allocation41_spill] sm:$0xff] %v8660_v57  ;;  %v8664_v58 = vld.sshfl [vmem:[#allocation1 + $0x10] sm:$0xff pattern:$0x73625140] }
 0x147   :  { %10449 = vst [vmem:[#allocation42_spill] sm:$0xff] %v8662_v19  ;;  %v8666_v11 = vld.sshfl [vmem:[#allocation1 + $0x18] sm:$0xff pattern:$0x73625140] }
 0x148   :  { %10450 = vst [vmem:[#allocation43_spill] sm:$0xff] %v8664_v58  ;;  %v8682_v35 = vld.sshfl [vmem:[#allocation1 + $0x20] sm:$0xff pattern:$0x73625140]  ;;  %v747_v58 = vpop.f32.mrf.mxu0 }
 0x149   :  { %10451 = vst [vmem:[#allocation44_spill] sm:$0xff] %v8666_v11  ;;  %v8684_v11 = vld.sshfl [vmem:[#allocation1 + $0x28] sm:$0xff pattern:$0x73625140]  ;;  %v772_v13 = vadd.f32 %v771_v22, %v747_v58 }
 0x14a   :  { %1038 = vst [vmem:[#allocation1] ss:$4 sm:$0xff] %v890_v33  ;;  %v870_v33 = vrot.slane %v869_v59, 6  ;;  %v724_v59 = vadd.f32 %v723_v3, %v699_v50 }
 0x14b   :  { %10458 = vst [vmem:[#allocation51_spill] sm:$0xff] %v8682_v35 }
 0x14c   :  { %10459 = vst [vmem:[#allocation52_spill] sm:$0xff] %v8684_v11 }
 0x14d   :  { %1007 = vst [vmem:[#allocation1 + $0x20] ss:$4 sm:$0xff] %v870_v33 }
 0x151   :  { %v8673_v29 = vld.sshfl [vmem:[#allocation1] sm:$0xff pattern:$0x73625140]  ;;  %v8675_v60 = vld.sshfl [vmem:[#allocation1 + $0x8] sm:$0xff pattern:$0x73625140] }
 0x152   :  { %10454 = vst [vmem:[#allocation47_spill] sm:$0xff] %v8673_v29  ;;  %v8677_v61 = vld.sshfl [vmem:[#allocation1 + $0x10] sm:$0xff pattern:$0x73625140]  ;;  %v900_v29 = vrot.slane %v8552_v39, 2  ;;  %v906_v39 = vrot.slane %v8556_v42, 4  ;;  %v681_v42 = vadd.f32 %v8570_v17, %v8540_v23  ;;  %v590_v23 = vadd.f32 %v8497_v27, %v8513_v38 }
 0x153   :  { %10455 = vst [vmem:[#allocation48_spill] sm:$0xff] %v8675_v60  ;;  %v8679_v8 = vld.sshfl [vmem:[#allocation1 + $0x18] sm:$0xff pattern:$0x73625140]  ;;  %v827_v60 = vrot.slane %v772_v13, 6  ;;  %v686_v27 = vadd.f32 %v8616_v34, %v8607_v28  ;;  %v750_v28 = vpop.f32.mrf.mxu0  ;;  %v774_v34 = vpop.f32.mrf.mxu2 }
 0x154   :  { %10456 = vst [vmem:[#allocation49_spill] sm:$0xff] %v8677_v61  ;;  %v8695_v57 = vld.sshfl [vmem:[#allocation1 + $0x20] sm:$0xff pattern:$0x73625140]  ;;  %v834_v17 = vrot.slane %v681_v42, 2 }
 0x155   :  { %10457 = vst [vmem:[#allocation50_spill] sm:$0xff] %v8679_v8  ;;  %v8697_v18 = vld.sshfl [vmem:[#allocation1 + $0x28] sm:$0xff pattern:$0x73625140]  ;;  %v874_v58 = vsel %vm844_vm2, %v724_v59, %v827_v60  ;;  %v879_v22 = vsel %vm851_vm4, %v724_v59, %v827_v60  ;;  %v891_v38 = vsel %vm477_vm0, %v827_v60, %v724_v59 }
 0x156   :  { %1046 = vst [vmem:[#allocation1] ss:$4 sm:$0xff] %v8548_v37  ;;  %v892_v47 = vrot.slane %v891_v38, 6 }
 0x157   :  { %10464 = vst [vmem:[#allocation57_spill] sm:$0xff] %v8695_v57 }
 0x158   :  { %10465 = vst [vmem:[#allocation58_spill] sm:$0xff] %v8697_v18 }
 0x159   :  { %1015 = vst [vmem:[#allocation1 + $0x20] ss:$4 sm:$0xff] %v874_v58  ;;  %v912_v58 = vrot.slane %v8560_v43, 6 }
 0x15b   :  { %v752_v57 = vpop.f32.mrf.mxu0  ;;  %v776_v55 = vpop.f32.mrf.mxu2 }
 0x15d   :  { %v8687_v19 = vld.sshfl [vmem:[#allocation1] sm:$0xff pattern:$0x73625140]  ;;  %v8689_v61 = vld.sshfl [vmem:[#allocation1 + $0x8] sm:$0xff pattern:$0x73625140] }
 0x15e   :  { %10460 = vst [vmem:[#allocation53_spill] sm:$0xff] %v8687_v19  ;;  %v8691_v8 = vld.sshfl [vmem:[#allocation1 + $0x10] sm:$0xff pattern:$0x73625140] }
 0x15f   :  { %10461 = vst [vmem:[#allocation54_spill] sm:$0xff] %v8689_v61  ;;  %v8693_v37 = vld.sshfl [vmem:[#allocation1 + $0x18] sm:$0xff pattern:$0x73625140] }
 0x160   :  { %10462 = vst [vmem:[#allocation55_spill] sm:$0xff] %v8691_v8  ;;  %v8710_v50 = vld.sshfl [vmem:[#allocation1 + $0x20] sm:$0xff pattern:$0x73625140] }
 0x161   :  { %10463 = vst [vmem:[#allocation56_spill] sm:$0xff] %v8693_v37  ;;  %v8712_v3 = vld.sshfl [vmem:[#allocation1 + $0x28] sm:$0xff pattern:$0x73625140] }
 0x162   :  { %1054 = vst [vmem:[#allocation1] ss:$4 sm:$0xff] %v900_v29  ;;  %v880_v29 = vrot.slane %v879_v22, 2 }
 0x163   :  { %10470 = vst [vmem:[#allocation63_spill] sm:$0xff] %v8710_v50  ;;  %v537_v50 = vadd.f32 %v8493_v21, %v8479_v14 }
 0x164   :  { %10471 = vst [vmem:[#allocation64_spill] sm:$0xff] %v8712_v3  ;;  %v1318_v3 = vsel %vm844_vm2, %v8528_v4, -inf  ;;  %v8750_v4 = vadd.f32 %v8462_v2, %v8499_v31  ;;  %v638_v2 = vadd.f32 %v8614_v32, %v8612_v30  ;;  %v775_v31 = vadd.f32 %v774_v34, %v750_v28 }
 0x165   :  { %1023 = vst [vmem:[#allocation1 + $0x20] ss:$4 sm:$0xff] %v880_v29  ;;  %v633_v29 = vadd.f32 %v8536_v9, %v8525_v1  ;;  %v8738_v1 = vrot.slane %v590_v23, 6  ;;  %v1325_v32 = vsel %vm844_vm2, %v8530_v5, -inf  ;;  %v1339_v5 = vsel %vm844_vm2, %v8534_v16, -inf }
 0x166   :  { %v1326_v28 = vrot.slane %v1325_v32, 4 }
 0x167   :  { %v963_v49 = vsel %vm851_vm4, %v8750_v4, %v8738_v1 }
 0x169   :  { %v8702_v33 = vld.sshfl [vmem:[#allocation1] sm:$0xff pattern:$0x73625140]  ;;  %v8704_v13 = vld.sshfl [vmem:[#allocation1 + $0x8] sm:$0xff pattern:$0x73625140] }
 0x16a   :  { %10466 = vst [vmem:[#allocation59_spill] sm:$0xff] %v8702_v33  ;;  %v8706_v8 = vld.sshfl [vmem:[#allocation1 + $0x10] sm:$0xff pattern:$0x73625140]  ;;  %v885_v33 = vsel %vm846_vm3, %v724_v59, %v827_v60 }
 0x16b   :  { %10467 = vst [vmem:[#allocation60_spill] sm:$0xff] %v8704_v13  ;;  %v8708_v37 = vld.sshfl [vmem:[#allocation1 + $0x18] sm:$0xff pattern:$0x73625140]  ;;  %v585_v13 = vadd.f32 %v8477_v12, %v8495_v24  ;;  %v886_v43 = vrot.slane %v885_v33, 4  ;;  %v833_v24 = vrot.slane %v633_v29, 4 }
 0x16c   :  { %10468 = vst [vmem:[#allocation61_spill] sm:$0xff] %v8706_v8  ;;  %v8732_v19 = vld.sshfl [vmem:[#allocation1 + $0x28] sm:$0xff pattern:$0x73625140] }
 0x16d   :  { %10469 = vst [vmem:[#allocation62_spill] sm:$0xff] %v8708_v37  ;;  %v8728_v37 = vld.sshfl [vmem:[#allocation1 + $0x20] sm:$0xff pattern:$0x73625140]  ;;  %v832_v12 = vrot.slane %v585_v13, 6  ;;  %v916_v9 = vsel %vm846_vm3, %v833_v24, %v834_v17  ;;  %v920_v29 = vsel %vm477_vm0, %v834_v17, %v833_v24 }
 0x16e   :  { %1062 = vst [vmem:[#allocation1] ss:$4 sm:$0xff] %v906_v39  ;;  %v8745_v13 = vld [vmem:[#allocation6] sm:$0x7] }
 0x16f   :  { %10472 = vst [vmem:[#allocation65_spill] sm:$0xff] %v8728_v37  ;;  %v915_v33 = vsel %vm844_vm2, %v537_v50, %v832_v12  ;;  %v919_v42 = vsel %vm851_vm4, %v537_v50, %v832_v12  ;;  %v925_v37 = vsel %vm846_vm3, %v537_v50, %v832_v12  ;;  %v931_v6 = vsel %vm477_vm0, %v832_v12, %v537_v50  ;;  %v702_v12 = vpop.f32.mrf.mxu1 }
 0x170   :  { %10473 = vst [vmem:[#allocation66_spill] sm:$0xff] %v8732_v19  ;;  %v917_v23 = vsel %vm848_vm5, %v915_v33, %v916_v9  ;;  %v932_v19 = vsel %vm851_vm4, %v833_v24, %v834_v17  ;;  %v921_v9 = vsel %vm854_vm6, %v919_v42, %v920_v29  ;;  %v726_v33 = vpop.f32.mrf.mxu3  ;;  %v8787_v38 = vperm.slane %v8745_v13, 0 }
 0x171   :  { %1031 = vst [vmem:[#allocation1 + $0x20] ss:$4 sm:$0xff] %v886_v43  ;;  %v926_v43 = vsel %vm844_vm2, %v833_v24, %v834_v17  ;;  %v8777_v24 = vrot.slane %v686_v27, 2  ;;  %v8784_v50 = vsel %vm854_vm6, %v932_v19, %v931_v6  ;;  %v8791_v27 = vrot.slane %v638_v2, 4 }
 0x172   :  { %v8775_v17 = vsel %vm848_vm5, %v926_v43, %v925_v37  ;;  %10476 = vst [vmem:[#allocation69_spill] sm:$0xff] %v8787_v38  ;;  %v1332_v37 = vsel %vm844_vm2, %v8532_v56, -inf  ;;  %v8793_v29 = vrot.slane %v775_v31, 6  ;;  %v8795_v43 = vadd.f32 %v726_v33, %v702_v12 }
 0x173   :  { %v922_v6 = vrot.slane %v921_v9, 2  ;;  %v964_v56 = vsel %vm477_vm0, %v8777_v24, %v8791_v27  ;;  %v1333_v34 = vrot.slane %v1332_v37, 4  ;;  %v970_v16 = vsel %vm844_vm2, %v8791_v27, %v8777_v24 }
 0x174   :  { %v1340_v31 = vrot.slane %v1339_v5, 4  ;;  %v901_v52 = vsel %vm851_vm4, %v8795_v43, %v8793_v29 }
 0x175   :  { %v1064_v8 = vld.sshfl [vmem:[#allocation1] sm:$0xff pattern:$0x73625140]  ;;  %v8720_v61 = vld.sshfl [vmem:[#allocation1 + $0x8] sm:$0xff pattern:$0x73625140] }
 0x176   :  { %v8722_v39 = vld.sshfl [vmem:[#allocation1 + $0x10] sm:$0xff pattern:$0x73625140]  ;;  %v8724_v22 = vld.sshfl [vmem:[#allocation1 + $0x18] sm:$0xff pattern:$0x73625140] }
 0x177   :  { %1070 = vst [vmem:[#allocation1] ss:$4 sm:$0xff] %v912_v58  ;;  %v1319_v58 = vrot.slane %v1318_v3, 4  ;;  %v1738_v19 = vsel %vm844_vm2, %v1064_v8, -inf  ;;  %v896_v8 = vsel %vm844_vm2, %v8795_v43, %v8793_v29  ;;  %v1745_v12 = vsel %vm844_vm2, %v8720_v61, -inf }
 0x178   :  { %v8771_v10 = vld.sshfl [vmem:[#allocation1 + $0x20] sm:$0xff pattern:$0x73625140]  ;;  %v8779_v30 = vld.sshfl [vmem:[#allocation1 + $0x28] sm:$0xff pattern:$0x73625140] }
 0x179   :  { %10474 = vst [vmem:[#allocation67_spill] sm:$0xff] %v8771_v10  ;;  %v1320_v42 = vmax.f32 %v1318_v3, %v1319_v58  ;;  %v1739_v9 = vrot.slane %v1738_v19, 4  ;;  %v1759_v33 = vsel %vm844_vm2, %v8724_v22, -inf  ;;  %v8821_v58 = vsel %vm854_vm6, %v963_v49, %v964_v56 }
 0x17a   :  { %10475 = vst [vmem:[#allocation68_spill] sm:$0xff] %v8779_v30  ;;  %v976_v3 = vsel %vm851_vm4, %v8791_v27, %v8777_v24  ;;  %v1327_v10 = vmax.f32 %v1325_v32, %v1326_v28  ;;  %v1334_v49 = vmax.f32 %v1332_v37, %v1333_v34  ;;  %v975_v56 = vsel %vm477_vm0, %v8738_v1, %v8750_v4 }
 0x17b   :  { %1039 = vst [vmem:[#allocation1 + $0x20] ss:$4 sm:$0xff] %v892_v47  ;;  %v1321_v2 = vrot.slane %v1320_v42, 2  ;;  %v1760_v36 = vrot.slane %v1759_v33, 4  ;;  %v777_v34 = vadd.f32 %v776_v55, %v752_v57  ;;  %v1746_v32 = vrot.slane %v1745_v12, 4  ;;  %v704_v55 = vpop.f32.mrf.mxu1  ;;  %v728_v57 = vpop.f32.mrf.mxu3 }
 0x17c   :  { %10477 = vst [vmem:[#allocation70_spill] sm:$0xff] %v8821_v58  ;;  %v1752_v28 = vsel %vm844_vm2, %v8722_v39, -inf  ;;  %v1740_v11 = vmax.f32 %v1738_v19, %v1739_v9  ;;  %v902_v37 = vrot.slane %v901_v52, 2  ;;  %v8875_v46 = vadd.f32 %v728_v57, %v704_v55 }
 0x17d   :  { %v1753_v35 = vrot.slane %v1752_v28, 4 }
 0x17e   :  { %v8752_v14 = vld.sshfl [vmem:[#allocation1] sm:$0xff pattern:$0x73625140]  ;;  %v8754_v21 = vld.sshfl [vmem:[#allocation1 + $0x8] sm:$0xff pattern:$0x73625140] }
 0x17f   :  { %v8758_v60 = vld.sshfl [vmem:[#allocation1 + $0x10] sm:$0xff pattern:$0x73625140]  ;;  %v8760_v59 = vld.sshfl [vmem:[#allocation1 + $0x18] sm:$0xff pattern:$0x73625140] }
 0x180   :  { %1078 = vst [vmem:[#allocation1] ss:$4 sm:$0xff] %v917_v23  ;;  %v969_v23 = vsel %vm846_vm3, %v8750_v4, %v8738_v1  ;;  %v1787_v57 = vsel %vm844_vm2, %v8754_v21, -inf }
 0x181   :  { %v8831_v61 = vsel %vm848_vm5, %v970_v16, %v969_v23  ;;  %v8845_v23 = vsel %vm854_vm6, %v976_v3, %v975_v56  ;;  %v1335_v3 = vrot.slane %v1334_v49, 2  ;;  %v8868_v56 = vrot.slane %v777_v34, 6 }
 0x182   :  { %10478 = vst [vmem:[#allocation71_spill] sm:$0xff] %v8831_v61  ;;  %v8833_v22 = vld.sshfl [vmem:[#allocation1 + $0x20] sm:$0xff pattern:$0x73625140] }
 0x183   :  { %10479 = vst [vmem:[#allocation72_spill] sm:$0xff] %v8833_v22  ;;  %v8835_v18 = vld.sshfl [vmem:[#allocation1 + $0x28] sm:$0xff pattern:$0x73625140]  ;;  %v8850_v22 = vmax.f32 %v1320_v42, %v1321_v2  ;;  %v1780_v42 = vsel %vm844_vm2, %v8752_v14, -inf  ;;  %v8866_v2 = vperm.slane %v8745_v13, 2 }
 0x184   :  { %10480 = vst [vmem:[#allocation73_spill] sm:$0xff] %v8835_v18  ;;  %v1341_v18 = vmax.f32 %v1339_v5, %v1340_v31  ;;  %v1761_v5 = vmax.f32 %v1759_v33, %v1760_v36  ;;  %v8859_v31 = vperm.slane %v8745_v13, 1  ;;  %v1747_v33 = vmax.f32 %v1745_v12, %v1746_v32 }
 0x185   :  { %1047 = vst [vmem:[#allocation1 + $0x20] ss:$4 sm:$0xff] %v896_v8  ;;  %v1328_v8 = vrot.slane %v1327_v10, 2  ;;  %v1741_v13 = vrot.slane %v1740_v11, 2  ;;  %v1781_v52 = vrot.slane %v1780_v42, 4  ;;  %v1754_v36 = vmax.f32 %v1752_v28, %v1753_v35 }
 0x186   :  { %10481 = vst [vmem:[#allocation74_spill] sm:$0xff] %v8845_v23  ;;  %v1342_v39 = vrot.slane %v1341_v18, 2  ;;  %v1762_v51 = vrot.slane %v1761_v5, 2  ;;  %v10486_v32 = vrot.slane %v8775_v17, 4  ;;  %v1794_v17 = vsel %vm844_vm2, %v8758_v60, -inf }
 0x187   :  { %v8826_v47 = vld.sshfl [vmem:[#allocation1] sm:$0xff pattern:$0x73625140]  ;;  %v8828_v30 = vld.sshfl [vmem:[#allocation1 + $0x8] sm:$0xff pattern:$0x73625140]  ;;  %v8877_v14 = vmax.f32 %v1327_v10, %v1328_v8  ;;  %v907_v10 = vsel %vm846_vm3, %v8795_v43, %v8793_v29  ;;  %v1742_v28 = vmax.f32 %v1740_v11, %v1741_v13 }
 0x188   :  { %v8840_v53 = vld.sshfl [vmem:[#allocation1 + $0x10] sm:$0xff pattern:$0x73625140]  ;;  %v8847_v16 = vld.sshfl [vmem:[#allocation1 + $0x18] sm:$0xff pattern:$0x73625140]  ;;  %v8889_v12 = vmax.f32 %v1341_v18, %v1342_v39  ;;  %v8904_v18 = vsel %vm851_vm4, %v8875_v46, %v8868_v56  ;;  %v1763_v55 = vmax.f32 %v1761_v5, %v1762_v51  ;;  %v8918_v51 = vsel %vm846_vm3, %v8875_v46, %v8868_v56 }
 0x189   :  { %1086 = vst [vmem:[#allocation1] ss:$4 sm:$0xff] %v922_v6  ;;  %v1801_v6 = vsel %vm844_vm2, %v8760_v59, -inf  ;;  %v8879_v59 = vmax.f32 %v1334_v49, %v1335_v3  ;;  %v913_v49 = vsel %vm477_vm0, %v8793_v29, %v8795_v43  ;;  %v1748_v8 = vrot.slane %v1747_v33, 2 }
 0x18a   :  { %10482 = vst [vmem:[#allocation75_spill] sm:$0xff] %v8859_v31  ;;  %v1802_v20 = vrot.slane %v1801_v6, 4  ;;  %v1782_v3 = vmax.f32 %v1780_v42, %v1781_v52  ;;  %v908_v43 = vrot.slane %v907_v10, 4  ;;  %v914_v39 = vrot.slane %v913_v49, 6 }
 0x18b   :  { %10483 = vst [vmem:[#allocation76_spill] sm:$0xff] %v8866_v2  ;;  %v1344_v11 = vrot.slane %v8889_v12, 1  ;;  %v1788_v5 = vrot.slane %v1787_v57, 4  ;;  %v1795_v52 = vrot.slane %v1794_v17, 4  ;;  %v1743_v60 = vrot.slane %v1742_v28, 1 }
 0x18c   :  { %v8871_v19 = vld.sshfl [vmem:[#allocation1 + $0x20] sm:$0xff pattern:$0x73625140]  ;;  %v8873_v9 = vld.sshfl [vmem:[#allocation1 + $0x28] sm:$0xff pattern:$0x73625140]  ;;  %v1803_v29 = vmax.f32 %v1801_v6, %v1802_v20  ;;  %v1749_v6 = vmax.f32 %v1747_v33, %v1748_v8 }
 0x18d   :  { %10484 = vst [vmem:[#allocation77_spill] sm:$0xff] %v8871_v19  ;;  %v1783_v21 = vrot.slane %v1782_v3, 2  ;;  %v1764_v10 = vrot.slane %v1763_v55, 1  ;;  %v1789_v20 = vmax.f32 %v1787_v57, %v1788_v5  ;;  %v1796_v54 = vmax.f32 %v1794_v17, %v1795_v52 }
 0x18e   :  { %10485 = vst [vmem:[#allocation78_spill] sm:$0xff] %v8873_v9  ;;  %v1804_v49 = vrot.slane %v1803_v29, 2  ;;  %v1750_v8 = vrot.slane %v1749_v6, 1  ;;  %v1822_v48 = vsel %vm844_vm2, %v8826_v47, -inf  ;;  %v1829_v63 = vsel %vm844_vm2, %v8828_v30, -inf }
 0x18f   :  { %1055 = vst [vmem:[#allocation1 + $0x20] ss:$4 sm:$0xff] %v902_v37  ;;  %v8924_v37 = vsel %vm477_vm0, %v8868_v56, %v8875_v46  ;;  %v1784_v41 = vmax.f32 %v1782_v3, %v1783_v21  ;;  %v1836_v3 = vsel %vm844_vm2, %v8840_v53, -inf  ;;  %v1843_v57 = vsel %vm844_vm2, %v8847_v16, -inf }
 0x190   :  { %v8881_v34 = vld.sshfl [vmem:[#allocation1] sm:$0xff pattern:$0x73625140]  ;;  %v8883_v0 = vld.sshfl [vmem:[#allocation1 + $0x8] sm:$0xff pattern:$0x73625140]  ;;  %v960_v17 = vsel %vm846_vm3, %v8791_v27, %v8777_v24  ;;  %v1744_v21 = vmax.f32 %v1742_v28, %v1743_v60  ;;  %v1765_v5 = vmax.f32 %v1763_v55, %v1764_v10 }
 0x191   :  { %v8885_v19 = vld.sshfl [vmem:[#allocation1 + $0x10] sm:$0xff pattern:$0x73625140]  ;;  %v8887_v9 = vld.sshfl [vmem:[#allocation1 + $0x18] sm:$0xff pattern:$0x73625140] }
 0x192   :  { %1094 = vst [vmem:[#allocation1] ss:$4 sm:$0xff] %v10486_v32  ;;  %v1755_v32 = vrot.slane %v1754_v36, 2  ;;  %v1785_v30 = vrot.slane %v1784_v41, 1  ;;  %v1790_v52 = vrot.slane %v1789_v20, 2  ;;  %v1823_v53 = vrot.slane %v1822_v48, 4 }
 0x193   :  { %v1830_v15 = vrot.slane %v1829_v63, 4  ;;  %v1837_v16 = vrot.slane %v1836_v3, 4  ;;  %v1844_v33 = vrot.slane %v1843_v57, 4  ;;  %v1878_v24 = vsel %vm844_vm2, %v8885_v19, -inf }
 0x194   :  { %v1756_v35 = vmax.f32 %v1754_v36, %v1755_v32  ;;  %v10489_v36 = vrot.slane %v8784_v50, 6  ;;  %v1805_v32 = vmax.f32 %v1803_v29, %v1804_v49  ;;  %v959_v50 = vsel %vm844_vm2, %v8750_v4, %v8738_v1 }
 0x195   :  { %v1797_v49 = vrot.slane %v1796_v54, 2  ;;  %v1864_v1 = vsel %vm844_vm2, %v8881_v34, -inf  ;;  %v1871_v4 = vsel %vm844_vm2, %v8883_v0, -inf  ;;  %v1885_v27 = vsel %vm844_vm2, %v8887_v9, -inf }
 0x196   :  { %v8911_v13 = vld.sshfl [vmem:[#allocation1 + $0x20] sm:$0xff pattern:$0x73625140]  ;;  %v8913_v42 = vld.sshfl [vmem:[#allocation1 + $0x28] sm:$0xff pattern:$0x73625140]  ;;  %v8961_v28 = vsel %vm848_vm5, %v959_v50, %v960_v17  ;;  %v8982_v50 = vmax.f32 %v1749_v6, %v1750_v8  ;;  %v918_v17 = vsel %vm844_vm2, %v8875_v46, %v8868_v56  ;;  %v1791_v6 = vmax.f32 %v1789_v20, %v1790_v52 }
 0x197   :  { %10487 = vst [vmem:[#allocation79_spill] sm:$0xff] %v8911_v13  ;;  %v1757_v45 = vrot.slane %v1756_v35, 1  ;;  %v10491_v60 = vrot.slane %v8850_v22, 1  ;;  %v10493_v0 = vrot.slane %v8877_v14, 1  ;;  %v10495_v19 = vrot.slane %v8879_v59, 1 }
 0x198   :  { %10488 = vst [vmem:[#allocation80_spill] sm:$0xff] %v8913_v42  ;;  %v1872_v8 = vrot.slane %v1871_v4, 4  ;;  %v1786_v61 = vmax.f32 %v1784_v41, %v1785_v30  ;;  %v1792_v52 = vrot.slane %v1791_v6, 1 }
 0x199   :  { %1063 = vst [vmem:[#allocation1 + $0x20] ss:$4 sm:$0xff] %v908_v43  ;;  %v8926_v42 = vld.sshfl [vmem:[#allocation1] sm:$0xff pattern:$0x73625140]  ;;  %v8970_v34 = vmax.f32 %v8850_v22, %v10491_v60  ;;  %v8975_v10 = vmax.f32 %v8877_v14, %v10493_v0  ;;  %v8980_v9 = vmax.f32 %v8879_v59, %v10495_v19  ;;  %v1824_v60 = vmax.f32 %v1822_v48, %v1823_v53 }
 0x19a   :  { %v8928_v13 = vld.sshfl [vmem:[#allocation1 + $0x8] sm:$0xff pattern:$0x73625140]  ;;  %v8930_v43 = vld.sshfl [vmem:[#allocation1 + $0x10] sm:$0xff pattern:$0x73625140]  ;;  %v8994_v14 = vmax.f32 %v1756_v35, %v1757_v45  ;;  %v2356_v0 = vmax.f32 %v1744_v21, %v1765_v5  ;;  %v9001_v48 = vmax.f32 %v1796_v54, %v1797_v49  ;;  %v1873_v41 = vmax.f32 %v1871_v4, %v1872_v8 }
 0x19b   :  { %v8932_v7 = vld.sshfl [vmem:[#allocation1 + $0x18] sm:$0xff pattern:$0x73625140]  ;;  %10490 = vst [vmem:[#allocation81_spill] sm:$0xff] %v8961_v28  ;;  %v1865_v59 = vrot.slane %v1864_v1, 4  ;;  %v1879_v19 = vrot.slane %v1878_v24, 4 }
 0x19c   :  { %1102 = vst [vmem:[#allocation1] ss:$4 sm:$0xff] %v10489_v36  ;;  %v1806_v36 = vrot.slane %v1805_v32, 1  ;;  %v9006_v20 = vadd.f32 %v8787_v38, %v2356_v0  ;;  %v1906_v5 = vsel %vm844_vm2, %v8926_v42, -inf  ;;  %v1799_v4 = vrot.slane %v9001_v48, 1 }
 0x19d   :  { %10492 = vst [vmem:[#allocation82_spill] sm:$0xff] %v8970_v34  ;;  %v8992_v34 = vmax.f32 %v8889_v12, %v1344_v11  ;;  %v1831_v11 = vmax.f32 %v1829_v63, %v1830_v15  ;;  %v1866_v21 = vmax.f32 %v1864_v1, %v1865_v59  ;;  %v1880_v54 = vmax.f32 %v1878_v24, %v1879_v19 }
 0x19e   :  { %10494 = vst [vmem:[#allocation83_spill] sm:$0xff] %v8975_v10  ;;  %v1845_v10 = vmax.f32 %v1843_v57, %v1844_v33  ;;  %v1807_v12 = vmax.f32 %v1805_v32, %v1806_v36  ;;  %v1825_v33 = vrot.slane %v1824_v60, 2  ;;  %v1346_v15 = vsel %vm844_vm2, %v8653_v62, -inf }
 0x19f   :  { %10496 = vst [vmem:[#allocation84_spill] sm:$0xff] %v8980_v9  ;;  %v1886_v9 = vrot.slane %v1885_v27, 4  ;;  %v1907_v53 = vrot.slane %v1906_v5, 4  ;;  %v1913_v1 = vsel %vm844_vm2, %v8928_v13, -inf  ;;  %v1347_v42 = vrot.slane %v1346_v15, 4 }
 0x1a0   :  { %v1068_v29 = vld.sshfl [vmem:[#allocation1 + $0x20] sm:$0xff pattern:$0x73625140]  ;;  %v1069_v47 = vld.sshfl [vmem:[#allocation1 + $0x28] sm:$0xff pattern:$0x73625140] }
 0x1a1   :  { %1071 = vst [vmem:[#allocation1 + $0x20] ss:$4 sm:$0xff] %v914_v39  ;;  %v1766_v45 = vsel %vm844_vm2, %v1068_v29, -inf  ;;  %v1773_v35 = vsel %vm844_vm2, %v1069_v47, -inf  ;;  %v1846_v57 = vrot.slane %v1845_v10, 2  ;;  %v1887_v30 = vmax.f32 %v1885_v27, %v1886_v9 }
 0x1a2   :  { %10497 = vst [vmem:[#allocation85_spill] sm:$0xff] %v8992_v34  ;;  %v1767_v63 = vrot.slane %v1766_v45, 4  ;;  %v1774_v32 = vrot.slane %v1773_v35, 4  ;;  %v2359_v29 = vmax.f32 %v1786_v61, %v1807_v12  ;;  %v1832_v47 = vrot.slane %v1831_v11, 2 }
 0x1a3   :  { %v8963_v55 = vld.sshfl [vmem:[#allocation1] sm:$0xff pattern:$0x73625140]  ;;  %v8965_v39 = vld.sshfl [vmem:[#allocation1 + $0x8] sm:$0xff pattern:$0x73625140]  ;;  %v1847_v36 = vmax.f32 %v1845_v10, %v1846_v57  ;;  %v1908_v13 = vmax.f32 %v1906_v5, %v1907_v53  ;;  %v1348_v58 = vmax.f32 %v1346_v15, %v1347_v42 }
 0x1a4   :  { %v8987_v23 = vld.sshfl [vmem:[#allocation1 + $0x10] sm:$0xff pattern:$0x73625140]  ;;  %v8989_v22 = vld.sshfl [vmem:[#allocation1 + $0x18] sm:$0xff pattern:$0x73625140]  ;;  %v1768_v62 = vmax.f32 %v1766_v45, %v1767_v63  ;;  %v9016_v61 = vadd.f32 %v8787_v38, %v2359_v29  ;;  %v1833_v59 = vmax.f32 %v1831_v11, %v1832_v47  ;;  %v9021_v45 = vmax.f32 %v1791_v6, %v1792_v52 }
 0x1a5   :  { %1110 = vst [vmem:[#allocation1] ss:$4 sm:$0xff] %v8593_v40  ;;  %v1838_v40 = vmax.f32 %v1836_v3, %v1837_v16  ;;  %v1826_v3 = vmax.f32 %v1824_v60, %v1825_v33  ;;  %v1867_v16 = vrot.slane %v1866_v21, 2  ;;  %v1874_v24 = vrot.slane %v1873_v41, 2 }
 0x1a6   :  { %v1881_v27 = vrot.slane %v1880_v54, 2  ;;  %v1888_v9 = vrot.slane %v1887_v30, 2  ;;  %10498 = vst [vmem:[#allocation86_spill] sm:$0xff] %v9016_v61  ;;  %v10499_v10 = vrot.slane %v8904_v18, 2  ;;  %v1914_v12 = vrot.slane %v1913_v1, 4 }
 0x1a7   :  { %v1839_v49 = vrot.slane %v1838_v40, 2  ;;  %v1827_v8 = vrot.slane %v1826_v3, 1  ;;  %v1848_v57 = vrot.slane %v1847_v36, 1  ;;  %v1868_v34 = vmax.f32 %v1866_v21, %v1867_v16 }
 0x1a8   :  { %v8997_v46 = vld.sshfl [vmem:[#allocation1 + $0x20] sm:$0xff pattern:$0x73625140]  ;;  %v8999_v56 = vld.sshfl [vmem:[#allocation1 + $0x28] sm:$0xff pattern:$0x73625140]  ;;  %v1882_v63 = vmax.f32 %v1880_v54, %v1881_v27 }
 0x1a9   :  { %1079 = vst [vmem:[#allocation1 + $0x20] ss:$4 sm:$0xff] %v918_v17  ;;  %v1775_v17 = vmax.f32 %v1773_v35, %v1774_v32  ;;  %v1840_v19 = vmax.f32 %v1838_v40, %v1839_v49  ;;  %v1875_v35 = vmax.f32 %v1873_v41, %v1874_v24  ;;  %v1889_v32 = vmax.f32 %v1887_v30, %v1888_v9 }
 0x1aa   :  { %v1769_v29 = vrot.slane %v1768_v62, 2  ;;  %v1834_v18 = vrot.slane %v1833_v59, 1  ;;  %v9024_v47 = vmax.f32 %v1826_v3, %v1827_v8  ;;  %v1909_v5 = vrot.slane %v1908_v13, 2 }
 0x1ab   :  { %v1776_v28 = vrot.slane %v1775_v17, 2  ;;  %v1841_v40 = vrot.slane %v1840_v19, 1  ;;  %v1915_v49 = vmax.f32 %v1913_v1, %v1914_v12  ;;  %v9026_v53 = vmax.f32 %v1847_v36, %v1848_v57 }
 0x1ac   :  { %v1920_v6 = vsel %vm844_vm2, %v8930_v43, -inf  ;;  %v1349_v21 = vrot.slane %v1348_v58, 2  ;;  %v1876_v41 = vrot.slane %v1875_v35, 1  ;;  %v1883_v54 = vrot.slane %v1882_v63, 1 }
 0x1ad   :  { %v1890_v30 = vrot.slane %v1889_v32, 1  ;;  %v1927_v15 = vsel %vm844_vm2, %v8932_v7, -inf  ;;  %v1770_v52 = vmax.f32 %v1768_v62, %v1769_v29  ;;  %v1777_v16 = vmax.f32 %v1775_v17, %v1776_v28 }
 0x1ae   :  { %v9033_v3 = vmax.f32 %v9001_v48, %v1799_v4  ;;  %v9035_v36 = vmax.f32 %v1833_v59, %v1834_v18  ;;  %v10500_v24 = vrot.slane %v8918_v51, 4  ;;  %v9039_v43 = vmax.f32 %v1908_v13, %v1909_v5  ;;  %v9054_v59 = vld.sshfl [vmem:[#allocation1] sm:$0xff pattern:$0x73625140] }
 0x1af   :  { %v1916_v27 = vrot.slane %v1915_v49, 2  ;;  %v1921_v9 = vrot.slane %v1920_v6, 4  ;;  %v1948_v8 = vsel %vm844_vm2, %v8963_v55, -inf  ;;  %v1808_v7 = vsel %vm844_vm2, %v8997_v46, -inf }
 0x1b0   :  { %v1084_v0 = vld.sshfl [vmem:[#allocation1 + $0x20] sm:$0xff pattern:$0x73625140]  ;;  %v1085_v60 = vld.sshfl [vmem:[#allocation1 + $0x28] sm:$0xff pattern:$0x73625140]  ;;  %v9048_v62 = vmax.f32 %v1840_v19, %v1841_v40  ;;  %v2362_v17 = vmax.f32 %v9024_v47, %v9026_v53  ;;  %v9058_v55 = vmax.f32 %v1348_v58, %v1349_v21  ;;  %v9061_v57 = vmax.f32 %v1875_v35, %v1876_v41 }
 0x1b1   :  { %1087 = vst [vmem:[#allocation1 + $0x20] ss:$4 sm:$0xff] %v10499_v10  ;;  %v1869_v10 = vrot.slane %v1868_v34, 1  ;;  %v1815_v28 = vsel %vm844_vm2, %v8999_v56, -inf  ;;  %v1850_v48 = vsel %vm844_vm2, %v1084_v0, -inf  ;;  %v1928_v4 = vrot.slane %v1927_v15, 4 }
 0x1b2   :  { %v9056_v13 = vld.sshfl [vmem:[#allocation1 + $0x8] sm:$0xff pattern:$0x73625140]  ;;  %10501 = vst [vmem:[#allocation87_spill] sm:$0xff] %v9058_v55  ;;  %v1771_v46 = vrot.slane %v1770_v52, 1  ;;  %v1778_v12 = vrot.slane %v1777_v16, 1  ;;  %v9067_v29 = vmax.f32 %v1889_v32, %v1890_v30  ;;  %v1922_v53 = vmax.f32 %v1920_v6, %v1921_v9 }
 0x1b3   :  { %v9050_v51 = vmax.f32 %v1868_v34, %v1869_v10  ;;  %v1857_v56 = vsel %vm844_vm2, %v1085_v60, -inf  ;;  %v9063_v0 = vld.sshfl [vmem:[#allocation1 + $0x10] sm:$0xff pattern:$0x73625140]  ;;  %v1851_v19 = vrot.slane %v1850_v48, 4  ;;  %v9065_v34 = vmax.f32 %v1882_v63, %v1883_v54 }
 0x1b4   :  { %v1911_v18 = vrot.slane %v9039_v43, 1  ;;  %v9070_v47 = vld.sshfl [vmem:[#allocation1 + $0x18] sm:$0xff pattern:$0x73625140]  ;;  %v1809_v40 = vrot.slane %v1808_v7, 4  ;;  %v1816_v58 = vrot.slane %v1815_v28, 4  ;;  %v1772_v32 = vmax.f32 %v1770_v52, %v1771_v46 }
 0x1b5   :  { %10502 = vst [vmem:[#allocation88_spill] sm:$0xff] %v9070_v47  ;;  %v10503_v60 = vrot.slane %v8597_v44, 2  ;;  %v1858_v35 = vrot.slane %v1857_v56, 4  ;;  %v1949_v21 = vrot.slane %v1948_v8, 4  ;;  %v1969_v63 = vsel %vm844_vm2, %v8989_v22, -inf }
 0x1b6   :  { %v1779_v41 = vmax.f32 %v1777_v16, %v1778_v12  ;;  %v1929_v11 = vmax.f32 %v1927_v15, %v1928_v4  ;;  %v10504_v33 = vrot.slane %v8924_v37, 6  ;;  %v1852_v6 = vmax.f32 %v1850_v48, %v1851_v19 }
 0x1b7   :  { %1118 = vst [vmem:[#allocation1] ss:$4 sm:$0xff] %v10503_v60  ;;  %v1817_v60 = vmax.f32 %v1815_v28, %v1816_v58  ;;  %v1923_v22 = vrot.slane %v1922_v53, 2  ;;  %v9084_v16 = vsel %vm844_vm2, %v8965_v39, -inf  ;;  %v2357_v37 = vmax.f32 %v8982_v50, %v1772_v32 }
 0x1b8   :  { %v1092_v42 = vld.sshfl [vmem:[#allocation1 + $0x20] sm:$0xff pattern:$0x73625140]  ;;  %v1093_v1 = vld.sshfl [vmem:[#allocation1 + $0x28] sm:$0xff pattern:$0x73625140]  ;;  %v1859_v15 = vmax.f32 %v1857_v56, %v1858_v35  ;;  %v9091_v47 = vadd.f32 %v8787_v38, %v2362_v17 }
 0x1b9   :  { %1095 = vst [vmem:[#allocation1 + $0x20] ss:$4 sm:$0xff] %v10500_v24  ;;  %v1892_v5 = vsel %vm844_vm2, %v1092_v42, -inf  ;;  %v1899_v10 = vsel %vm844_vm2, %v1093_v1, -inf  ;;  %v1917_v24 = vmax.f32 %v1915_v49, %v1916_v27  ;;  %v1810_v1 = vmax.f32 %v1808_v7, %v1809_v40 }
 0x1ba   :  { %v1893_v42 = vrot.slane %v1892_v5, 4  ;;  %v1900_v61 = vrot.slane %v1899_v10, 4  ;;  %v1970_v49 = vrot.slane %v1969_v63, 4  ;;  %v1853_v48 = vrot.slane %v1852_v6, 2 }
 0x1bb   :  { %v1918_v27 = vrot.slane %v1917_v24, 1  ;;  %v1930_v46 = vrot.slane %v1929_v11, 2  ;;  %v1950_v7 = vmax.f32 %v1948_v8, %v1949_v21  ;;  %v1811_v28 = vrot.slane %v1810_v1, 2 }
 0x1bc   :  { %v1894_v4 = vmax.f32 %v1892_v5, %v1893_v42  ;;  %v1818_v12 = vrot.slane %v1817_v60, 2  ;;  %v1901_v19 = vmax.f32 %v1899_v10, %v1900_v61  ;;  %v2437_v56 = vadd.f32 %v8859_v31, %v2357_v37 }
 0x1bd   :  { %v1860_v5 = vrot.slane %v1859_v15, 2  ;;  %v9100_v61 = vmax.f32 %v9039_v43, %v1911_v18  ;;  %v1951_v10 = vrot.slane %v1950_v7, 2  ;;  %v1812_v17 = vmax.f32 %v1810_v1, %v1811_v28 }
 0x1be   :  { %v9088_v58 = vld.sshfl [vmem:[#allocation1] sm:$0xff pattern:$0x73625140]  ;;  %v9093_v50 = vld.sshfl [vmem:[#allocation1 + $0x8] sm:$0xff pattern:$0x73625140]  ;;  %v9104_v32 = vmax.f32 %v1917_v24, %v1918_v27 }
 0x1bf   :  { %v1895_v35 = vrot.slane %v1894_v4, 2  ;;  %v9102_v21 = vld.sshfl [vmem:[#allocation1 + $0x18] sm:$0xff pattern:$0x73625140]  ;;  %v10506_v42 = vrot.slane %v8601_v25, 4  ;;  %v2509_v43 = vmax.f32 %v2437_v56, 0.0  ;;  %v1952_v24 = vmax.f32 %v1950_v7, %v1951_v10 }
 0x1c0   :  { %v1100_v54 = vld.sshfl [vmem:[#allocation1 + $0x20] sm:$0xff pattern:$0x73625140]  ;;  %v1101_v30 = vld.sshfl [vmem:[#allocation1 + $0x28] sm:$0xff pattern:$0x73625140] }
 0x1c1   :  { %1103 = vst [vmem:[#allocation1 + $0x20] ss:$4 sm:$0xff] %v10504_v33  ;;  %v1934_v44 = vsel %vm844_vm2, %v1100_v54, -inf  ;;  %v1941_v9 = vsel %vm844_vm2, %v1101_v30, -inf  ;;  %v2358_v33 = vmax.f32 %v8994_v14, %v1779_v41  ;;  %v1924_v54 = vmax.f32 %v1922_v53, %v1923_v22 }
 0x1c2   :  { %v1935_v55 = vrot.slane %v1934_v44, 4  ;;  %v1942_v52 = vrot.slane %v1941_v9, 4  ;;  %v1971_v30 = vmax.f32 %v1969_v63, %v1970_v49  ;;  %v9095_v14 = vld.sshfl [vmem:[#allocation1 + $0x10] sm:$0xff pattern:$0x73625140]  ;;  %v1931_v53 = vmax.f32 %v1929_v11, %v1930_v46  ;;  %10505 = vst [vmem:[#allocation89_spill] sm:$0xff] %v9102_v21 }
 0x1c3   :  { %v2438_v8 = vadd.f32 %v8866_v2, %v2358_v33  ;;  %v1902_v63 = vrot.slane %v1901_v19, 2  ;;  %1126 = vst [vmem:[#allocation1] ss:$4 sm:$0xff] %v10506_v42  ;;  %v1861_v49 = vmax.f32 %v1859_v15, %v1860_v5  ;;  %v1956_v11 = vrot.slane %v9084_v16, 4 }
 0x1c4   :  { %v1936_v40 = vmax.f32 %v1934_v44, %v1935_v55  ;;  %v1943_v39 = vmax.f32 %v1941_v9, %v1942_v52  ;;  %v1854_v55 = vmax.f32 %v1852_v6, %v1853_v48  ;;  %v1819_v44 = vmax.f32 %v1817_v60, %v1818_v12 }
 0x1c5   :  { %v1925_v9 = vrot.slane %v1924_v54, 1  ;;  %v1972_v52 = vrot.slane %v1971_v30, 2  ;;  %v2510_v18 = vmax.f32 %v2438_v8, 0.0  ;;  %v1896_v1 = vmax.f32 %v1894_v4, %v1895_v35 }
 0x1c6   :  { %v1937_v41 = vrot.slane %v1936_v40, 2  ;;  %v1944_v22 = vrot.slane %v1943_v39, 2  ;;  %v1855_v33 = vrot.slane %v1854_v55, 1  ;;  %v1932_v48 = vrot.slane %v1931_v53, 1 }
 0x1c7   :  { %v1813_v27 = vrot.slane %v1812_v17, 1  ;;  %v1903_v46 = vmax.f32 %v1901_v19, %v1902_v63  ;;  %v1962_v25 = vsel %vm844_vm2, %v8987_v23, -inf  ;;  %v1820_v60 = vrot.slane %v1819_v44, 1 }
 0x1c8   :  { %v1108_v6 = vld.sshfl [vmem:[#allocation1 + $0x20] sm:$0xff pattern:$0x73625140]  ;;  %v1109_v37 = vld.sshfl [vmem:[#allocation1 + $0x28] sm:$0xff pattern:$0x73625140]  ;;  %v1938_v28 = vmax.f32 %v1936_v40, %v1937_v41  ;;  %v1945_v12 = vmax.f32 %v1943_v39, %v1944_v22  ;;  %v1973_v42 = vmax.f32 %v1971_v30, %v1972_v52  ;;  %v9116_v5 = vpack.c.bf16 %v2510_v18, %v2510_v18 }
 0x1c9   :  { %v1976_v56 = vsel %vm844_vm2, %v1108_v6, -inf  ;;  %v10507_v15 = vmax.f32 %v9006_v20, 0.0  ;;  %v1862_v4 = vrot.slane %v1861_v49, 1  ;;  %v1983_v7 = vsel %vm844_vm2, %v1109_v37, -inf }
 0x1ca   :  { %10508 = vst [vmem:[#allocation90_spill] sm:$0xff] %v9116_v5  ;;  %v1856_v35 = vmax.f32 %v1854_v55, %v1855_v33  ;;  %v1897_v19 = vrot.slane %v1896_v1, 1  ;;  %v1953_v40 = vrot.slane %v1952_v24, 1  ;;  %v1963_v10 = vrot.slane %v1962_v25, 4 }
 0x1cb   :  { %v9114_v8 = vpack.c.bf16 %v2509_v43, %v10507_v15  ;;  %v1904_v63 = vrot.slane %v1903_v46, 1  ;;  %v9119_v23 = vmax.f32 %v1924_v54, %v1925_v9  ;;  %v1939_v39 = vrot.slane %v1938_v28, 1  ;;  %v9121_v41 = vld.sshfl [vmem:[#allocation1] sm:$0xff pattern:$0x73625140] }
 0x1cc   :  { %v1977_v30 = vrot.slane %v1976_v56, 4  ;;  %10509 = vst [vmem:[#allocation91_spill] sm:$0xff] %v9121_v41  ;;  %v1933_v22 = vmax.f32 %v1931_v53, %v1932_v48  ;;  %v1946_v20 = vrot.slane %v1945_v12, 1  ;;  %v1974_v52 = vrot.slane %v1973_v42, 1 }
 0x1cd   :  { %v1984_v43 = vrot.slane %v1983_v7, 4  ;;  %v9123_v18 = vld.sshfl [vmem:[#allocation1 + $0x8] sm:$0xff pattern:$0x73625140]  ;;  %v1814_v6 = vmax.f32 %v1812_v17, %v1813_v27  ;;  %v9125_v15 = vmax.f32 %v1819_v44, %v1820_v60  ;;  %v1863_v55 = vmax.f32 %v1861_v49, %v1862_v4 }
 0x1ce   :  { %v1957_v37 = vmax.f32 %v9084_v16, %v1956_v11  ;;  %v9128_v33 = vld.sshfl [vmem:[#allocation1 + $0x10] sm:$0xff pattern:$0x73625140]  ;;  %v9130_v54 = vld.sshfl [vmem:[#allocation1 + $0x18] sm:$0xff pattern:$0x73625140]  ;;  %v1964_v53 = vmax.f32 %v1962_v25, %v1963_v10  ;;  %v2363_v48 = vmax.f32 %v9035_v36, %v1856_v35  ;;  %v1898_v44 = vmax.f32 %v1896_v1, %v1897_v19  ;;  %v755_v36 = vpop.f32.mrf.mxu0  ;;  %v779_v35 = vpop.f32.mrf.mxu2 }
 0x1cf   :  { %10510 = vst [vmem:[#allocation92_spill] sm:$0xff] %v9128_v33  ;;  %v10512_v21 = vrot.slane %v8605_v26, 6  ;;  %v1905_v49 = vmax.f32 %v1903_v46, %v1904_v63  ;;  %v1978_v27 = vmax.f32 %v1976_v56, %v1977_v30  ;;  %v1940_v16 = vmax.f32 %v1938_v28, %v1939_v39  ;;  %v707_v56 = vpop.f32.mrf.mxu1  ;;  %v731_v28 = vpop.f32.mrf.mxu3 }
 0x1d0   :  { %10511 = vst [vmem:[#allocation93_spill] sm:$0xff] %v9130_v54  ;;  %v1947_v11 = vmax.f32 %v1945_v12, %v1946_v20  ;;  %v1954_v60 = vmax.f32 %v1952_v24, %v1953_v40  ;;  %v1985_v4 = vmax.f32 %v1983_v7, %v1984_v43  ;;  %v1958_v54 = vrot.slane %v1957_v37, 2 }
 0x1d1   :  { %1134 = vst [vmem:[#allocation1] ss:$4 sm:$0xff] %v10512_v21  ;;  %v1975_v33 = vmax.f32 %v1973_v42, %v1974_v52  ;;  %v2364_v9 = vmax.f32 %v9048_v62, %v1863_v55  ;;  %v2365_v25 = vmax.f32 %v9050_v51, %v9067_v29  ;;  %v1965_v26 = vrot.slane %v1964_v53, 2 }
 0x1d2   :  { %v2368_v21 = vmax.f32 %v9100_v61, %v1933_v22  ;;  %v2443_v1 = vadd.f32 %v8859_v31, %v2363_v48  ;;  %v780_v46 = vadd.f32 %v779_v35, %v755_v36  ;;  %v1979_v12 = vrot.slane %v1978_v27, 2 }
 0x1d3   :  { %v2366_v24 = vmax.f32 %v9061_v57, %v1898_v44  ;;  %v2367_v42 = vmax.f32 %v9065_v34, %v1905_v49  ;;  %v9145_v7 = vadd.f32 %v731_v28, %v707_v56  ;;  %v1986_v62 = vrot.slane %v1985_v4, 2 }
 0x1d4   :  { %v2369_v51 = vmax.f32 %v9104_v32, %v1940_v16  ;;  %v2370_v29 = vmax.f32 %v9119_v23, %v1947_v11  ;;  %v9149_v19 = vrot.slane %v780_v46, 6  ;;  %v2360_v61 = vmax.f32 %v9021_v45, %v1814_v6 }
 0x1d5   :  { %v2361_v40 = vmax.f32 %v9033_v3, %v9125_v15  ;;  %v1959_v10 = vmax.f32 %v1957_v37, %v1958_v54  ;;  %v2371_v63 = vmax.f32 %v1954_v60, %v1975_v33  ;;  %v1966_v34 = vmax.f32 %v1964_v53, %v1965_v26  ;;  %v10513_v33 = vld [vmem:[#allocation81_spill] sm:$0xff] }
 0x1d6   :  { %v2444_v30 = vadd.f32 %v8866_v2, %v2364_v9  ;;  %v2445_v32 = vadd.f32 %v8787_v38, %v2365_v25  ;;  %v940_v23 = vsel %vm844_vm2, %v9145_v7, %v9149_v19  ;;  %v2446_v3 = vadd.f32 %v8859_v31, %v2366_v24 }
 0x1d7   :  { %v2447_v20 = vadd.f32 %v8866_v2, %v2367_v42  ;;  %v2448_v52 = vadd.f32 %v8787_v38, %v2368_v21  ;;  %v2515_v43 = vmax.f32 %v2443_v1, 0.0  ;;  %1111 = vst [vmem:[#allocation1 + $0x20] ss:$4 sm:$0xff] %v940_v23  ;;  %v1980_v6 = vmax.f32 %v1978_v27, %v1979_v12 }
 0x1d8   :  { %v9154_v39 = vld.sshfl [vmem:[#allocation1] sm:$0xff pattern:$0x73625140]  ;;  %v9156_v57 = vld.sshfl [vmem:[#allocation1 + $0x8] sm:$0xff pattern:$0x73625140]  ;;  %v1987_v15 = vmax.f32 %v1985_v4, %v1986_v62  ;;  %v2449_v55 = vadd.f32 %v8859_v31, %v2369_v51  ;;  %v2450_v37 = vadd.f32 %v8866_v2, %v2370_v29  ;;  %v9174_v54 = vadd.f32 %v8859_v31, %v2360_v61 }
 0x1d9   :  { %v9163_v22 = vld.sshfl [vmem:[#allocation1 + $0x10] sm:$0xff pattern:$0x73625140]  ;;  %v9165_v45 = vld.sshfl [vmem:[#allocation1 + $0x18] sm:$0xff pattern:$0x73625140]  ;;  %v9177_v53 = vadd.f32 %v8787_v38, %v2371_v63  ;;  %v945_v27 = vsel %vm851_vm4, %v9145_v7, %v9149_v19  ;;  %v9189_v28 = vadd.f32 %v8866_v2, %v2361_v40 }
 0x1da   :  { %1142 = vst [vmem:[#allocation1] ss:$4 sm:$0xff] %v10513_v33  ;;  %v1960_v9 = vrot.slane %v1959_v10, 1  ;;  %v2514_v48 = vmax.f32 %v9091_v47, 0.0  ;;  %v1967_v44 = vrot.slane %v1966_v34, 1  ;;  %v2516_v49 = vmax.f32 %v2444_v30, 0.0 }
 0x1db   :  { %10514 = vst [vmem:[#allocation81_spill] sm:$0xff] %v9174_v54  ;;  %v2517_v16 = vmax.f32 %v2445_v32, 0.0  ;;  %v2518_v11 = vmax.f32 %v2446_v3, 0.0  ;;  %v2519_v60 = vmax.f32 %v2447_v20, 0.0  ;;  %v2520_v4 = vmax.f32 %v2448_v52, 0.0  ;;  %v10516_v63 = vld [vmem:[#allocation88_spill] sm:$0xff] }
 0x1dc   :  { %v2574_v25 = vpack.c.bf16 %v2515_v43, %v2514_v48  ;;  %v1981_v36 = vrot.slane %v1980_v6, 1  ;;  %v1988_v35 = vrot.slane %v1987_v15, 1  ;;  %v2521_v26 = vmax.f32 %v2449_v55, 0.0  ;;  %10515 = vst [vmem:[#allocation94_spill] sm:$0xff] %v9189_v28 }
 0x1dd   :  { %v2522_v21 = vmax.f32 %v2450_v37, 0.0  ;;  %v946_v46 = vrot.slane %v945_v27, 2  ;;  %v1990_v47 = vsel %vm844_vm2, %v9054_v59, -inf  ;;  %v1997_v56 = vsel %vm844_vm2, %v9056_v13, -inf }
 0x1de   :  { %v1961_v12 = vmax.f32 %v1959_v10, %v1960_v9  ;;  %v1968_v24 = vmax.f32 %v1966_v34, %v1967_v44  ;;  %v2575_v42 = vpack.c.bf16 %v2516_v49, %v2516_v49  ;;  %v1116_v62 = vld.sshfl [vmem:[#allocation1 + $0x20] sm:$0xff pattern:$0x73625140]  ;;  %v1117_v51 = vld.sshfl [vmem:[#allocation1 + $0x28] sm:$0xff pattern:$0x73625140]  ;;  %v9191_v29 = vpack.c.bf16 %v2518_v11, %v2517_v16 }
 0x1df   :  { %v9193_v61 = vpack.c.bf16 %v2519_v60, %v2519_v60  ;;  %1119 = vst [vmem:[#allocation1 + $0x20] ss:$4 sm:$0xff] %v946_v46  ;;  %v2004_v59 = vsel %vm844_vm2, %v9063_v0, -inf  ;;  %v2011_v13 = vsel %vm844_vm2, %v10516_v63, -inf  ;;  %v1982_v30 = vmax.f32 %v1980_v6, %v1981_v36  ;;  %v10517_v63 = vld [vmem:[#allocation89_spill] sm:$0xff] }
 0x1e0   :  { %v1989_v40 = vmax.f32 %v1987_v15, %v1988_v35  ;;  %v2605_v32 = vrot.slane %v2574_v25, 3  ;;  %v2032_v10 = vsel %vm844_vm2, %v9088_v58, -inf  ;;  %v1991_v34 = vrot.slane %v1990_v47, 4 }
 0x1e1   :  { %v1998_v23 = vrot.slane %v1997_v56, 4  ;;  %v2018_v3 = vsel %vm844_vm2, %v1116_v62, -inf  ;;  %v2039_v20 = vsel %vm844_vm2, %v9093_v50, -inf  ;;  %v9204_v52 = vpack.c.bf16 %v2521_v26, %v2520_v4 }
 0x1e2   :  { %v951_v0 = vsel %vm846_vm3, %v9145_v7, %v9149_v19  ;;  %v2005_v43 = vrot.slane %v2004_v59, 4  ;;  %v2012_v6 = vrot.slane %v2011_v13, 4  ;;  %v9209_v15 = vpack.c.bf16 %v2522_v21, %v2522_v21 }
 0x1e3   :  { %v2606_v55 = vrot.slane %v2575_v42, 6  ;;  %v2607_v37 = vrot.slane %v2575_v42, 1  ;;  %v2033_v58 = vrot.slane %v2032_v10, 4  ;;  %v9212_v33 = vsel %vm2608_vm7, %v2574_v25, %v2605_v32 }
 0x1e4   :  { %v2669_v9 = vrot.slane %v9191_v29, 3  ;;  %v2019_v48 = vrot.slane %v2018_v3, 4  ;;  %v2040_v50 = vrot.slane %v2039_v20, 4  ;;  %v952_v44 = vrot.slane %v951_v0, 4 }
 0x1e5   :  { %v1992_v49 = vmax.f32 %v1990_v47, %v1991_v34  ;;  %v1999_v16 = vmax.f32 %v1997_v56, %v1998_v23  ;;  %v2025_v27 = vsel %vm844_vm2, %v1117_v51, -inf  ;;  %v2372_v11 = vmax.f32 %v1961_v12, %v1982_v30 }
 0x1e6   :  { %v2373_v60 = vmax.f32 %v1968_v24, %v1989_v40  ;;  %v1124_v4 = vld.sshfl [vmem:[#allocation1 + $0x20] sm:$0xff pattern:$0x73625140]  ;;  %v1125_v36 = vld.sshfl [vmem:[#allocation1 + $0x28] sm:$0xff pattern:$0x73625140]  ;;  %v2006_v35 = vmax.f32 %v2004_v59, %v2005_v43  ;;  %v2013_v26 = vmax.f32 %v2011_v13, %v2012_v6  ;;  %v9217_v21 = vsel %vm2612_vm8, %v2606_v55, %v2607_v37 }
 0x1e7   :  { %v2670_v25 = vrot.slane %v9193_v61, 6  ;;  %v2671_v46 = vrot.slane %v9193_v61, 1  ;;  %1127 = vst [vmem:[#allocation1 + $0x20] ss:$4 sm:$0xff] %v952_v44  ;;  %v2034_v42 = vmax.f32 %v2032_v10, %v2033_v58  ;;  %v2020_v62 = vmax.f32 %v2018_v3, %v2019_v48 }
 0x1e8   :  { %v2026_v47 = vrot.slane %v2025_v27, 4  ;;  %v2041_v56 = vmax.f32 %v2039_v20, %v2040_v50  ;;  %v2046_v12 = vsel %vm844_vm2, %v9095_v14, -inf  ;;  %v1993_v51 = vrot.slane %v1992_v49, 2 }
 0x1e9   :  { %v2000_v59 = vrot.slane %v1999_v16, 2  ;;  %v2053_v13 = vsel %vm844_vm2, %v10517_v63, -inf  ;;  %v957_v61 = vsel %vm477_vm0, %v9149_v19, %v9145_v7  ;;  %v2007_v40 = vrot.slane %v2006_v35, 2 }
 0x1ea   :  { %v2014_v32 = vrot.slane %v2013_v26, 2  ;;  %v9231_v10 = vadd.f32 %v8859_v31, %v2372_v11  ;;  %v9234_v14 = vadd.f32 %v8866_v2, %v2373_v60  ;;  %v2035_v34 = vrot.slane %v2034_v42, 2 }
 0x1eb   :  { %v2047_v23 = vrot.slane %v2046_v12, 4  ;;  %v2021_v3 = vrot.slane %v2020_v62, 2  ;;  %v2027_v20 = vmax.f32 %v2025_v27, %v2026_v47  ;;  %v2042_v0 = vrot.slane %v2041_v56, 2  ;;  %v10528_v27 = vld [vmem:[#allocation70_spill] sm:$0xff] }
 0x1ec   :  { %v2054_v43 = vrot.slane %v2053_v13, 4  ;;  %v958_v6 = vrot.slane %v957_v61, 6  ;;  %v1994_v55 = vmax.f32 %v1992_v49, %v1993_v51  ;;  %v2001_v37 = vmax.f32 %v1999_v16, %v2000_v59 }
 0x1ed   :  { %v2060_v58 = vsel %vm844_vm2, %v1124_v4, -inf  ;;  %v2681_v7 = vsel %vm2608_vm7, %v9191_v29, %v2669_v9  ;;  %v2684_v19 = vsel %vm2612_vm8, %v2670_v25, %v2671_v46  ;;  %v9240_v44 = vmax.f32 %v2006_v35, %v2007_v40  ;;  %v9299_v25 = vld.sshfl [vmem:[#allocation1 + $0x18] sm:$0xff pattern:$0x73625140] }
 0x1ee   :  { %v1132_v48 = vld.sshfl [vmem:[#allocation1 + $0x20] sm:$0xff pattern:$0x73625140]  ;;  %v1133_v50 = vld.sshfl [vmem:[#allocation1 + $0x28] sm:$0xff pattern:$0x73625140]  ;;  %v9242_v11 = vmax.f32 %v2013_v26, %v2014_v32  ;;  %v9245_v60 = vmax.f32 %v2034_v42, %v2035_v34  ;;  %v2048_v49 = vmax.f32 %v2046_v12, %v2047_v23  ;;  %v9248_v4 = vmax.f32 %v2020_v62, %v2021_v3 }
 0x1ef   :  { %1135 = vst [vmem:[#allocation1 + $0x20] ss:$4 sm:$0xff] %v958_v6  ;;  %v2067_v16 = vsel %vm844_vm2, %v1125_v36, -inf  ;;  %v2028_v47 = vrot.slane %v2027_v20, 2  ;;  %v9250_v29 = vmax.f32 %v2041_v56, %v2042_v0  ;;  %v2055_v9 = vmax.f32 %v2053_v13, %v2054_v43  ;;  %v10519_v13 = vld [vmem:[#allocation92_spill] sm:$0xff]  ;;  %v10520_v43 = vld [vmem:[#allocation93_spill] sm:$0xff] }
 0x1f0   :  { %v1995_v35 = vrot.slane %v1994_v55, 1  ;;  %v2002_v46 = vrot.slane %v2001_v37, 1  ;;  %v2061_v26 = vrot.slane %v2060_v58, 4  ;;  %v2068_v42 = vrot.slane %v2067_v16, 4  ;;  %10527 = vst [vmem:[#allocation95_spill] sm:$0xff] %v9299_v25 }
 0x1f1   :  { %v10518_v63 = vmov %v9121_v41  ;;  %v2049_v62 = vrot.slane %v2048_v49, 2  ;;  %v2081_v56 = vsel %vm844_vm2, %v9123_v18, -inf  ;;  %v2088_v61 = vsel %vm844_vm2, %v10519_v13, -inf  ;;  %v9270_v13 = vld.sshfl [vmem:[#allocation1] sm:$0xff pattern:$0x73625140] }
 0x1f2   :  { %v2074_v12 = vsel %vm844_vm2, %v10518_v63, -inf  ;;  %v9263_v32 = vmax.f32 %v2027_v20, %v2028_v47  ;;  %v2056_v23 = vrot.slane %v2055_v9, 2  ;;  %v2062_v3 = vmax.f32 %v2060_v58, %v2061_v26  ;;  %10521 = vst [vmem:[#allocation88_spill] sm:$0xff] %v9270_v13 }
 0x1f3   :  { %v2075_v0 = vrot.slane %v2074_v12, 4  ;;  %v2095_v6 = vsel %vm844_vm2, %v10520_v43, -inf  ;;  %v2102_v63 = vsel %vm844_vm2, %v1132_v48, -inf  ;;  %v2069_v41 = vmax.f32 %v2067_v16, %v2068_v42 }
 0x1f4   :  { %v2082_v17 = vrot.slane %v2081_v56, 4  ;;  %v2089_v18 = vrot.slane %v2088_v61, 4  ;;  %v2109_v30 = vsel %vm844_vm2, %v1133_v50, -inf  ;;  %v10522_v20 = vrot.slane %v9114_v8, 3 }
 0x1f5   :  { %v9281_v58 = vsel %vm844_vm2, %v9212_v33, %v9217_v21  ;;  %v9284_v48 = vsel %vm844_vm2, %v2681_v7, %v2684_v19  ;;  %v9286_v26 = vmax.f32 %v1994_v55, %v1995_v35  ;;  %v9288_v50 = vld.sshfl [vmem:[#allocation1 + $0x8] sm:$0xff pattern:$0x73625140]  ;;  %v9290_v42 = vmax.f32 %v2001_v37, %v2002_v46 }
 0x1f6   :  { %v9276_v47 = vsel %vm2608_vm7, %v9114_v8, %v10522_v20  ;;  %10524 = vst [vmem:[#allocation91_spill] sm:$0xff] %v9284_v48  ;;  %v1140_v16 = vld.sshfl [vmem:[#allocation1 + $0x20] sm:$0xff pattern:$0x73625140]  ;;  %v2096_v43 = vrot.slane %v2095_v6, 4  ;;  %v2103_v24 = vrot.slane %v2102_v63, 4  ;;  %v9297_v21 = vmax.f32 %v2048_v49, %v2049_v62 }
 0x1f7   :  { %10523 = vst [vmem:[#allocation89_spill] sm:$0xff] %v9276_v47  ;;  %v2116_v8 = vsel %vm844_vm2, %v9154_v39, -inf  ;;  %v9294_v20 = vld.sshfl [vmem:[#allocation1 + $0x10] sm:$0xff pattern:$0x73625140]  ;;  %v2063_v7 = vrot.slane %v2062_v3, 2  ;;  %v2076_v35 = vmax.f32 %v2074_v12, %v2075_v0  ;;  %v2083_v39 = vmax.f32 %v2081_v56, %v2082_v17 }
 0x1f8   :  { %10525 = vst [vmem:[#allocation92_spill] sm:$0xff] %v9288_v50  ;;  %v2110_v19 = vrot.slane %v2109_v30, 4  ;;  %v2070_v55 = vrot.slane %v2069_v41, 2  ;;  %v2137_v37 = vsel %vm844_vm2, %v9165_v45, -inf  ;;  %v2144_v46 = vsel %vm844_vm2, %v1140_v16, -inf }
 0x1f9   :  { %10526 = vst [vmem:[#allocation93_spill] sm:$0xff] %v9294_v20  ;;  %v10529_v1 = vrot.slane %v10528_v27, 2  ;;  %v2090_v34 = vmax.f32 %v2088_v61, %v2089_v18  ;;  %v2117_v36 = vrot.slane %v2116_v8, 4  ;;  %v2123_v49 = vsel %vm844_vm2, %v9156_v57, -inf }
 0x1fa   :  { %v1141_v62 = vld.sshfl [vmem:[#allocation1 + $0x28] sm:$0xff pattern:$0x73625140]  ;;  %v2097_v33 = vmax.f32 %v2095_v6, %v2096_v43  ;;  %v2104_v40 = vmax.f32 %v2102_v63, %v2103_v24  ;;  %v2138_v59 = vrot.slane %v2137_v37, 4  ;;  %v2145_v51 = vrot.slane %v2144_v46, 4 }
 0x1fb   :  { %1150 = vst [vmem:[#allocation1] ss:$4 sm:$0xff] %v10529_v1  ;;  %v2057_v0 = vmax.f32 %v2055_v9, %v2056_v23  ;;  %v2064_v45 = vmax.f32 %v2062_v3, %v2063_v7  ;;  %v2111_v47 = vmax.f32 %v2109_v30, %v2110_v19  ;;  %v2071_v16 = vmax.f32 %v2069_v41, %v2070_v55 }
 0x1fc   :  { %v2077_v28 = vrot.slane %v2076_v35, 2  ;;  %v2124_v27 = vrot.slane %v2123_v49, 4  ;;  %v2130_v17 = vsel %vm844_vm2, %v9163_v22, -inf  ;;  %v2118_v1 = vmax.f32 %v2116_v8, %v2117_v36 }
 0x1fd   :  { %v2139_v56 = vmax.f32 %v2137_v37, %v2138_v59  ;;  %v2146_v61 = vmax.f32 %v2144_v46, %v2145_v51  ;;  %v2151_v57 = vsel %vm844_vm2, %v1141_v62, -inf  ;;  %v2084_v6 = vrot.slane %v2083_v39, 2 }
 0x1fe   :  { %v2091_v24 = vrot.slane %v2090_v34, 2  ;;  %v2098_v63 = vrot.slane %v2097_v33, 2  ;;  %v2105_v18 = vrot.slane %v2104_v40, 2  ;;  %v10530_v43 = vrot.slane %v9240_v44, 1 }
 0x1ff   :  { %v2112_v41 = vrot.slane %v2111_v47, 2  ;;  %v2131_v30 = vrot.slane %v2130_v17, 4  ;;  %v2152_v23 = vrot.slane %v2151_v57, 4  ;;  %v10532_v22 = vrot.slane %v9242_v11, 1 }
 0x200   :  { %v9315_v9 = vmax.f32 %v9240_v44, %v10530_v43  ;;  %v10533_v59 = vrot.slane %v9248_v4, 1  ;;  %v10534_v8 = vrot.slane %v9245_v60, 1  ;;  %v2125_v7 = vmax.f32 %v2123_v49, %v2124_v27 }
 0x201   :  { %v9322_v51 = vmax.f32 %v9242_v11, %v10532_v22  ;;  %v10537_v37 = vrot.slane %v9250_v29, 1  ;;  %v2119_v46 = vrot.slane %v2118_v1, 2  ;;  %v2140_v62 = vrot.slane %v2139_v56, 2 }
 0x202   :  { %v9317_v3 = vld.sshfl [vmem:[#allocation1] sm:$0xff pattern:$0x73625140]  ;;  %v9327_v36 = vmax.f32 %v9248_v4, %v10533_v59  ;;  %v9332_v44 = vmax.f32 %v9245_v60, %v10534_v8  ;;  %v9334_v19 = vld.sshfl [vmem:[#allocation1 + $0x8] sm:$0xff pattern:$0x73625140]  ;;  %v2078_v60 = vmax.f32 %v2076_v35, %v2077_v28  ;;  %v2085_v27 = vmax.f32 %v2083_v39, %v2084_v6 }
 0x203   :  { %10531 = vst [vmem:[#allocation70_spill] sm:$0xff] %v9317_v3  ;;  %v9336_v55 = vld.sshfl [vmem:[#allocation1 + $0x10] sm:$0xff pattern:$0x73625140]  ;;  %v9341_v11 = vmax.f32 %v9250_v29, %v10537_v37  ;;  %v2147_v43 = vrot.slane %v2146_v61, 2  ;;  %v2058_v22 = vrot.slane %v2057_v0, 1  ;;  %v2099_v5 = vmax.f32 %v2097_v33, %v2098_v63 }
 0x204   :  { %10535 = vst [vmem:[#allocation96_spill] sm:$0xff] %v9334_v19  ;;  %v9343_v4 = vld.sshfl [vmem:[#allocation1 + $0x18] sm:$0xff pattern:$0x73625140]  ;;  %v2065_v59 = vrot.slane %v2064_v45, 1  ;;  %v2072_v12 = vrot.slane %v2071_v16, 1  ;;  %v2106_v54 = vmax.f32 %v2104_v40, %v2105_v18  ;;  %v2132_v48 = vmax.f32 %v2130_v17, %v2131_v30 }
 0x205   :  { %10536 = vst [vmem:[#allocation97_spill] sm:$0xff] %v9336_v55  ;;  %v10539_v8 = vld [vmem:[#allocation71_spill] sm:$0xff]  ;;  %v2092_v55 = vmax.f32 %v2090_v34, %v2091_v24  ;;  %v2113_v19 = vmax.f32 %v2111_v47, %v2112_v41  ;;  %v2126_v29 = vrot.slane %v2125_v7, 2  ;;  %v2153_v37 = vmax.f32 %v2151_v57, %v2152_v23 }
 0x206   :  { %10538 = vst [vmem:[#allocation98_spill] sm:$0xff] %v9343_v4  ;;  %v10540_v49 = vrot.slane %v10539_v8, 4  ;;  %v10541_v3 = vrot.slane %v9263_v32, 1  ;;  %v2120_v4 = vmax.f32 %v2118_v1, %v2119_v46  ;;  %v2141_v20 = vmax.f32 %v2139_v56, %v2140_v62  ;;  %v757_v62 = vpop.f32.mrf.mxu0 }
 0x207   :  { %v2148_v50 = vmax.f32 %v2146_v61, %v2147_v43  ;;  %v9350_v13 = vmax.f32 %v2057_v0, %v2058_v22  ;;  %v2066_v28 = vmax.f32 %v2064_v45, %v2065_v59  ;;  %v2073_v35 = vmax.f32 %v2071_v16, %v2072_v12  ;;  %v781_v43 = vpop.f32.mrf.mxu2 }
 0x208   :  { %1158 = vst [vmem:[#allocation1] ss:$4 sm:$0xff] %v10540_v49  ;;  %v2031_v25 = vmax.f32 %v9263_v32, %v10541_v3  ;;  %v2079_v8 = vrot.slane %v2078_v60, 1  ;;  %v2086_v39 = vrot.slane %v2085_v27, 1  ;;  %v2100_v33 = vrot.slane %v2099_v5, 1 }
 0x209   :  { %v2107_v40 = vrot.slane %v2106_v54, 1  ;;  %v2133_v17 = vrot.slane %v2132_v48, 2  ;;  %v2093_v34 = vrot.slane %v2092_v55, 1  ;;  %v2114_v47 = vrot.slane %v2113_v19, 1 }
 0x20a   :  { %v2127_v6 = vmax.f32 %v2125_v7, %v2126_v29  ;;  %v2154_v57 = vrot.slane %v2153_v37, 2  ;;  %v2121_v24 = vrot.slane %v2120_v4, 1  ;;  %v2142_v63 = vrot.slane %v2141_v20, 1 }
 0x20b   :  { %v2149_v18 = vrot.slane %v2148_v50, 1  ;;  %v2375_v32 = vmax.f32 %v9290_v42, %v9327_v36  ;;  %v10542_v0 = vrot.slane %v9297_v21, 1  ;;  %v2080_v45 = vmax.f32 %v2078_v60, %v2079_v8 }
 0x20c   :  { %v2374_v16 = vmax.f32 %v9286_v26, %v9322_v51  ;;  %v2376_v56 = vmax.f32 %v9315_v9, %v2031_v25  ;;  %v2101_v30 = vmax.f32 %v2099_v5, %v2100_v33  ;;  %v2108_v23 = vmax.f32 %v2106_v54, %v2107_v40  ;;  %v709_v5 = vpop.f32.mrf.mxu1  ;;  %v733_v54 = vpop.f32.mrf.mxu3 }
 0x20d   :  { %v2052_v12 = vmax.f32 %v9297_v21, %v10542_v0  ;;  %v2134_v3 = vmax.f32 %v2132_v48, %v2133_v17  ;;  %v2377_v42 = vmax.f32 %v9332_v44, %v9350_v13  ;;  %v2128_v36 = vrot.slane %v2127_v6, 1  ;;  %v10543_v48 = vld [vmem:[#allocation74_spill] sm:$0xff] }
 0x20e   :  { %v2155_v7 = vmax.f32 %v2153_v37, %v2154_v57  ;;  %v2378_v21 = vmax.f32 %v9341_v11, %v2066_v28  ;;  %v2087_v25 = vmax.f32 %v2085_v27, %v2086_v39  ;;  %v2094_v9 = vmax.f32 %v2092_v55, %v2093_v34 }
 0x20f   :  { %v9354_v1 = vld.sshfl [vmem:[#allocation1] sm:$0xff pattern:$0x73625140]  ;;  %v9362_v61 = vld.sshfl [vmem:[#allocation1 + $0x8] sm:$0xff pattern:$0x73625140]  ;;  %v2379_v46 = vmax.f32 %v2052_v12, %v2073_v35  ;;  %v2115_v51 = vmax.f32 %v2113_v19, %v2114_v47  ;;  %v2455_v22 = vadd.f32 %v8859_v31, %v2375_v32  ;;  %v2122_v13 = vmax.f32 %v2120_v4, %v2121_v24 }
 0x210   :  { %v9364_v41 = vld.sshfl [vmem:[#allocation1 + $0x10] sm:$0xff pattern:$0x73625140]  ;;  %v9369_v26 = vld.sshfl [vmem:[#allocation1 + $0x18] sm:$0xff pattern:$0x73625140]  ;;  %v2143_v44 = vmax.f32 %v2141_v20, %v2142_v63  ;;  %v2150_v60 = vmax.f32 %v2148_v50, %v2149_v18  ;;  %v2456_v11 = vadd.f32 %v8866_v2, %v2376_v56  ;;  %v2380_v29 = vmax.f32 %v2080_v45, %v2101_v30 }
 0x211   :  { %v10544_v59 = vrot.slane %v10543_v48, 6  ;;  %v2135_v49 = vrot.slane %v2134_v3, 1  ;;  %v2381_v37 = vmax.f32 %v2087_v25, %v2108_v23  ;;  %v2454_v28 = vadd.f32 %v8787_v38, %v2374_v16 }
 0x212   :  { %v2129_v27 = vmax.f32 %v2127_v6, %v2128_v36  ;;  %v2156_v55 = vrot.slane %v2155_v7, 1  ;;  %v782_v19 = vadd.f32 %v781_v43, %v757_v62  ;;  %v9376_v35 = vadd.f32 %v733_v54, %v709_v5 }
 0x213   :  { %1166 = vst [vmem:[#allocation1] ss:$4 sm:$0xff] %v10544_v59  ;;  %v2382_v8 = vmax.f32 %v2094_v9, %v2115_v51  ;;  %v2458_v39 = vadd.f32 %v8859_v31, %v2378_v21  ;;  %v2459_v33 = vadd.f32 %v8866_v2, %v2379_v46  ;;  %v2527_v4 = vmax.f32 %v2455_v22, 0.0 }
 0x214   :  { %v2383_v20 = vmax.f32 %v2122_v13, %v2143_v44  ;;  %v2384_v50 = vmax.f32 %v2129_v27, %v2150_v60  ;;  %v2528_v40 = vmax.f32 %v2456_v11, 0.0  ;;  %v9380_v17 = vrot.slane %v782_v19, 6  ;;  %v10548_v11 = vld [vmem:[#allocation40_spill] sm:$0xff] }
 0x215   :  { %v10545_v34 = vmax.f32 %v9177_v53, 0.0  ;;  %v10546_v47 = vmax.f32 %v9231_v10, 0.0  ;;  %v10547_v57 = vmax.f32 %v9234_v14, 0.0  ;;  %v2136_v63 = vmax.f32 %v2134_v3, %v2135_v49 }
 0x216   :  { %v2457_v18 = vadd.f32 %v8787_v38, %v2377_v42  ;;  %v2157_v32 = vmax.f32 %v2155_v7, %v2156_v55  ;;  %v2461_v0 = vadd.f32 %v8859_v31, %v2381_v37  ;;  %v2526_v12 = vmax.f32 %v2454_v28, 0.0 }
 0x217   :  { %v2580_v6 = vpack.c.bf16 %v10546_v47, %v10545_v34  ;;  %v2581_v24 = vpack.c.bf16 %v10547_v57, %v10547_v57  ;;  %v962_v45 = vsel %vm844_vm2, %v9376_v35, %v9380_v17  ;;  %v2460_v53 = vadd.f32 %v8787_v38, %v2380_v29  ;;  %v10549_v29 = vld [vmem:[#allocation20_spill] sm:$0xff]  ;;  %v10552_v34 = vld [vmem:[#allocation21_spill] sm:$0xff] }
 0x218   :  { %v2462_v10 = vadd.f32 %v8866_v2, %v2382_v8  ;;  %v2530_v16 = vmax.f32 %v2458_v39, 0.0  ;;  %v2531_v56 = vmax.f32 %v2459_v33, 0.0  ;;  %1143 = vst [vmem:[#allocation1 + $0x20] ss:$4 sm:$0xff] %v962_v45  ;;  %v2463_v14 = vadd.f32 %v8787_v38, %v2383_v20 }
 0x219   :  { %v2464_v30 = vadd.f32 %v8859_v31, %v2384_v50  ;;  %v2582_v23 = vpack.c.bf16 %v2527_v4, %v2526_v12  ;;  %v2583_v3 = vpack.c.bf16 %v2528_v40, %v2528_v40  ;;  %v2732_v42 = vrot.slane %v9209_v15, 1 }
 0x21a   :  { %v2791_v36 = vrot.slane %v2580_v6, 3  ;;  %v2792_v7 = vrot.slane %v2581_v24, 6  ;;  %v2529_v21 = vmax.f32 %v2457_v18, 0.0  ;;  %v2793_v46 = vrot.slane %v2581_v24, 1 }
 0x21b   :  { %v2385_v62 = vmax.f32 %v2136_v63, %v2157_v32  ;;  %v2533_v43 = vmax.f32 %v2461_v0, 0.0  ;;  %v967_v25 = vsel %vm851_vm4, %v9376_v35, %v9380_v17  ;;  %v2532_v9 = vmax.f32 %v2460_v53, 0.0 }
 0x21c   :  { %v2534_v51 = vmax.f32 %v2462_v10, 0.0  ;;  %v2584_v22 = vpack.c.bf16 %v2530_v16, %v2529_v21  ;;  %v2585_v5 = vpack.c.bf16 %v2531_v56, %v2531_v56  ;;  %v2535_v54 = vmax.f32 %v2463_v14, 0.0 }
 0x21d   :  { %v2536_v48 = vmax.f32 %v2464_v30, 0.0  ;;  %v2852_v59 = vrot.slane %v2582_v23, 3  ;;  %v2853_v13 = vrot.slane %v2583_v3, 6  ;;  %v2854_v44 = vrot.slane %v2583_v3, 1 }
 0x21e   :  { %v968_v60 = vrot.slane %v967_v25, 2  ;;  %v1353_v49 = vsel %vm844_vm2, %v10548_v11, -inf  ;;  %v1360_v37 = vsel %vm844_vm2, %v10549_v29, -inf  ;;  %v10550_v28 = vrot.slane %v9204_v52, 3 }
 0x21f   :  { %v10551_v55 = vrot.slane %v9209_v15, 6  ;;  %v2465_v8 = vadd.f32 %v8866_v2, %v2385_v62  ;;  %v2586_v39 = vpack.c.bf16 %v2533_v43, %v2532_v9  ;;  %v9414_v33 = vld.sshfl [vmem:[#allocation1 + $0x20] sm:$0xff pattern:$0x73625140]  ;;  %v2913_v20 = vrot.slane %v2584_v22, 3 }
 0x220   :  { %v2742_v27 = vsel %vm2608_vm7, %v9204_v52, %v10550_v28  ;;  %v9416_v4 = vld.sshfl [vmem:[#allocation1 + $0x28] sm:$0xff pattern:$0x73625140]  ;;  %v2914_v50 = vrot.slane %v2585_v5, 6  ;;  %v2915_v40 = vrot.slane %v2585_v5, 1  ;;  %v1367_v47 = vsel %vm844_vm2, %v10552_v34, -inf }
 0x221   :  { %v2745_v19 = vsel %vm2612_vm8, %v10551_v55, %v2732_v42  ;;  %1151 = vst [vmem:[#allocation1 + $0x20] ss:$4 sm:$0xff] %v968_v60  ;;  %v2803_v52 = vsel %vm2608_vm7, %v2580_v6, %v2791_v36  ;;  %v2806_v15 = vsel %vm2612_vm8, %v2792_v7, %v2793_v46  ;;  %v2587_v57 = vpack.c.bf16 %v2534_v51, %v2534_v51  ;;  %v10556_v42 = vld [vmem:[#allocation22_spill] sm:$0xff]  ;;  %v10560_v60 = vld [vmem:[#allocation45_spill] sm:$0xff] }
 0x222   :  { %v2588_v24 = vpack.c.bf16 %v2536_v48, %v2535_v54  ;;  %v2864_v63 = vsel %vm2608_vm7, %v2582_v23, %v2852_v59  ;;  %v2867_v18 = vsel %vm2612_vm8, %v2853_v13, %v2854_v44  ;;  %v1354_v32 = vrot.slane %v1353_v49, 4  ;;  %v10558_v54 = vld [vmem:[#allocation87_spill] sm:$0xff] }
 0x223   :  { %v1361_v0 = vrot.slane %v1360_v37, 4  ;;  %v2537_v12 = vmax.f32 %v2465_v8, 0.0  ;;  %v2974_v45 = vrot.slane %v2586_v39, 3  ;;  %v973_v53 = vsel %vm846_vm3, %v9376_v35, %v9380_v17  ;;  %v10559_v13 = vld [vmem:[#allocation23_spill] sm:$0xff] }
 0x224   :  { %v1368_v10 = vrot.slane %v1367_v47, 4  ;;  %v9428_v16 = vsel %vm844_vm2, %v2742_v27, %v2745_v19  ;;  %v9431_v6 = vsel %vm844_vm2, %v2803_v52, %v2806_v15  ;;  %v2925_v56 = vsel %vm2608_vm7, %v2584_v22, %v2913_v20  ;;  %v10562_v27 = vld [vmem:[#allocation24_spill] sm:$0xff]  ;;  %v10565_v15 = vld [vmem:[#allocation27_spill] sm:$0xff] }
 0x225   :  { %10553 = vst [vmem:[#allocation71_spill] sm:$0xff] %v9428_v16  ;;  %v2928_v14 = vsel %vm2612_vm8, %v2914_v50, %v2915_v40  ;;  %v9436_v30 = vsel %vm844_vm2, %v2864_v63, %v2867_v18  ;;  %v2975_v23 = vrot.slane %v2587_v57, 6  ;;  %v2976_v3 = vrot.slane %v2587_v57, 1  ;;  %v10564_v50 = vld [vmem:[#allocation26_spill] sm:$0xff] }
 0x226   :  { %10554 = vst [vmem:[#allocation74_spill] sm:$0xff] %v9431_v6  ;;  %v1374_v36 = vsel %vm844_vm2, %v10556_v42, -inf  ;;  %v3035_v7 = vrot.slane %v2588_v24, 3  ;;  %v974_v21 = vrot.slane %v973_v53, 4  ;;  %v1355_v46 = vmax.f32 %v1353_v49, %v1354_v32 }
 0x227   :  { %10555 = vst [vmem:[#allocation40_spill] sm:$0xff] %v9436_v30  ;;  %v1362_v62 = vmax.f32 %v1360_v37, %v1361_v0  ;;  %v2589_v43 = vpack.c.bf16 %v2537_v12, %v2537_v12  ;;  %v9441_v25 = vsel %vm844_vm2, %v2925_v56, %v2928_v14  ;;  %v2986_v9 = vsel %vm2608_vm7, %v2586_v39, %v2974_v45  ;;  %v10561_v37 = vld [vmem:[#allocation46_spill] sm:$0xff]  ;;  %v10563_v39 = vld [vmem:[#allocation25_spill] sm:$0xff]  ;;  %v10566_v14 = vld [vmem:[#allocation51_spill] sm:$0xff] }
 0x228   :  { %10557 = vst [vmem:[#allocation20_spill] sm:$0xff] %v9441_v25  ;;  %v9444_v51 = vld.sshfl [vmem:[#allocation1 + $0x20] sm:$0xff pattern:$0x73625140]  ;;  %v1369_v5 = vmax.f32 %v1367_v47, %v1368_v10  ;;  %v1351_v48 = vrot.slane %v10558_v54, 1  ;;  %v1375_v59 = vrot.slane %v1374_v36, 4  ;;  %v2989_v49 = vsel %vm2612_vm8, %v2975_v23, %v2976_v3 }
 0x229   :  { %v9446_v22 = vld.sshfl [vmem:[#allocation1 + $0x28] sm:$0xff pattern:$0x73625140]  ;;  %v1381_v44 = vsel %vm844_vm2, %v10559_v13, -inf  ;;  %v1388_v11 = vsel %vm844_vm2, %v10560_v60, -inf  ;;  %v979_v29 = vsel %vm477_vm0, %v9380_v17, %v9376_v35  ;;  %v1395_v28 = vsel %vm844_vm2, %v10561_v37, -inf }
 0x22a   :  { %1159 = vst [vmem:[#allocation1 + $0x20] ss:$4 sm:$0xff] %v974_v21  ;;  %v1402_v55 = vsel %vm844_vm2, %v10562_v27, -inf  ;;  %v1356_v19 = vrot.slane %v1355_v46, 2  ;;  %v1363_v8 = vrot.slane %v1362_v62, 2  ;;  %v1409_v20 = vsel %vm844_vm2, %v10563_v39, -inf }
 0x22b   :  { %v1416_v40 = vsel %vm844_vm2, %v10564_v50, -inf  ;;  %v1370_v34 = vrot.slane %v1369_v5, 2  ;;  %v1382_v47 = vrot.slane %v1381_v44, 4  ;;  %v1389_v52 = vrot.slane %v1388_v11, 4  ;;  %v10568_v37 = vld [vmem:[#allocation52_spill] sm:$0xff] }
 0x22c   :  { %v1423_v35 = vsel %vm844_vm2, %v10565_v15, -inf  ;;  %v3047_v17 = vsel %vm2608_vm7, %v2588_v24, %v3035_v7  ;;  %v1376_v57 = vmax.f32 %v1374_v36, %v1375_v59  ;;  %v1396_v63 = vrot.slane %v1395_v28, 4  ;;  %v10570_v15 = vld [vmem:[#allocation29_spill] sm:$0xff] }
 0x22d   :  { %v1403_v18 = vrot.slane %v1402_v55, 4  ;;  %v3036_v32 = vrot.slane %v2589_v43, 6  ;;  %v3037_v0 = vrot.slane %v2589_v43, 1  ;;  %v1410_v12 = vrot.slane %v1409_v20, 4 }
 0x22e   :  { %v1417_v45 = vrot.slane %v1416_v40, 4  ;;  %v980_v53 = vrot.slane %v979_v29, 6  ;;  %v1357_v10 = vmax.f32 %v1355_v46, %v1356_v19  ;;  %v1424_v56 = vrot.slane %v1423_v35, 4  ;;  %v10569_v19 = vld [vmem:[#allocation28_spill] sm:$0xff] }
 0x22f   :  { %v1430_v23 = vsel %vm844_vm2, %v10566_v14, -inf  ;;  %v1364_v21 = vmax.f32 %v1362_v62, %v1363_v8  ;;  %v9474_v13 = vmax.f32 %v1369_v5, %v1370_v34  ;;  %v1383_v24 = vmax.f32 %v1381_v44, %v1382_v47 }
 0x230   :  { %v1390_v36 = vmax.f32 %v1388_v11, %v1389_v52  ;;  %v9477_v7 = vsel %vm844_vm2, %v2986_v9, %v2989_v49  ;;  %v1377_v43 = vrot.slane %v1376_v57, 2  ;;  %v1397_v59 = vmax.f32 %v1395_v28, %v1396_v63 }
 0x231   :  { %v9470_v3 = vld.sshfl [vmem:[#allocation1 + $0x20] sm:$0xff pattern:$0x73625140]  ;;  %v9472_v42 = vld.sshfl [vmem:[#allocation1 + $0x28] sm:$0xff pattern:$0x73625140]  ;;  %v1404_v46 = vmax.f32 %v1402_v55, %v1403_v18  ;;  %v1411_v60 = vmax.f32 %v1409_v20, %v1410_v12  ;;  %v1418_v29 = vmax.f32 %v1416_v40, %v1417_v45  ;;  %v3050_v62 = vsel %vm2612_vm8, %v3036_v32, %v3037_v0 }
 0x232   :  { %10567 = vst [vmem:[#allocation21_spill] sm:$0xff] %v9477_v7  ;;  %v1437_v27 = vsel %vm844_vm2, %v10568_v37, -inf  ;;  %v1444_v39 = vsel %vm844_vm2, %v10569_v19, -inf  ;;  %v1358_v5 = vrot.slane %v1357_v10, 1  ;;  %v1425_v44 = vmax.f32 %v1423_v35, %v1424_v56  ;;  %v10571_v0 = vld [vmem:[#allocation30_spill] sm:$0xff]  ;;  %v10572_v12 = vld [vmem:[#allocation31_spill] sm:$0xff] }
 0x233   :  { %1167 = vst [vmem:[#allocation1 + $0x20] ss:$4 sm:$0xff] %v980_v53  ;;  %v1431_v11 = vrot.slane %v1430_v23, 4  ;;  %v1365_v8 = vrot.slane %v1364_v21, 1  ;;  %v1372_v9 = vrot.slane %v9474_v13, 1  ;;  %v1384_v49 = vrot.slane %v1383_v24, 2 }
 0x234   :  { %v1391_v50 = vrot.slane %v1390_v36, 2  ;;  %v1378_v28 = vmax.f32 %v1376_v57, %v1377_v43  ;;  %v1398_v55 = vrot.slane %v1397_v59, 2  ;;  %v1438_v20 = vrot.slane %v1437_v27, 4 }
 0x235   :  { %v1445_v40 = vrot.slane %v1444_v39, 4  ;;  %v1405_v34 = vrot.slane %v1404_v46, 2  ;;  %v1412_v47 = vrot.slane %v1411_v60, 2  ;;  %v1419_v52 = vrot.slane %v1418_v29, 2 }
 0x236   :  { %v1451_v63 = vsel %vm844_vm2, %v10570_v15, -inf  ;;  %v1426_v18 = vrot.slane %v1425_v44, 2  ;;  %v1432_v32 = vmax.f32 %v1430_v23, %v1431_v11  ;;  %v1458_v35 = vsel %vm844_vm2, %v10571_v0, -inf  ;;  %v10595_v23 = vld [vmem:[#allocation38_spill] sm:$0xff] }
 0x237   :  { %v1465_v45 = vsel %vm844_vm2, %v10572_v12, -inf  ;;  %v9492_v53 = vsel %vm844_vm2, %v3047_v17, %v3050_v62  ;;  %v9501_v14 = vmax.f32 %v10558_v54, %v1351_v48  ;;  %v1385_v43 = vmax.f32 %v1383_v24, %v1384_v49 }
 0x238   :  { %10573 = vst [vmem:[#allocation22_spill] sm:$0xff] %v9492_v53  ;;  %v9505_v11 = vmax.f32 %v1357_v10, %v1358_v5  ;;  %v1439_v15 = vmax.f32 %v1437_v27, %v1438_v20  ;;  %v1446_v0 = vmax.f32 %v1444_v39, %v1445_v40  ;;  %v1452_v12 = vrot.slane %v1451_v63, 4  ;;  %v10576_v39 = vld [vmem:[#allocation57_spill] sm:$0xff] }
 0x239   :  { %v1392_v17 = vmax.f32 %v1390_v36, %v1391_v50  ;;  %v1399_v62 = vmax.f32 %v1397_v59, %v1398_v55  ;;  %v1406_v53 = vmax.f32 %v1404_v46, %v1405_v34  ;;  %v1459_v7 = vrot.slane %v1458_v35, 4 }
 0x23a   :  { %v9494_v57 = vld.sshfl [vmem:[#allocation1 + $0x20] sm:$0xff pattern:$0x73625140]  ;;  %v9496_v56 = vld.sshfl [vmem:[#allocation1 + $0x28] sm:$0xff pattern:$0x73625140]  ;;  %v9508_v25 = vmax.f32 %v1364_v21, %v1365_v8  ;;  %v1413_v49 = vmax.f32 %v1411_v60, %v1412_v47  ;;  %v1420_v6 = vmax.f32 %v1418_v29, %v1419_v52  ;;  %v1427_v19 = vmax.f32 %v1425_v44, %v1426_v18 }
 0x23b   :  { %2630 = vst [vmem:[#allocation1 + $0x20] ss:$4 sm:$0xff] %v9281_v58  ;;  %v1379_v30 = vrot.slane %v1378_v28, 1  ;;  %v1433_v54 = vrot.slane %v1432_v32, 2  ;;  %v1466_v48 = vrot.slane %v1465_v45, 4  ;;  %v1386_v24 = vrot.slane %v1385_v43, 1 }
 0x23c   :  { %v1440_v10 = vrot.slane %v1439_v15, 2  ;;  %v1447_v5 = vrot.slane %v1446_v0, 2  ;;  %v1453_v27 = vmax.f32 %v1451_v63, %v1452_v12  ;;  %v1472_v20 = vsel %vm844_vm2, %v10576_v39, -inf  ;;  %v10586_v39 = vld [vmem:[#allocation34_spill] sm:$0xff] }
 0x23d   :  { %v1393_v58 = vrot.slane %v1392_v17, 1  ;;  %v1400_v36 = vrot.slane %v1399_v62, 1  ;;  %v1407_v59 = vrot.slane %v1406_v53, 1  ;;  %v1460_v46 = vmax.f32 %v1458_v35, %v1459_v7  ;;  %v10581_v35 = vld [vmem:[#allocation32_spill] sm:$0xff] }
 0x23e   :  { %v9513_v21 = vmax.f32 %v9474_v13, %v1372_v9  ;;  %v9515_v8 = vmax.f32 %v1378_v28, %v1379_v30  ;;  %v1434_v50 = vmax.f32 %v1432_v32, %v1433_v54  ;;  %v1467_v55 = vmax.f32 %v1465_v45, %v1466_v48  ;;  %v10580_v28 = vld [vmem:[#allocation58_spill] sm:$0xff]  ;;  %v10585_v48 = vld [vmem:[#allocation33_spill] sm:$0xff] }
 0x23f   :  { %v1414_v60 = vrot.slane %v1413_v49, 1  ;;  %v1421_v29 = vrot.slane %v1420_v6, 1  ;;  %v1428_v44 = vrot.slane %v1427_v19, 1  ;;  %v1473_v40 = vrot.slane %v1472_v20, 4 }
 0x240   :  { %10577 = vst [vmem:[#allocation87_spill] sm:$0xff] %v9515_v8  ;;  %v9517_v34 = vmax.f32 %v1385_v43, %v1386_v24  ;;  %v1441_v47 = vmax.f32 %v1439_v15, %v1440_v10  ;;  %v1448_v52 = vmax.f32 %v1446_v0, %v1447_v5  ;;  %v1454_v63 = vrot.slane %v1453_v27, 2 }
 0x241   :  { %v9519_v18 = vmax.f32 %v1392_v17, %v1393_v58  ;;  %v9521_v12 = vmax.f32 %v1399_v62, %v1400_v36  ;;  %v9523_v7 = vmax.f32 %v1406_v53, %v1407_v59  ;;  %v1461_v13 = vrot.slane %v1460_v46, 2  ;;  %v10587_v36 = vld [vmem:[#allocation35_spill] sm:$0xff] }
 0x242   :  { %v1435_v30 = vrot.slane %v1434_v50, 1  ;;  %v1468_v9 = vrot.slane %v1467_v55, 2  ;;  %v1479_v32 = vsel %vm844_vm2, %v10580_v28, -inf  ;;  %v1486_v45 = vsel %vm844_vm2, %v10581_v35, -inf }
 0x243   :  { %10578 = vst [vmem:[#allocation23_spill] sm:$0xff] %v9521_v12  ;;  %v9529_v43 = vmax.f32 %v1413_v49, %v1414_v60  ;;  %v9531_v15 = vmax.f32 %v1420_v6, %v1421_v29  ;;  %v9533_v0 = vmax.f32 %v1427_v19, %v1428_v44  ;;  %v1474_v17 = vmax.f32 %v1472_v20, %v1473_v40  ;;  %v10589_v60 = vld [vmem:[#allocation63_spill] sm:$0xff]  ;;  %v10590_v44 = vld [vmem:[#allocation64_spill] sm:$0xff] }
 0x244   :  { %10579 = vst [vmem:[#allocation45_spill] sm:$0xff] %v9523_v7  ;;  %v1442_v62 = vrot.slane %v1441_v47, 1  ;;  %v1449_v54 = vrot.slane %v1448_v52, 1  ;;  %v1455_v53 = vmax.f32 %v1453_v27, %v1454_v63  ;;  %v1493_v24 = vsel %vm844_vm2, %v10585_v48, -inf  ;;  %v10591_v63 = vld [vmem:[#allocation36_spill] sm:$0xff] }
 0x245   :  { %10582 = vst [vmem:[#allocation46_spill] sm:$0xff] %v9529_v43  ;;  %v1480_v10 = vrot.slane %v1479_v32, 4  ;;  %v1487_v5 = vrot.slane %v1486_v45, 4  ;;  %v1500_v58 = vsel %vm844_vm2, %v10586_v39, -inf  ;;  %v1507_v49 = vsel %vm844_vm2, %v10587_v36, -inf  ;;  %v10593_v36 = vld [vmem:[#allocation37_spill] sm:$0xff] }
 0x246   :  { %10583 = vst [vmem:[#allocation24_spill] sm:$0xff] %v9531_v15  ;;  %v9541_v59 = vmax.f32 %v1434_v50, %v1435_v30  ;;  %v1462_v6 = vmax.f32 %v1460_v46, %v1461_v13  ;;  %v1469_v19 = vmax.f32 %v1467_v55, %v1468_v9  ;;  %v1514_v20 = vsel %vm844_vm2, %v10589_v60, -inf  ;;  %v10596_v15 = vld [vmem:[#allocation39_spill] sm:$0xff] }
 0x247   :  { %10584 = vst [vmem:[#allocation25_spill] sm:$0xff] %v9533_v0  ;;  %v1475_v29 = vrot.slane %v1474_v17, 2  ;;  %v1494_v27 = vrot.slane %v1493_v24, 4  ;;  %v1521_v40 = vsel %vm844_vm2, %v10590_v44, -inf  ;;  %v1528_v28 = vsel %vm844_vm2, %v10591_v63, -inf }
 0x248   :  { %10588 = vst [vmem:[#allocation26_spill] sm:$0xff] %v9541_v59  ;;  %v9549_v35 = vmax.f32 %v1441_v47, %v1442_v62  ;;  %v1501_v48 = vrot.slane %v1500_v58, 4  ;;  %v1508_v39 = vrot.slane %v1507_v49, 4  ;;  %v1535_v50 = vsel %vm844_vm2, %v10593_v36, -inf }
 0x249   :  { %v9553_v46 = vmax.f32 %v1448_v52, %v1449_v54  ;;  %v1481_v55 = vmax.f32 %v1479_v32, %v1480_v10  ;;  %v1488_v13 = vmax.f32 %v1486_v45, %v1487_v5  ;;  %v1515_v30 = vrot.slane %v1514_v20, 4  ;;  %v10597_v10 = vld [vmem:[#allocation65_spill] sm:$0xff] }
 0x24a   :  { %10592 = vst [vmem:[#allocation27_spill] sm:$0xff] %v9549_v35  ;;  %v1456_v9 = vrot.slane %v1455_v53, 1  ;;  %v1463_v60 = vrot.slane %v1462_v6, 1  ;;  %v1522_v16 = vrot.slane %v1521_v40, 4  ;;  %v1529_v2 = vrot.slane %v1528_v28, 4 }
 0x24b   :  { %10594 = vst [vmem:[#allocation51_spill] sm:$0xff] %v9553_v46  ;;  %v1470_v44 = vrot.slane %v1469_v19, 1  ;;  %v1476_v31 = vmax.f32 %v1474_v17, %v1475_v29  ;;  %v1495_v38 = vmax.f32 %v1493_v24, %v1494_v27  ;;  %v1536_v63 = vrot.slane %v1535_v50, 4 }
 0x24c   :  { %v1502_v47 = vmax.f32 %v1500_v58, %v1501_v48  ;;  %v1509_v62 = vmax.f32 %v1507_v49, %v1508_v39  ;;  %v1542_v37 = vsel %vm844_vm2, %v10595_v23, -inf  ;;  %v1549_v52 = vsel %vm844_vm2, %v10596_v15, -inf }
 0x24d   :  { %v1482_v54 = vrot.slane %v1481_v55, 2  ;;  %v1489_v32 = vrot.slane %v1488_v13, 2  ;;  %v1516_v45 = vmax.f32 %v1514_v20, %v1515_v30  ;;  %v1556_v5 = vsel %vm844_vm2, %v10597_v10, -inf }
 0x24e   :  { %v9561_v36 = vmax.f32 %v1455_v53, %v1456_v9  ;;  %v9563_v46 = vmax.f32 %v1462_v6, %v1463_v60  ;;  %v1523_v17 = vmax.f32 %v1521_v40, %v1522_v16  ;;  %v1530_v24 = vmax.f32 %v1528_v28, %v1529_v2  ;;  %v10601_v9 = vld [vmem:[#allocation66_spill] sm:$0xff]  ;;  %v10602_v16 = vld [vmem:[#allocation41_spill] sm:$0xff] }
 0x24f   :  { %v1477_v58 = vrot.slane %v1476_v31, 1  ;;  %v1537_v49 = vmax.f32 %v1535_v50, %v1536_v63  ;;  %v1543_v29 = vrot.slane %v1542_v37, 4  ;;  %v1550_v27 = vrot.slane %v1549_v52, 4 }
 0x250   :  { %10598 = vst [vmem:[#allocation52_spill] sm:$0xff] %v9561_v36  ;;  %v1496_v23 = vrot.slane %v1495_v38, 2  ;;  %v1503_v48 = vrot.slane %v1502_v47, 2  ;;  %v1510_v39 = vrot.slane %v1509_v62, 2  ;;  %v1557_v15 = vrot.slane %v1556_v5, 4 }
 0x251   :  { %10599 = vst [vmem:[#allocation28_spill] sm:$0xff] %v9563_v46  ;;  %v9565_v35 = vmax.f32 %v1469_v19, %v1470_v44  ;;  %v1483_v20 = vmax.f32 %v1481_v55, %v1482_v54  ;;  %v1490_v30 = vmax.f32 %v1488_v13, %v1489_v32  ;;  %v1517_v43 = vrot.slane %v1516_v45, 2 }
 0x252   :  { %v1524_v10 = vrot.slane %v1523_v17, 2  ;;  %v1531_v53 = vrot.slane %v1530_v24, 2  ;;  %v1563_v6 = vsel %vm844_vm2, %v10601_v9, -inf  ;;  %v1570_v2 = vsel %vm844_vm2, %v10602_v16, -inf  ;;  %v10604_v9 = vld [vmem:[#allocation42_spill] sm:$0xff] }
 0x253   :  { %10600 = vst [vmem:[#allocation29_spill] sm:$0xff] %v9565_v35  ;;  %v9571_v40 = vmax.f32 %v1476_v31, %v1477_v58  ;;  %v1538_v28 = vrot.slane %v1537_v49, 2  ;;  %v1544_v50 = vmax.f32 %v1542_v37, %v1543_v29  ;;  %v1551_v60 = vmax.f32 %v1549_v52, %v1550_v27 }
 0x254   :  { %v1497_v63 = vmax.f32 %v1495_v38, %v1496_v23  ;;  %v1504_v46 = vmax.f32 %v1502_v47, %v1503_v48  ;;  %v1511_v19 = vmax.f32 %v1509_v62, %v1510_v39  ;;  %v1558_v44 = vmax.f32 %v1556_v5, %v1557_v15 }
 0x255   :  { %10603 = vst [vmem:[#allocation30_spill] sm:$0xff] %v9571_v40  ;;  %v1484_v55 = vrot.slane %v1483_v20, 1  ;;  %v1491_v13 = vrot.slane %v1490_v30, 1  ;;  %v1564_v54 = vrot.slane %v1563_v6, 4  ;;  %v1571_v32 = vrot.slane %v1570_v2, 4  ;;  %v10605_v40 = vld [vmem:[#allocation43_spill] sm:$0xff] }
 0x256   :  { %v1518_v36 = vmax.f32 %v1516_v45, %v1517_v43  ;;  %v1525_v35 = vmax.f32 %v1523_v17, %v1524_v10  ;;  %v1532_v59 = vmax.f32 %v1530_v24, %v1531_v53  ;;  %v1577_v7 = vsel %vm844_vm2, %v10604_v9, -inf }
 0x257   :  { %v1539_v16 = vmax.f32 %v1537_v49, %v1538_v28  ;;  %v1545_v31 = vrot.slane %v1544_v50, 2  ;;  %v1552_v58 = vrot.slane %v1551_v60, 2  ;;  %v1584_v37 = vsel %vm844_vm2, %v10605_v40, -inf }
 0x258   :  { %v1498_v38 = vrot.slane %v1497_v63, 1  ;;  %v1505_v47 = vrot.slane %v1504_v46, 1  ;;  %v1512_v62 = vrot.slane %v1511_v19, 1  ;;  %v1559_v52 = vrot.slane %v1558_v44, 2 }
 0x259   :  { %v9577_v5 = vmax.f32 %v1483_v20, %v1484_v55  ;;  %v9579_v29 = vmax.f32 %v1490_v30, %v1491_v13  ;;  %v1565_v43 = vmax.f32 %v1563_v6, %v1564_v54  ;;  %v1572_v45 = vmax.f32 %v1570_v2, %v1571_v32  ;;  %v10611_v55 = vld [vmem:[#allocation44_spill] sm:$0xff]  ;;  %v10612_v2 = vld [vmem:[#allocation67_spill] sm:$0xff] }
 0x25a   :  { %v1519_v17 = vrot.slane %v1518_v36, 1  ;;  %v1526_v24 = vrot.slane %v1525_v35, 1  ;;  %v1578_v27 = vrot.slane %v1577_v7, 4  ;;  %v1585_v23 = vrot.slane %v1584_v37, 4 }
 0x25b   :  { %10606 = vst [vmem:[#allocation31_spill] sm:$0xff] %v9577_v5  ;;  %v1533_v49 = vrot.slane %v1532_v59, 1  ;;  %v1540_v48 = vrot.slane %v1539_v16, 1  ;;  %v1546_v39 = vmax.f32 %v1544_v50, %v1545_v31  ;;  %v1553_v15 = vmax.f32 %v1551_v60, %v1552_v58  ;;  %v10617_v58 = vld [vmem:[#allocation68_spill] sm:$0xff] }
 0x25c   :  { %10607 = vst [vmem:[#allocation57_spill] sm:$0xff] %v9579_v29  ;;  %v9581_v10 = vmax.f32 %v1497_v63, %v1498_v38  ;;  %v9583_v53 = vmax.f32 %v1504_v46, %v1505_v47  ;;  %v9585_v40 = vmax.f32 %v1511_v19, %v1512_v62  ;;  %v1560_v20 = vmax.f32 %v1558_v44, %v1559_v52  ;;  %v10618_v47 = vld [vmem:[#allocation47_spill] sm:$0xff] }
 0x25d   :  { %v1566_v28 = vrot.slane %v1565_v43, 2  ;;  %v1573_v30 = vrot.slane %v1572_v45, 2  ;;  %v1591_v6 = vsel %vm844_vm2, %v10611_v55, -inf  ;;  %v1598_v13 = vsel %vm844_vm2, %v10612_v2, -inf  ;;  %v10622_v55 = vld [vmem:[#allocation72_spill] sm:$0xff] }
 0x25e   :  { %10608 = vst [vmem:[#allocation58_spill] sm:$0xff] %v9581_v10  ;;  %v9591_v54 = vmax.f32 %v1518_v36, %v1519_v17  ;;  %v9593_v32 = vmax.f32 %v1525_v35, %v1526_v24  ;;  %v1579_v50 = vmax.f32 %v1577_v7, %v1578_v27  ;;  %v1586_v60 = vmax.f32 %v1584_v37, %v1585_v23  ;;  %v10619_v17 = vld [vmem:[#allocation48_spill] sm:$0xff]  ;;  %v10621_v27 = vld [vmem:[#allocation50_spill] sm:$0xff] }
 0x25f   :  { %10609 = vst [vmem:[#allocation32_spill] sm:$0xff] %v9583_v53  ;;  %v9595_v63 = vmax.f32 %v1532_v59, %v1533_v49  ;;  %v9597_v46 = vmax.f32 %v1539_v16, %v1540_v48  ;;  %v1547_v19 = vrot.slane %v1546_v39, 1  ;;  %v1554_v44 = vrot.slane %v1553_v15, 1  ;;  %v10620_v16 = vld [vmem:[#allocation49_spill] sm:$0xff] }
 0x260   :  { %10610 = vst [vmem:[#allocation33_spill] sm:$0xff] %v9585_v40  ;;  %v1592_v9 = vrot.slane %v1591_v6, 4  ;;  %v1599_v31 = vrot.slane %v1598_v13, 4  ;;  %v1605_v38 = vsel %vm844_vm2, %v10617_v58, -inf  ;;  %v1612_v62 = vsel %vm844_vm2, %v10618_v47, -inf  ;;  %v10623_v58 = vld [vmem:[#allocation73_spill] sm:$0xff] }
 0x261   :  { %10613 = vst [vmem:[#allocation34_spill] sm:$0xff] %v9591_v54  ;;  %v1561_v36 = vrot.slane %v1560_v20, 1  ;;  %v1567_v52 = vmax.f32 %v1565_v43, %v1566_v28  ;;  %v1574_v35 = vmax.f32 %v1572_v45, %v1573_v30  ;;  %v1619_v7 = vsel %vm844_vm2, %v10619_v17, -inf }
 0x262   :  { %10614 = vst [vmem:[#allocation35_spill] sm:$0xff] %v9593_v32  ;;  %v1580_v59 = vrot.slane %v1579_v50, 2  ;;  %v1587_v37 = vrot.slane %v1586_v60, 2  ;;  %v1626_v24 = vsel %vm844_vm2, %v10620_v16, -inf  ;;  %v1633_v23 = vsel %vm844_vm2, %v10621_v27, -inf }
 0x263   :  { %10615 = vst [vmem:[#allocation63_spill] sm:$0xff] %v9595_v63  ;;  %v1606_v49 = vrot.slane %v1605_v38, 4  ;;  %v1613_v48 = vrot.slane %v1612_v62, 4  ;;  %v1640_v2 = vsel %vm844_vm2, %v10622_v55, -inf  ;;  %v1647_v43 = vsel %vm844_vm2, %v10623_v58, -inf }
 0x264   :  { %10616 = vst [vmem:[#allocation64_spill] sm:$0xff] %v9597_v46  ;;  %v9613_v45 = vmax.f32 %v1546_v39, %v1547_v19  ;;  %v1593_v28 = vmax.f32 %v1591_v6, %v1592_v9  ;;  %v1600_v30 = vmax.f32 %v1598_v13, %v1599_v31  ;;  %v1620_v47 = vrot.slane %v1619_v7, 4  ;;  %v10627_v6 = vld [vmem:[#allocation53_spill] sm:$0xff]  ;;  %v10629_v31 = vld [vmem:[#allocation55_spill] sm:$0xff] }
 0x265   :  { %v9615_v17 = vmax.f32 %v1553_v15, %v1554_v44  ;;  %v9617_v46 = vmax.f32 %v1560_v20, %v1561_v36  ;;  %v1627_v16 = vrot.slane %v1626_v24, 4  ;;  %v1634_v63 = vrot.slane %v1633_v23, 4  ;;  %v10628_v20 = vld [vmem:[#allocation54_spill] sm:$0xff] }
 0x266   :  { %10624 = vst [vmem:[#allocation36_spill] sm:$0xff] %v9613_v45  ;;  %v1568_v27 = vrot.slane %v1567_v52, 1  ;;  %v1575_v53 = vrot.slane %v1574_v35, 1  ;;  %v1641_v32 = vrot.slane %v1640_v2, 4  ;;  %v1648_v10 = vrot.slane %v1647_v43, 4 }
 0x267   :  { %10625 = vst [vmem:[#allocation37_spill] sm:$0xff] %v9615_v17  ;;  %v1581_v54 = vmax.f32 %v1579_v50, %v1580_v59  ;;  %v1588_v55 = vmax.f32 %v1586_v60, %v1587_v37  ;;  %v1607_v29 = vmax.f32 %v1605_v38, %v1606_v49  ;;  %v1614_v40 = vmax.f32 %v1612_v62, %v1613_v48 }
 0x268   :  { %10626 = vst [vmem:[#allocation38_spill] sm:$0xff] %v9617_v46  ;;  %v1594_v58 = vrot.slane %v1593_v28, 2  ;;  %v1601_v39 = vrot.slane %v1600_v30, 2  ;;  %v1621_v19 = vmax.f32 %v1619_v7, %v1620_v47  ;;  %v1654_v13 = vsel %vm844_vm2, %v10627_v6, -inf }
 0x269   :  { %v1628_v15 = vmax.f32 %v1626_v24, %v1627_v16  ;;  %v1635_v44 = vmax.f32 %v1633_v23, %v1634_v63  ;;  %v1661_v9 = vsel %vm844_vm2, %v10628_v20, -inf  ;;  %v1668_v36 = vsel %vm844_vm2, %v10629_v31, -inf }
 0x26a   :  { %v9625_v45 = vmax.f32 %v1567_v52, %v1568_v27  ;;  %v9627_v50 = vmax.f32 %v1574_v35, %v1575_v53  ;;  %v1642_v60 = vmax.f32 %v1640_v2, %v1641_v32  ;;  %v1649_v38 = vmax.f32 %v1647_v43, %v1648_v10  ;;  %v10632_v52 = vld [vmem:[#allocation56_spill] sm:$0xff]  ;;  %v10633_v35 = vld [vmem:[#allocation77_spill] sm:$0xff] }
 0x26b   :  { %v1582_v62 = vrot.slane %v1581_v54, 1  ;;  %v1608_v59 = vrot.slane %v1607_v29, 2  ;;  %v1615_v7 = vrot.slane %v1614_v40, 2  ;;  %v1655_v37 = vrot.slane %v1654_v13, 4 }
 0x26c   :  { %10630 = vst [vmem:[#allocation39_spill] sm:$0xff] %v9625_v45  ;;  %v1589_v49 = vrot.slane %v1588_v55, 1  ;;  %v1622_v48 = vrot.slane %v1621_v19, 2  ;;  %v1662_v24 = vrot.slane %v1661_v9, 4  ;;  %v1669_v63 = vrot.slane %v1668_v36, 4 }
 0x26d   :  { %10631 = vst [vmem:[#allocation65_spill] sm:$0xff] %v9627_v50  ;;  %v1595_v23 = vmax.f32 %v1593_v28, %v1594_v58  ;;  %v1602_v47 = vmax.f32 %v1600_v30, %v1601_v39  ;;  %v1629_v16 = vrot.slane %v1628_v15, 2  ;;  %v1636_v6 = vrot.slane %v1635_v44, 2 }
 0x26e   :  { %v1643_v20 = vrot.slane %v1642_v60, 2  ;;  %v1650_v31 = vrot.slane %v1649_v38, 2  ;;  %v1675_v53 = vsel %vm844_vm2, %v10632_v52, -inf  ;;  %v1682_v10 = vsel %vm844_vm2, %v10633_v35, -inf }
 0x26f   :  { %v9633_v32 = vmax.f32 %v1581_v54, %v1582_v62  ;;  %v1609_v2 = vmax.f32 %v1607_v29, %v1608_v59  ;;  %v1616_v43 = vmax.f32 %v1614_v40, %v1615_v7  ;;  %v1656_v27 = vmax.f32 %v1654_v13, %v1655_v37  ;;  %v10635_v62 = vld [vmem:[#allocation78_spill] sm:$0xff] }
 0x270   :  { %v9635_v50 = vmax.f32 %v1588_v55, %v1589_v49  ;;  %v1623_v45 = vmax.f32 %v1621_v19, %v1622_v48  ;;  %v1663_v28 = vmax.f32 %v1661_v9, %v1662_v24  ;;  %v1670_v30 = vmax.f32 %v1668_v36, %v1669_v63  ;;  %v10636_v19 = vld [vmem:[#allocation59_spill] sm:$0xff] }
 0x271   :  { %v1596_v58 = vrot.slane %v1595_v23, 1  ;;  %v1630_v39 = vmax.f32 %v1628_v15, %v1629_v16  ;;  %v1676_v46 = vrot.slane %v1675_v53, 4  ;;  %v1683_v17 = vrot.slane %v1682_v10, 4 }
 0x272   :  { %10634 = vst [vmem:[#allocation66_spill] sm:$0xff] %v9635_v50  ;;  %v1603_v5 = vrot.slane %v1602_v47, 1  ;;  %v1637_v0 = vmax.f32 %v1635_v44, %v1636_v6  ;;  %v1644_v52 = vmax.f32 %v1642_v60, %v1643_v20  ;;  %v1651_v8 = vmax.f32 %v1649_v38, %v1650_v31 }
 0x273   :  { %v1610_v12 = vrot.slane %v1609_v2, 1  ;;  %v1617_v35 = vrot.slane %v1616_v43, 1  ;;  %v1657_v54 = vrot.slane %v1656_v27, 2  ;;  %v1689_v29 = vsel %vm844_vm2, %v10635_v62, -inf  ;;  %v10646_v62 = vld [vmem:[#allocation79_spill] sm:$0xff] }
 0x274   :  { %v1624_v40 = vrot.slane %v1623_v45, 1  ;;  %v1664_v55 = vrot.slane %v1663_v28, 2  ;;  %v1671_v13 = vrot.slane %v1670_v30, 2  ;;  %v1696_v9 = vsel %vm844_vm2, %v10636_v19, -inf }
 0x275   :  { %v9641_v36 = vmax.f32 %v1595_v23, %v1596_v58  ;;  %v1631_v15 = vrot.slane %v1630_v39, 1  ;;  %v1677_v59 = vmax.f32 %v1675_v53, %v1676_v46  ;;  %v1684_v7 = vmax.f32 %v1682_v10, %v1683_v17  ;;  %v10640_v53 = vld [vmem:[#allocation60_spill] sm:$0xff] }
 0x276   :  { %v1638_v44 = vrot.slane %v1637_v0, 1  ;;  %v1645_v60 = vrot.slane %v1644_v52, 1  ;;  %v1652_v38 = vrot.slane %v1651_v8, 1  ;;  %v1690_v37 = vrot.slane %v1689_v29, 4 }
 0x277   :  { %v9643_v49 = vmax.f32 %v1602_v47, %v1603_v5  ;;  %v9645_v48 = vmax.f32 %v1609_v2, %v1610_v12  ;;  %v1658_v24 = vmax.f32 %v1656_v27, %v1657_v54  ;;  %v1697_v63 = vrot.slane %v1696_v9, 4 }
 0x278   :  { %v9647_v16 = vmax.f32 %v1616_v43, %v1617_v35  ;;  %v9649_v6 = vmax.f32 %v1623_v45, %v1624_v40  ;;  %v1665_v20 = vmax.f32 %v1663_v28, %v1664_v55  ;;  %v1672_v23 = vmax.f32 %v1670_v30, %v1671_v13  ;;  %v10644_v45 = vld [vmem:[#allocation61_spill] sm:$0xff]  ;;  %v10645_v28 = vld [vmem:[#allocation62_spill] sm:$0xff]  ;;  %v10647_v55 = vld [vmem:[#allocation80_spill] sm:$0xff] }
 0x279   :  { %v9651_v31 = vmax.f32 %v1630_v39, %v1631_v15  ;;  %v1678_v46 = vrot.slane %v1677_v59, 2  ;;  %v1685_v17 = vrot.slane %v1684_v7, 2  ;;  %v1703_v10 = vsel %vm844_vm2, %v10640_v53, -inf  ;;  %v10649_v15 = vld [vmem:[#allocation92_spill] sm:$0xff] }
 0x27a   :  { %10637 = vst [vmem:[#allocation41_spill] sm:$0xff] %v9647_v16  ;;  %v9655_v58 = vmax.f32 %v1637_v0, %v1638_v44  ;;  %v9657_v5 = vmax.f32 %v1644_v52, %v1645_v60  ;;  %v9659_v12 = vmax.f32 %v1651_v8, %v1652_v38  ;;  %v1691_v47 = vmax.f32 %v1689_v29, %v1690_v37  ;;  %v10648_v29 = vld [vmem:[#allocation88_spill] sm:$0xff]  ;;  %v10650_v60 = vld [vmem:[#allocation93_spill] sm:$0xff] }
 0x27b   :  { %10638 = vst [vmem:[#allocation42_spill] sm:$0xff] %v9649_v6  ;;  %v1659_v2 = vrot.slane %v1658_v24, 1  ;;  %v1698_v43 = vmax.f32 %v1696_v9, %v1697_v63  ;;  %v1710_v27 = vsel %vm844_vm2, %v10644_v45, -inf  ;;  %v1717_v30 = vsel %vm844_vm2, %v10645_v28, -inf  ;;  %v10652_v45 = vld [vmem:[#allocation95_spill] sm:$0xff] }
 0x27c   :  { %10639 = vst [vmem:[#allocation43_spill] sm:$0xff] %v9651_v31  ;;  %v1666_v39 = vrot.slane %v1665_v20, 1  ;;  %v1673_v35 = vrot.slane %v1672_v23, 1  ;;  %v1704_v54 = vrot.slane %v1703_v10, 4  ;;  %v1724_v0 = vsel %vm844_vm2, %v10646_v62, -inf }
 0x27d   :  { %10641 = vst [vmem:[#allocation44_spill] sm:$0xff] %v9655_v58  ;;  %v1679_v40 = vmax.f32 %v1677_v59, %v1678_v46  ;;  %v1686_v52 = vmax.f32 %v1684_v7, %v1685_v17  ;;  %v1731_v8 = vsel %vm844_vm2, %v10647_v55, -inf  ;;  %v2158_v13 = vsel %vm844_vm2, %v10648_v29, -inf }
 0x27e   :  { %10642 = vst [vmem:[#allocation67_spill] sm:$0xff] %v9657_v5  ;;  %v1711_v19 = vrot.slane %v1710_v27, 4  ;;  %v1718_v9 = vrot.slane %v1717_v30, 4  ;;  %v2165_v44 = vsel %vm844_vm2, %v10649_v15, -inf  ;;  %v2172_v38 = vsel %vm844_vm2, %v10650_v60, -inf }
 0x27f   :  { %10643 = vst [vmem:[#allocation68_spill] sm:$0xff] %v9659_v12  ;;  %v9675_v37 = vmax.f32 %v1658_v24, %v1659_v2  ;;  %v1692_v63 = vrot.slane %v1691_v47, 2  ;;  %v1699_v53 = vrot.slane %v1698_v43, 2  ;;  %v1725_v59 = vrot.slane %v1724_v0, 4 }
 0x280   :  { %v1705_v7 = vmax.f32 %v1703_v10, %v1704_v54  ;;  %v1732_v46 = vrot.slane %v1731_v8, 4  ;;  %v2159_v17 = vrot.slane %v2158_v13, 4  ;;  %v2179_v28 = vsel %vm844_vm2, %v10652_v45, -inf }
 0x281   :  { %10651 = vst [vmem:[#allocation47_spill] sm:$0xff] %v9675_v37  ;;  %v9679_v62 = vmax.f32 %v1665_v20, %v1666_v39  ;;  %v9681_v55 = vmax.f32 %v1672_v23, %v1673_v35  ;;  %v2166_v29 = vrot.slane %v2165_v44, 4  ;;  %v2173_v15 = vrot.slane %v2172_v38, 4  ;;  %v10655_v35 = vld [vmem:[#allocation70_spill] sm:$0xff] }
 0x282   :  { %v1680_v31 = vrot.slane %v1679_v40, 1  ;;  %v1687_v12 = vrot.slane %v1686_v52, 1  ;;  %v1712_v60 = vmax.f32 %v1710_v27, %v1711_v19  ;;  %v1719_v24 = vmax.f32 %v1717_v30, %v1718_v9 }
 0x283   :  { %10653 = vst [vmem:[#allocation48_spill] sm:$0xff] %v9679_v62  ;;  %v1693_v2 = vmax.f32 %v1691_v47, %v1692_v63  ;;  %v1700_v37 = vmax.f32 %v1698_v43, %v1699_v53  ;;  %v1726_v6 = vmax.f32 %v1724_v0, %v1725_v59  ;;  %v2180_v5 = vrot.slane %v2179_v28, 4 }
 0x284   :  { %10654 = vst [vmem:[#allocation49_spill] sm:$0xff] %v9681_v55  ;;  %v1706_v10 = vrot.slane %v1705_v7, 2  ;;  %v1733_v54 = vmax.f32 %v1731_v8, %v1732_v46  ;;  %v2160_v16 = vmax.f32 %v2158_v13, %v2159_v17  ;;  %v2186_v45 = vsel %vm844_vm2, %v9414_v33, -inf }
 0x285   :  { %v2167_v20 = vmax.f32 %v2165_v44, %v2166_v29  ;;  %v2174_v39 = vmax.f32 %v2172_v38, %v2173_v15  ;;  %v2193_v23 = vsel %vm844_vm2, %v9416_v4, -inf  ;;  %v2200_v55 = vsel %vm844_vm2, %v10655_v35, -inf }
 0x286   :  { %v9689_v27 = vmax.f32 %v1679_v40, %v1680_v31  ;;  %v9691_v47 = vmax.f32 %v1686_v52, %v1687_v12  ;;  %v1713_v43 = vrot.slane %v1712_v60, 2  ;;  %v1720_v30 = vrot.slane %v1719_v24, 2  ;;  %v10658_v31 = vld [vmem:[#allocation96_spill] sm:$0xff]  ;;  %v10659_v40 = vld [vmem:[#allocation97_spill] sm:$0xff] }
 0x287   :  { %v1694_v0 = vrot.slane %v1693_v2, 1  ;;  %v1727_v8 = vrot.slane %v1726_v6, 2  ;;  %v2181_v13 = vmax.f32 %v2179_v28, %v2180_v5  ;;  %v2187_v19 = vrot.slane %v2186_v45, 4 }
 0x288   :  { %10656 = vst [vmem:[#allocation50_spill] sm:$0xff] %v9689_v27  ;;  %v1734_v9 = vrot.slane %v1733_v54, 2  ;;  %v2161_v33 = vrot.slane %v2160_v16, 2  ;;  %v2194_v44 = vrot.slane %v2193_v23, 4  ;;  %v2201_v38 = vrot.slane %v2200_v55, 4 }
 0x289   :  { %10657 = vst [vmem:[#allocation72_spill] sm:$0xff] %v9691_v47  ;;  %v1701_v63 = vrot.slane %v1700_v37, 1  ;;  %v1707_v53 = vmax.f32 %v1705_v7, %v1706_v10  ;;  %v2168_v4 = vrot.slane %v2167_v20, 2  ;;  %v2175_v59 = vrot.slane %v2174_v39, 2 }
 0x28a   :  { %v1714_v46 = vmax.f32 %v1712_v60, %v1713_v43  ;;  %v1721_v17 = vmax.f32 %v1719_v24, %v1720_v30  ;;  %v2207_v12 = vsel %vm844_vm2, %v10658_v31, -inf  ;;  %v2214_v52 = vsel %vm844_vm2, %v10659_v40, -inf }
 0x28b   :  { %v9697_v29 = vmax.f32 %v1693_v2, %v1694_v0  ;;  %v1728_v5 = vmax.f32 %v1726_v6, %v1727_v8  ;;  %v2182_v28 = vrot.slane %v2181_v13, 2  ;;  %v2188_v15 = vmax.f32 %v2186_v45, %v2187_v19  ;;  %v10660_v0 = vld [vmem:[#allocation98_spill] sm:$0xff] }
 0x28c   :  { %v1735_v35 = vmax.f32 %v1733_v54, %v1734_v9  ;;  %v2162_v62 = vmax.f32 %v2160_v16, %v2161_v33  ;;  %v2195_v47 = vmax.f32 %v2193_v23, %v2194_v44  ;;  %v2202_v27 = vmax.f32 %v2200_v55, %v2201_v38 }
 0x28d   :  { %v2169_v7 = vmax.f32 %v2167_v20, %v2168_v4  ;;  %v2176_v10 = vmax.f32 %v2174_v39, %v2175_v59  ;;  %v2208_v58 = vrot.slane %v2207_v12, 4  ;;  %v2215_v60 = vrot.slane %v2214_v52, 4 }
 0x28e   :  { %v9699_v24 = vmax.f32 %v1700_v37, %v1701_v63  ;;  %v1708_v43 = vrot.slane %v1707_v53, 1  ;;  %v1715_v30 = vrot.slane %v1714_v46, 1  ;;  %v1722_v31 = vrot.slane %v1721_v17, 1 }
 0x28f   :  { %v1729_v50 = vrot.slane %v1728_v5, 1  ;;  %v2183_v40 = vmax.f32 %v2181_v13, %v2182_v28  ;;  %v2189_v2 = vrot.slane %v2188_v15, 2  ;;  %v2221_v6 = vsel %vm844_vm2, %v10660_v0, -inf  ;;  %v1168_v28 = vld.sshfl [vmem:[#allocation1] sm:$0xff pattern:$0x73625140] }
 0x290   :  { %v1736_v45 = vrot.slane %v1735_v35, 1  ;;  %v2163_v54 = vrot.slane %v2162_v62, 1  ;;  %v2196_v16 = vrot.slane %v2195_v47, 2  ;;  %v2203_v23 = vrot.slane %v2202_v27, 2 }
 0x291   :  { %v2170_v55 = vrot.slane %v2169_v7, 1  ;;  %v2177_v20 = vrot.slane %v2176_v10, 1  ;;  %v2209_v39 = vmax.f32 %v2207_v12, %v2208_v58  ;;  %v2216_v8 = vmax.f32 %v2214_v52, %v2215_v60 }
 0x292   :  { %v9703_v19 = vmax.f32 %v1707_v53, %v1708_v43  ;;  %v9705_v37 = vmax.f32 %v1714_v46, %v1715_v30  ;;  %v9707_v9 = vmax.f32 %v1721_v17, %v1722_v31  ;;  %v2222_v33 = vrot.slane %v2221_v6, 4 }
 0x293   :  { %v9709_v13 = vmax.f32 %v1728_v5, %v1729_v50  ;;  %v2184_v44 = vrot.slane %v2183_v40, 1  ;;  %v2190_v38 = vmax.f32 %v2188_v15, %v2189_v2  ;;  %v2228_v63 = vsel %vm844_vm2, %v9444_v51, -inf  ;;  %v1170_v2 = vld.sshfl [vmem:[#allocation1 + $0x10] sm:$0xff pattern:$0x73625140] }
 0x294   :  { %10661 = vst [vmem:[#allocation73_spill] sm:$0xff] %v9703_v19  ;;  %v9713_v4 = vmax.f32 %v1735_v35, %v1736_v45  ;;  %v9715_v59 = vmax.f32 %v2162_v62, %v2163_v54  ;;  %v2197_v58 = vmax.f32 %v2195_v47, %v2196_v16  ;;  %v2204_v12 = vmax.f32 %v2202_v27, %v2203_v23  ;;  %v1169_v62 = vld.sshfl [vmem:[#allocation1 + $0x8] sm:$0xff pattern:$0x73625140] }
 0x295   :  { %10662 = vst [vmem:[#allocation53_spill] sm:$0xff] %v9705_v37  ;;  %v9717_v53 = vmax.f32 %v2169_v7, %v2170_v55  ;;  %v9719_v46 = vmax.f32 %v2176_v10, %v2177_v20  ;;  %v2210_v17 = vrot.slane %v2209_v39, 2  ;;  %v2217_v52 = vrot.slane %v2216_v8, 2  ;;  %v1171_v45 = vld.sshfl [vmem:[#allocation1 + $0x18] sm:$0xff pattern:$0x73625140] }
 0x296   :  { %10663 = vst [vmem:[#allocation54_spill] sm:$0xff] %v9709_v13  ;;  %v9721_v50 = vmax.f32 %v2221_v6, %v2222_v33  ;;  %v2229_v5 = vrot.slane %v2228_v63, 4  ;;  %v2235_v15 = vsel %vm844_vm2, %v9446_v22, -inf  ;;  %v2242_v51 = vsel %vm844_vm2, %v9354_v1, -inf }
 0x297   :  { %10664 = vst [vmem:[#allocation55_spill] sm:$0xff] %v9713_v4  ;;  %v9727_v35 = vmax.f32 %v2183_v40, %v2184_v44  ;;  %v2191_v27 = vrot.slane %v2190_v38, 1  ;;  %v2249_v47 = vsel %vm844_vm2, %v9362_v61, -inf  ;;  %v2256_v7 = vsel %vm844_vm2, %v9364_v41, -inf }
 0x298   :  { %10665 = vst [vmem:[#allocation56_spill] sm:$0xff] %v9715_v59  ;;  %v2198_v10 = vrot.slane %v2197_v58, 1  ;;  %v2205_v60 = vrot.slane %v2204_v12, 1  ;;  %v2263_v43 = vsel %vm844_vm2, %v9369_v26, -inf  ;;  %v2270_v22 = vsel %vm844_vm2, %v9470_v3, -inf }
 0x299   :  { %10666 = vst [vmem:[#allocation77_spill] sm:$0xff] %v9717_v53  ;;  %v2236_v30 = vrot.slane %v2235_v15, 4  ;;  %v2243_v1 = vrot.slane %v2242_v51, 4  ;;  %v2277_v31 = vsel %vm844_vm2, %v9472_v42, -inf  ;;  %v2284_v40 = vsel %vm844_vm2, %v1168_v28, -inf }
 0x29a   :  { %10667 = vst [vmem:[#allocation78_spill] sm:$0xff] %v9719_v46  ;;  %v2211_v61 = vmax.f32 %v2209_v39, %v2210_v17  ;;  %v9740_v0 = vmax.f32 %v2216_v8, %v2217_v52  ;;  %v2250_v41 = vrot.slane %v2249_v47, 4  ;;  %v2257_v6 = vrot.slane %v2256_v7, 4 }
 0x29b   :  { %10668 = vst [vmem:[#allocation59_spill] sm:$0xff] %v9727_v35  ;;  %v2224_v54 = vrot.slane %v9721_v50, 2  ;;  %v2230_v26 = vmax.f32 %v2228_v63, %v2229_v5  ;;  %v2264_v16 = vrot.slane %v2263_v43, 4  ;;  %v2271_v23 = vrot.slane %v2270_v22, 4 }
 0x29c   :  { %v9743_v3 = vmax.f32 %v2190_v38, %v2191_v27  ;;  %v2278_v55 = vrot.slane %v2277_v31, 4  ;;  %v2285_v20 = vrot.slane %v2284_v40, 4  ;;  %v2291_v42 = vsel %vm844_vm2, %v1169_v62, -inf }
 0x29d   :  { %v9746_v33 = vmax.f32 %v2197_v58, %v2198_v10  ;;  %v2237_v44 = vmax.f32 %v2235_v15, %v2236_v30  ;;  %v2244_v39 = vmax.f32 %v2242_v51, %v2243_v1  ;;  %v2298_v8 = vsel %vm844_vm2, %v1170_v2, -inf }
 0x29e   :  { %10669 = vst [vmem:[#allocation60_spill] sm:$0xff] %v9743_v3  ;;  %v2251_v17 = vmax.f32 %v2249_v47, %v2250_v41  ;;  %v2258_v52 = vmax.f32 %v2256_v7, %v2257_v6  ;;  %v2305_v28 = vsel %vm844_vm2, %v1171_v45, -inf  ;;  %v2312_v63 = vsel %vm844_vm2, %v9494_v57, -inf }
 0x29f   :  { %10670 = vst [vmem:[#allocation61_spill] sm:$0xff] %v9746_v33  ;;  %v9752_v5 = vmax.f32 %v2204_v12, %v2205_v60  ;;  %v2265_v38 = vmax.f32 %v2263_v43, %v2264_v16  ;;  %v2272_v27 = vmax.f32 %v2270_v22, %v2271_v23  ;;  %v2292_v46 = vrot.slane %v2291_v42, 4 }
 0x2a0   :  { %v2279_v53 = vmax.f32 %v2277_v31, %v2278_v55  ;;  %v2286_v62 = vmax.f32 %v2284_v40, %v2285_v20  ;;  %v2299_v58 = vrot.slane %v2298_v8, 4  ;;  %v2319_v15 = vsel %vm844_vm2, %v9496_v56, -inf }
 0x2a1   :  { %10671 = vst [vmem:[#allocation62_spill] sm:$0xff] %v9752_v5  ;;  %v2212_v51 = vrot.slane %v2211_v61, 1  ;;  %v2231_v10 = vrot.slane %v2230_v26, 2  ;;  %v2306_v47 = vrot.slane %v2305_v28, 4  ;;  %v2313_v7 = vrot.slane %v2312_v63, 4 }
 0x2a2   :  { %v2238_v30 = vrot.slane %v2237_v44, 2  ;;  %v2245_v1 = vrot.slane %v2244_v39, 2  ;;  %v2252_v2 = vrot.slane %v2251_v17, 2  ;;  %v2259_v41 = vrot.slane %v2258_v52, 2 }
 0x2a3   :  { %v2266_v57 = vrot.slane %v2265_v38, 2  ;;  %v2273_v12 = vrot.slane %v2272_v27, 2  ;;  %v2293_v60 = vmax.f32 %v2291_v42, %v2292_v46  ;;  %v2320_v43 = vrot.slane %v2319_v15, 4 }
 0x2a4   :  { %v2219_v22 = vrot.slane %v9740_v0, 1  ;;  %v2280_v31 = vrot.slane %v2279_v53, 2  ;;  %v2287_v40 = vrot.slane %v2286_v62, 2  ;;  %v2300_v6 = vmax.f32 %v2298_v8, %v2299_v58 }
 0x2a5   :  { %v2225_v45 = vmax.f32 %v9721_v50, %v2224_v54  ;;  %v2232_v56 = vmax.f32 %v2230_v26, %v2231_v10  ;;  %v2307_v16 = vmax.f32 %v2305_v28, %v2306_v47  ;;  %v2314_v23 = vmax.f32 %v2312_v63, %v2313_v7 }
 0x2a6   :  { %v2239_v55 = vmax.f32 %v2237_v44, %v2238_v30  ;;  %v2246_v20 = vmax.f32 %v2244_v39, %v2245_v1  ;;  %v2253_v5 = vmax.f32 %v2251_v17, %v2252_v2  ;;  %v2260_v33 = vmax.f32 %v2258_v52, %v2259_v41 }
 0x2a7   :  { %v2267_v3 = vmax.f32 %v2265_v38, %v2266_v57  ;;  %v2274_v59 = vmax.f32 %v2272_v27, %v2273_v12  ;;  %v2294_v35 = vrot.slane %v2293_v60, 2  ;;  %v2321_v37 = vmax.f32 %v2319_v15, %v2320_v43  ;;  %v10672_v12 = vld [vmem:[#allocation83_spill] sm:$0xff] }
 0x2a8   :  { %v9758_v46 = vmax.f32 %v2211_v61, %v2212_v51  ;;  %v2281_v42 = vmax.f32 %v2279_v53, %v2280_v31  ;;  %v2288_v4 = vmax.f32 %v2286_v62, %v2287_v40  ;;  %v2301_v19 = vrot.slane %v2300_v6, 2  ;;  %v10675_v31 = vld [vmem:[#allocation87_spill] sm:$0xff] }
 0x2a9   :  { %v2226_v13 = vrot.slane %v2225_v45, 1  ;;  %v2233_v8 = vrot.slane %v2232_v56, 1  ;;  %v2308_v58 = vrot.slane %v2307_v16, 2  ;;  %v2315_v50 = vrot.slane %v2314_v23, 2 }
 0x2aa   :  { %v2240_v54 = vrot.slane %v2239_v55, 1  ;;  %v2247_v26 = vrot.slane %v2246_v20, 1  ;;  %v2254_v28 = vrot.slane %v2253_v5, 1  ;;  %v2261_v44 = vrot.slane %v2260_v33, 1 }
 0x2ab   :  { %v2268_v39 = vrot.slane %v2267_v3, 1  ;;  %v2275_v17 = vrot.slane %v2274_v59, 1  ;;  %v2295_v52 = vmax.f32 %v2293_v60, %v2294_v35  ;;  %v2322_v63 = vrot.slane %v2321_v37, 2 }
 0x2ac   :  { %v9761_v38 = vmax.f32 %v9740_v0, %v2219_v22  ;;  %v2282_v61 = vrot.slane %v2281_v42, 1  ;;  %v2289_v27 = vrot.slane %v2288_v4, 1  ;;  %v2302_v53 = vmax.f32 %v2300_v6, %v2301_v19  ;;  %v10677_v6 = vld [vmem:[#allocation45_spill] sm:$0xff] }
 0x2ad   :  { %v9763_v62 = vmax.f32 %v2225_v45, %v2226_v13  ;;  %v9765_v15 = vmax.f32 %v2232_v56, %v2233_v8  ;;  %v2309_v51 = vmax.f32 %v2307_v16, %v2308_v58  ;;  %v2316_v10 = vmax.f32 %v2314_v23, %v2315_v50  ;;  %v10678_v56 = vld [vmem:[#allocation26_spill] sm:$0xff]  ;;  %v10682_v8 = vld [vmem:[#allocation29_spill] sm:$0xff] }
 0x2ae   :  { %v9767_v47 = vmax.f32 %v2239_v55, %v2240_v54  ;;  %v9769_v7 = vmax.f32 %v2246_v20, %v2247_v26  ;;  %v9771_v30 = vmax.f32 %v2253_v5, %v2254_v28  ;;  %v9773_v35 = vmax.f32 %v2260_v33, %v2261_v44  ;;  %v10673_v5 = vld [vmem:[#allocation84_spill] sm:$0xff]  ;;  %v10679_v16 = vld [vmem:[#allocation46_spill] sm:$0xff]  ;;  %v10680_v20 = vld [vmem:[#allocation27_spill] sm:$0xff] }
 0x2af   :  { %v9775_v1 = vmax.f32 %v2267_v3, %v2268_v39  ;;  %v9777_v0 = vmax.f32 %v2274_v59, %v2275_v17  ;;  %v2296_v2 = vrot.slane %v2295_v52, 1  ;;  %v2323_v19 = vmax.f32 %v2321_v37, %v2322_v63  ;;  %v10674_v37 = vld [vmem:[#allocation23_spill] sm:$0xff]  ;;  %v10687_v26 = vld [vmem:[#allocation28_spill] sm:$0xff]  ;;  %v10688_v44 = vld [vmem:[#allocation33_spill] sm:$0xff] }
 0x2b0   :  { %v9779_v13 = vmax.f32 %v2281_v42, %v2282_v61  ;;  %v9781_v41 = vmax.f32 %v2288_v4, %v2289_v27  ;;  %v2303_v57 = vrot.slane %v2302_v53, 1  ;;  %v2327_v60 = vmax.f32 %v10672_v12, %v9501_v14  ;;  %v10676_v4 = vld [vmem:[#allocation25_spill] sm:$0xff]  ;;  %v10686_v54 = vld [vmem:[#allocation31_spill] sm:$0xff]  ;;  %v10690_v61 = vld [vmem:[#allocation34_spill] sm:$0xff] }
 0x2b1   :  { %v2310_v43 = vrot.slane %v2309_v51, 1  ;;  %v2317_v22 = vrot.slane %v2316_v10, 1  ;;  %v2328_v33 = vmax.f32 %v10673_v5, %v9505_v11  ;;  %v2329_v3 = vmax.f32 %v9508_v25, %v9517_v34  ;;  %v10681_v11 = vld [vmem:[#allocation24_spill] sm:$0xff]  ;;  %v10683_v25 = vld [vmem:[#allocation51_spill] sm:$0xff]  ;;  %v10689_v39 = vld [vmem:[#allocation57_spill] sm:$0xff] }
 0x2b2   :  { %v2330_v59 = vmax.f32 %v9513_v21, %v9519_v18  ;;  %v2331_v40 = vmax.f32 %v10675_v31, %v10674_v37  ;;  %v2332_v45 = vmax.f32 %v10677_v6, %v10676_v4  ;;  %v2333_v14 = vmax.f32 %v10679_v16, %v10678_v56  ;;  %v10684_v21 = vld [vmem:[#allocation30_spill] sm:$0xff]  ;;  %v10685_v18 = vld [vmem:[#allocation52_spill] sm:$0xff]  ;;  %v10692_v12 = vld [vmem:[#allocation35_spill] sm:$0xff] }
 0x2b3   :  { %v9797_v23 = vmax.f32 %v2295_v52, %v2296_v2  ;;  %v2324_v55 = vrot.slane %v2323_v19, 1  ;;  %v2334_v42 = vmax.f32 %v10681_v11, %v10680_v20  ;;  %v2335_v34 = vmax.f32 %v10683_v25, %v10682_v8  ;;  %v10691_v27 = vld [vmem:[#allocation58_spill] sm:$0xff]  ;;  %v10693_v5 = vld [vmem:[#allocation32_spill] sm:$0xff]  ;;  %v10695_v37 = vld [vmem:[#allocation63_spill] sm:$0xff] }
 0x2b4   :  { %v9803_v58 = vmax.f32 %v2302_v53, %v2303_v57  ;;  %v2336_v50 = vmax.f32 %v10685_v18, %v10684_v21  ;;  %v2337_v28 = vmax.f32 %v10687_v26, %v10686_v54  ;;  %v2338_v17 = vmax.f32 %v10689_v39, %v10688_v44  ;;  %v10694_v57 = vld [vmem:[#allocation37_spill] sm:$0xff]  ;;  %v10696_v4 = vld [vmem:[#allocation38_spill] sm:$0xff]  ;;  %v10697_v6 = vld [vmem:[#allocation64_spill] sm:$0xff] }
 0x2b5   :  { %v9811_v52 = vmax.f32 %v2309_v51, %v2310_v43  ;;  %v9813_v63 = vmax.f32 %v2316_v10, %v2317_v22  ;;  %v2339_v2 = vmax.f32 %v10691_v27, %v10690_v61  ;;  %v2340_v53 = vmax.f32 %v10693_v5, %v10692_v12  ;;  %v10698_v16 = vld [vmem:[#allocation39_spill] sm:$0xff]  ;;  %v10699_v20 = vld [vmem:[#allocation36_spill] sm:$0xff]  ;;  %v10700_v51 = vld [vmem:[#allocation65_spill] sm:$0xff] }
 0x2b6   :  { %v2341_v31 = vmax.f32 %v10695_v37, %v10694_v57  ;;  %v2342_v56 = vmax.f32 %v10697_v6, %v10696_v4  ;;  %v2343_v11 = vmax.f32 %v10699_v20, %v10698_v16  ;;  %v2344_v43 = vmax.f32 %v10700_v51, %v9641_v36  ;;  %v10701_v8 = vld [vmem:[#allocation66_spill] sm:$0xff]  ;;  %v10702_v21 = vld [vmem:[#allocation44_spill] sm:$0xff]  ;;  %v10703_v18 = vld [vmem:[#allocation41_spill] sm:$0xff] }
 0x2b7   :  { %v9827_v10 = vmax.f32 %v2323_v19, %v2324_v55  ;;  %v2345_v22 = vmax.f32 %v9633_v32, %v9643_v49  ;;  %v2346_v25 = vmax.f32 %v10701_v8, %v9645_v48  ;;  %v2347_v54 = vmax.f32 %v10703_v18, %v10702_v21  ;;  %v9835_v26 = vld [vmem:[#allocation1 + $0x20] sm:$0xff]  ;;  %v9837_v44 = vld [vmem:[#allocation1 + $0x28] sm:$0xf]  ;;  %v10706_v61 = vld [vmem:[#allocation42_spill] sm:$0xff] }
 0x2b8   :  { %10704 = vst [vmem:[#allocation79_spill] sm:$0xff] %v9837_v44  ;;  %v10705_v39 = vld [vmem:[#allocation67_spill] sm:$0xff]  ;;  %v10707_v12 = vld [vmem:[#allocation68_spill] sm:$0xff]  ;;  %v10709_v55 = vld [vmem:[#allocation50_spill] sm:$0xff]  ;;  %v2353_v16 = vmax.f32 %v9699_v24, %v9707_v9  ;;  %v2390_v24 = vmax.f32 %v9758_v46, %v9765_v15  ;;  %v2391_v9 = vmax.f32 %v9761_v38, %v9767_v47 }
 0x2b9   :  { %v2348_v27 = vmax.f32 %v10706_v61, %v10705_v39  ;;  %v10708_v36 = vld [vmem:[#allocation43_spill] sm:$0xff]  ;;  %v10711_v32 = vld [vmem:[#allocation72_spill] sm:$0xff]  ;;  %v10714_v4 = vld [vmem:[#allocation49_spill] sm:$0xff]  ;;  %v2397_v46 = vmax.f32 %v9803_v58, %v9827_v10 }
 0x2ba   :  { %v2349_v19 = vmax.f32 %v10708_v36, %v10707_v12  ;;  %v10710_v5 = vld [vmem:[#allocation47_spill] sm:$0xff]  ;;  %v10712_v49 = vld [vmem:[#allocation48_spill] sm:$0xff]  ;;  %v2352_v6 = vmax.f32 %v10714_v4, %v9697_v29  ;;  %v10715_v20 = vld [vmem:[#allocation54_spill] sm:$0xff] }
 0x2bb   :  { %v2350_v57 = vmax.f32 %v10710_v5, %v10709_v55  ;;  %v2351_v37 = vmax.f32 %v10712_v49, %v10711_v32  ;;  %v10713_v48 = vld [vmem:[#allocation91_spill] sm:$0xff]  ;;  %v10716_v51 = vld [vmem:[#allocation73_spill] sm:$0xff]  ;;  %v10720_v12 = vld [vmem:[#allocation56_spill] sm:$0xff] }
 0x2bc   :  { %2692 = vst [vmem:[#allocation1 + $0x20] ss:$4 sm:$0xff] %v10713_v48  ;;  %v2354_v8 = vmax.f32 %v10716_v51, %v10715_v20  ;;  %v10717_v21 = vld [vmem:[#allocation55_spill] sm:$0xff]  ;;  %v10718_v18 = vld [vmem:[#allocation53_spill] sm:$0xff]  ;;  %v10721_v55 = vld [vmem:[#allocation60_spill] sm:$0xff]  ;;  %v2392_v20 = vmax.f32 %v9769_v7, %v9775_v1  ;;  %v2393_v51 = vmax.f32 %v9771_v30, %v9777_v0 }
 0x2bd   :  { %v2355_v39 = vmax.f32 %v10718_v18, %v10717_v21  ;;  %v10719_v61 = vld [vmem:[#allocation59_spill] sm:$0xff]  ;;  %v10722_v5 = vld [vmem:[#allocation77_spill] sm:$0xff]  ;;  %v10724_v48 = vld [vmem:[#allocation78_spill] sm:$0xff]  ;;  %v2394_v21 = vmax.f32 %v9773_v35, %v9779_v13  ;;  %v2395_v18 = vmax.f32 %v9781_v41, %v9811_v52 }
 0x2be   :  { %v2386_v36 = vmax.f32 %v10720_v12, %v10719_v61  ;;  %v2387_v32 = vmax.f32 %v10722_v5, %v10721_v55  ;;  %v10723_v49 = vld [vmem:[#allocation61_spill] sm:$0xff]  ;;  %v10725_v29 = vld [vmem:[#allocation62_spill] sm:$0xff]  ;;  %v10730_v1 = vld [vmem:[#allocation75_spill] sm:$0xff] }
 0x2bf   :  { %v2388_v44 = vmax.f32 %v10724_v48, %v10723_v49  ;;  %v2389_v4 = vmax.f32 %v10725_v29, %v9763_v62  ;;  %v2396_v62 = vmax.f32 %v9797_v23, %v9813_v63  ;;  %v10726_v15 = vld [vmem:[#allocation82_spill] sm:$0xff]  ;;  %v10727_v38 = vld [vmem:[#allocation85_spill] sm:$0xff]  ;;  %v2407_v12 = vadd.f32 %v10730_v1, %v2327_v60  ;;  %v10731_v30 = vld [vmem:[#allocation76_spill] sm:$0xff] }
 0x2c0   :  { %v10728_v47 = vmax.f32 %v10726_v15, %v10727_v38  ;;  %v10729_v61 = vld [vmem:[#allocation69_spill] sm:$0xff]  ;;  %v2408_v0 = vadd.f32 %v10731_v30, %v2328_v33  ;;  %v9890_v13 = vadd.f32 %v10730_v1, %v2330_v59  ;;  %v9893_v41 = vadd.f32 %v10731_v30, %v2331_v40 }
 0x2c1   :  { %v9887_v35 = vadd.f32 %v10729_v61, %v2329_v3  ;;  %v9896_v23 = vadd.f32 %v10729_v61, %v2332_v45  ;;  %v9899_v58 = vadd.f32 %v10730_v1, %v2333_v14  ;;  %v9902_v52 = vadd.f32 %v10731_v30, %v2334_v42 }
 0x2c2   :  { %v2406_v7 = vadd.f32 %v10729_v61, %v10728_v47  ;;  %v9905_v60 = vadd.f32 %v10729_v61, %v2335_v34  ;;  %v9908_v33 = vadd.f32 %v10730_v1, %v2336_v50  ;;  %v9911_v3 = vadd.f32 %v10731_v30, %v2337_v28 }
 0x2c3   :  { %v9914_v59 = vadd.f32 %v10729_v61, %v2338_v17  ;;  %v9917_v40 = vadd.f32 %v10730_v1, %v2339_v2  ;;  %v9920_v45 = vadd.f32 %v10731_v30, %v2340_v53  ;;  %v9923_v14 = vadd.f32 %v10729_v61, %v2341_v31  ;;  %v9937_v17 = vld [vmem:[#allocation1 + $0x20] sm:$0xff] }
 0x2c4   :  { %v9926_v42 = vadd.f32 %v10730_v1, %v2342_v56  ;;  %v9929_v34 = vadd.f32 %v10731_v30, %v2343_v11  ;;  %v9932_v50 = vadd.f32 %v10729_v61, %v2344_v43  ;;  %v9935_v28 = vadd.f32 %v10730_v1, %v2345_v22  ;;  %v9951_v56 = vld [vmem:[#allocation1 + $0x28] sm:$0xf] }
 0x2c5   :  { %v9940_v63 = vadd.f32 %v10731_v30, %v2346_v25  ;;  %v9943_v2 = vadd.f32 %v10729_v61, %v2347_v54  ;;  %v9946_v53 = vadd.f32 %v10730_v1, %v2348_v27  ;;  %v9949_v31 = vadd.f32 %v10731_v30, %v2349_v19  ;;  %v10732_v25 = vld [vmem:[#allocation71_spill] sm:$0xff] }
 0x2c6   :  { %v9954_v11 = vadd.f32 %v10729_v61, %v2350_v57  ;;  %v9957_v43 = vadd.f32 %v10730_v1, %v2351_v37  ;;  %v2479_v10 = vmax.f32 %v2407_v12, 0.0  ;;  %v2480_v22 = vmax.f32 %v2408_v0, 0.0  ;;  %2753 = vst [vmem:[#allocation1 + $0x20] ss:$4 sm:$0xff] %v10732_v25 }
 0x2c7   :  { %v9961_v54 = vadd.f32 %v10731_v30, %v2352_v6  ;;  %v9964_v27 = vadd.f32 %v10729_v61, %v2353_v16  ;;  %v9967_v19 = vadd.f32 %v10730_v1, %v2354_v8  ;;  %v9970_v55 = vadd.f32 %v10731_v30, %v2355_v39 }
 0x2c8   :  { %v9973_v57 = vadd.f32 %v10729_v61, %v2386_v36  ;;  %v9976_v37 = vadd.f32 %v10730_v1, %v2387_v32  ;;  %v9979_v5 = vadd.f32 %v10731_v30, %v2388_v44  ;;  %v2478_v6 = vmax.f32 %v2406_v7, 0.0 }
 0x2c9   :  { %v9982_v49 = vadd.f32 %v10729_v61, %v2389_v4  ;;  %v9985_v16 = vadd.f32 %v10730_v1, %v2390_v24  ;;  %v9988_v8 = vadd.f32 %v10731_v30, %v2391_v9  ;;  %v9991_v39 = vadd.f32 %v10729_v61, %v2392_v20 }
 0x2ca   :  { %v9994_v36 = vadd.f32 %v10730_v1, %v2393_v51  ;;  %v9997_v32 = vadd.f32 %v10731_v30, %v2394_v21  ;;  %v2550_v44 = vpack.c.bf16 %v2479_v10, %v2478_v6  ;;  %v2551_v48 = vpack.c.bf16 %v2480_v22, %v2480_v22 }
 0x2cb   :  { %v10000_v29 = vadd.f32 %v10729_v61, %v2395_v18  ;;  %v10003_v4 = vadd.f32 %v10730_v1, %v2396_v62  ;;  %v2482_v24 = vmax.f32 %v9890_v13, 0.0  ;;  %v2483_v9 = vmax.f32 %v9893_v41, 0.0  ;;  %v10733_v13 = vld [vmem:[#allocation74_spill] sm:$0xff] }
 0x2cc   :  { %v2481_v20 = vmax.f32 %v9887_v35, 0.0  ;;  %v2484_v51 = vmax.f32 %v9896_v23, 0.0  ;;  %v2485_v15 = vmax.f32 %v9899_v58, 0.0  ;;  %v2486_v21 = vmax.f32 %v9902_v52, 0.0  ;;  %v10735_v52 = vld [vmem:[#allocation40_spill] sm:$0xff] }
 0x2cd   :  { %v10012_v38 = vadd.f32 %v10731_v30, %v2397_v46  ;;  %v2487_v18 = vmax.f32 %v9905_v60, 0.0  ;;  %v2488_v62 = vmax.f32 %v9908_v33, 0.0  ;;  %v2489_v47 = vmax.f32 %v9911_v3, 0.0  ;;  %v10017_v61 = vld [vmem:[#allocation1 + $0x20] sm:$0xff]  ;;  %v10019_v7 = vld [vmem:[#allocation1 + $0x28] sm:$0xf] }
 0x2ce   :  { %v2602_v0 = vrot.slane %v2550_v44, 3  ;;  %v2603_v35 = vrot.slane %v2551_v48, 6  ;;  %2814 = vst [vmem:[#allocation1 + $0x20] ss:$4 sm:$0xff] %v10733_v13  ;;  %v2552_v30 = vpack.c.bf16 %v2482_v24, %v2481_v20  ;;  %v2553_v41 = vpack.c.bf16 %v2483_v9, %v2483_v9 }
 0x2cf   :  { %v2604_v23 = vrot.slane %v2551_v48, 1  ;;  %v2638_v9 = vunpack.c.l.b16 %v9835_v26  ;;  %v2554_v6 = vpack.c.bf16 %v2485_v15, %v2484_v51  ;;  %v2545_v12 = vmax.f32 %v9994_v36, 0.0 }
 0x2d0   :  { %v2611_v22 = vsel %vm2608_vm7, %v2550_v44, %v2602_v0  ;;  %v2666_v44 = vrot.slane %v2552_v30, 3  ;;  %v2667_v0 = vrot.slane %v2553_v41, 6  ;;  %v2668_v25 = vrot.slane %v2553_v41, 1 }
 0x2d1   :  { %v2615_v13 = vsel %vm2612_vm8, %v2603_v35, %v2604_v23  ;;  %v2555_v35 = vpack.c.bf16 %v2486_v21, %v2486_v21  ;;  %v2641_v51 = vrot.slane %v2638_v9, 7  ;;  %v2727_v1 = vrot.slane %v2554_v6, 3 }
 0x2d2   :  { %v2616_v20 = vsel %vm844_vm2, %v2611_v22, %v2615_v13  ;;  %v2639_v22 = vunpack.c.h.b16 %v9835_v26  ;;  %v10734_v13 = vld [vmem:[#allocation79_spill] sm:$0xff]  ;;  %v2674_v26 = vsel %vm2608_vm7, %v2552_v30, %v2666_v44  ;;  %v2700_v46 = vunpack.c.l.b16 %v9937_v17 }
 0x2d3   :  { %2624 = vst [vmem:[#allocation1] ss:$4 sm:$0xff] %v2616_v20  ;;  %v2640_v10 = vunpack.c.l.b16 %v10734_v13  ;;  %v2677_v13 = vsel %vm2612_vm8, %v2667_v0, %v2668_v25  ;;  %v2728_v30 = vrot.slane %v2555_v35, 6  ;;  %v2729_v44 = vrot.slane %v2555_v35, 1 }
 0x2d4   :  { %v2644_v15 = vrot.slane %v2639_v22, 7  ;;  %v2678_v23 = vsel %vm844_vm2, %v2674_v26, %v2677_v13  ;;  %v2557_v9 = vpack.c.bf16 %v2489_v47, %v2489_v47  ;;  %v2701_v22 = vunpack.c.h.b16 %v9937_v17  ;;  %v10736_v47 = vld [vmem:[#allocation20_spill] sm:$0xff] }
 0x2d5   :  { %v10046_v20 = vld [vmem:[#allocation1 + $0x20] sm:$0xff]  ;;  %v10048_v24 = vld [vmem:[#allocation1 + $0x28] sm:$0xf]  ;;  %v2646_v21 = vrot.slane %v2640_v10, 7  ;;  %v2556_v10 = vpack.c.bf16 %v2488_v62, %v2487_v18  ;;  %v2702_v26 = vunpack.c.l.b16 %v9951_v56  ;;  %v2735_v3 = vsel %vm2608_vm7, %v2554_v6, %v2727_v1 }
 0x2d6   :  { %2875 = vst [vmem:[#allocation1 + $0x20] ss:$4 sm:$0xff] %v10735_v52  ;;  %v2738_v62 = vsel %vm2612_vm8, %v2728_v30, %v2729_v44  ;;  %v2762_v1 = vunpack.c.h.b16 %v10017_v61 }
 0x2d7   :  { %v2788_v6 = vrot.slane %v2556_v10, 3 }
 0x2da   :  { %v2625_v52 = vld [vmem:[#allocation1] sm:$0xff]  ;;  %v2627_v48 = vld [vmem:[#allocation1 + $0x8] sm:$0xf] }
 0x2db   :  { %v2635_v25 = vunpack.c.l.b16 %v2625_v52  ;;  %v2636_v0 = vunpack.c.h.b16 %v2625_v52  ;;  %v2637_v58 = vunpack.c.l.b16 %v2627_v48  ;;  %2686 = vst [vmem:[#allocation1] ss:$4 sm:$0xff] %v2678_v23 }
 0x2dd   :  { %v2643_v35 = vsel %vm2642_vm9, %v2641_v51, %v2635_v25  ;;  %v2645_v48 = vsel %vm2642_vm9, %v2644_v15, %v2636_v0  ;;  %v2647_v23 = vsel %vm2642_vm9, %v2646_v21, %v2637_v58  ;;  %v10076_v13 = vld [vmem:[#allocation1 + $0x20] sm:$0xff]  ;;  %v10078_v60 = vld [vmem:[#allocation1 + $0x28] sm:$0xf]  ;;  %v2703_v15 = vrot.slane %v2700_v46, 7 }
 0x2de   :  { %v2648_v33 = vpack.c.b16 %v2645_v48, %v2643_v35  ;;  %v2649_v18 = vpack.c.b16 %v2647_v23, %v2647_v23  ;;  %2936 = vst [vmem:[#allocation1 + $0x20] ss:$4 sm:$0xff] %v10736_v47  ;;  %v2761_v58 = vunpack.c.l.b16 %v10017_v61  ;;  %v2705_v25 = vrot.slane %v2701_v22, 7 }
 0x2df   :  { %v2707_v0 = vrot.slane %v2702_v26, 7  ;;  %v2739_v35 = vsel %vm844_vm2, %v2735_v3, %v2738_v62  ;;  %v2789_v47 = vrot.slane %v2557_v9, 6  ;;  %v2790_v46 = vrot.slane %v2557_v9, 1 }
 0x2e0   :  { %v2650_v56 = vrot.slane %v2648_v33, 3  ;;  %v2651_v21 = vrot.slane %v2649_v18, 6  ;;  %v2652_v52 = vrot.slane %v2649_v18, 1  ;;  %v2549_v22 = vmax.f32 %v10012_v38, 0.0 }
 0x2e1   :  { %v10737_v26 = vmax.f32 %v9914_v59, 0.0  ;;  %v10738_v61 = vmax.f32 %v9917_v40, 0.0  ;;  %v2763_v9 = vunpack.c.l.b16 %v10019_v7  ;;  %v2796_v7 = vsel %vm2608_vm7, %v2556_v10, %v2788_v6 }
 0x2e2   :  { %v2655_v30 = vsel %vm2608_vm7, %v2648_v33, %v2650_v56  ;;  %v2658_v44 = vsel %vm2612_vm8, %v2651_v21, %v2652_v52  ;;  %v2687_v48 = vld [vmem:[#allocation1] sm:$0xff]  ;;  %v2689_v23 = vld [vmem:[#allocation1 + $0x8] sm:$0xf]  ;;  %v10739_v33 = vmax.f32 %v9920_v45, 0.0  ;;  %v10740_v56 = vmax.f32 %v9923_v14, 0.0 }
 0x2e3   :  { %v2659_v51 = vsel %vm844_vm2, %v2655_v30, %v2658_v44  ;;  %v2697_v17 = vunpack.c.l.b16 %v2687_v48  ;;  %v2698_v41 = vunpack.c.h.b16 %v2687_v48  ;;  %v2699_v18 = vunpack.c.l.b16 %v2689_v23  ;;  %2747 = vst [vmem:[#allocation1] ss:$4 sm:$0xff] %v2739_v35  ;;  %v10742_v48 = vld [vmem:[#allocation21_spill] sm:$0xff] }
 0x2e4   :  { %v2558_v3 = vpack.c.bf16 %v10738_v61, %v10737_v26  ;;  %v2559_v62 = vpack.c.bf16 %v10739_v33, %v10739_v33  ;;  %2661 = vst [vmem:[#allocation2] sm:$0x7] %v2659_v51  ;;  %v10741_v21 = vmax.f32 %v9926_v42, 0.0  ;;  %v2799_v14 = vsel %vm2612_vm8, %v2789_v47, %v2790_v46 }
 0x2e5   :  { %v2704_v35 = vsel %vm2642_vm9, %v2703_v15, %v2697_v17  ;;  %v2706_v59 = vsel %vm2642_vm9, %v2705_v25, %v2698_v41  ;;  %v2708_v40 = vsel %vm2642_vm9, %v2707_v0, %v2699_v18  ;;  %v10109_v30 = vld [vmem:[#allocation1 + $0x20] sm:$0xff]  ;;  %v10111_v45 = vld [vmem:[#allocation1 + $0x28] sm:$0xf]  ;;  %v10743_v42 = vmax.f32 %v9929_v34, 0.0 }
 0x2e6   :  { %v10104_v52 = vpack.c.bf16 %v10741_v21, %v10740_v56  ;;  %v2709_v44 = vpack.c.b16 %v2706_v59, %v2704_v35  ;;  %v2710_v51 = vpack.c.b16 %v2708_v40, %v2708_v40  ;;  %2997 = vst [vmem:[#allocation1 + $0x20] ss:$4 sm:$0xff] %v10742_v48  ;;  %v10744_v41 = vmax.f32 %v9932_v50, 0.0 }
 0x2e7   :  { %v10119_v17 = vpack.c.bf16 %v10743_v42, %v10743_v42  ;;  %v10745_v15 = vmax.f32 %v9935_v28, 0.0  ;;  %v2764_v0 = vrot.slane %v2761_v58, 7  ;;  %v2766_v23 = vrot.slane %v2762_v1, 7 }
 0x2e8   :  { %v2711_v18 = vrot.slane %v2709_v44, 3  ;;  %v2712_v26 = vrot.slane %v2710_v51, 6  ;;  %v2713_v10 = vrot.slane %v2710_v51, 1  ;;  %v2768_v6 = vrot.slane %v2763_v9, 7 }
 0x2e9   :  { %v10125_v25 = vpack.c.bf16 %v10745_v15, %v10744_v41  ;;  %v2800_v47 = vsel %vm844_vm2, %v2796_v7, %v2799_v14  ;;  %v2822_v46 = vunpack.c.l.b16 %v10046_v20  ;;  %v2823_v34 = vunpack.c.h.b16 %v10046_v20 }
 0x2ea   :  { %v2849_v61 = vrot.slane %v2558_v3, 3  ;;  %v2716_v33 = vsel %vm2608_vm7, %v2709_v44, %v2711_v18  ;;  %v2719_v50 = vsel %vm2612_vm8, %v2712_v26, %v2713_v10  ;;  %v2748_v28 = vld [vmem:[#allocation1] sm:$0xff]  ;;  %v2750_v56 = vld [vmem:[#allocation1 + $0x8] sm:$0xf]  ;;  %v2850_v21 = vrot.slane %v2559_v62, 6 }
 0x2eb   :  { %v2851_v58 = vrot.slane %v2559_v62, 1  ;;  %v2720_v1 = vsel %vm844_vm2, %v2716_v33, %v2719_v50  ;;  %v2758_v35 = vunpack.c.l.b16 %v2748_v28  ;;  %v2759_v59 = vunpack.c.h.b16 %v2748_v28  ;;  %2808 = vst [vmem:[#allocation1] ss:$4 sm:$0xff] %v2800_v47  ;;  %v10752_v47 = vld [vmem:[#allocation22_spill] sm:$0xff] }
 0x2ec   :  { %v2760_v9 = vunpack.c.l.b16 %v2750_v56  ;;  %v10746_v40 = vmax.f32 %v9940_v63, 0.0  ;;  %v10747_v20 = vmax.f32 %v9943_v2, 0.0  ;;  %v10748_v44 = vmax.f32 %v9946_v53, 0.0  ;;  %2722 = vst [vmem:[#allocation2 + $0x3] sm:$0x7] %v2720_v1 }
 0x2ed   :  { %v10749_v14 = vmax.f32 %v9949_v31, 0.0  ;;  %v2824_v48 = vunpack.c.l.b16 %v10048_v24  ;;  %v10750_v42 = vmax.f32 %v9954_v11, 0.0  ;;  %v10751_v63 = vmax.f32 %v9957_v43, 0.0  ;;  %v10159_v18 = vld [vmem:[#allocation1 + $0x20] sm:$0xff]  ;;  %v10161_v31 = vld [vmem:[#allocation1 + $0x28] sm:$0xf] }
 0x2ee   :  { %v10136_v51 = vpack.c.bf16 %v10746_v40, %v10746_v40  ;;  %v10142_v7 = vpack.c.bf16 %v10748_v44, %v10747_v20  ;;  %v2765_v2 = vsel %vm2642_vm9, %v2764_v0, %v2758_v35  ;;  %v2767_v53 = vsel %vm2642_vm9, %v2766_v23, %v2759_v59  ;;  %3058 = vst [vmem:[#allocation1 + $0x20] ss:$4 sm:$0xff] %v10752_v47 }
 0x2ef   :  { %v10147_v62 = vpack.c.bf16 %v10749_v14, %v10749_v14  ;;  %v10154_v41 = vpack.c.bf16 %v10751_v63, %v10750_v42  ;;  %v2769_v15 = vsel %vm2642_vm9, %v2768_v6, %v2760_v9  ;;  %v2770_v26 = vpack.c.b16 %v2767_v53, %v2765_v2 }
 0x2f0   :  { %v2771_v10 = vpack.c.b16 %v2769_v15, %v2769_v15  ;;  %v2857_v24 = vsel %vm2608_vm7, %v2558_v3, %v2849_v61  ;;  %v2860_v11 = vsel %vm2612_vm8, %v2850_v21, %v2851_v58  ;;  %v10753_v43 = vmax.f32 %v9961_v54, 0.0 }
 0x2f1   :  { %v10754_v23 = vmax.f32 %v9964_v27, 0.0  ;;  %v10755_v6 = vmax.f32 %v9967_v19, 0.0  ;;  %v2825_v50 = vrot.slane %v2822_v46, 7  ;;  %v2827_v28 = vrot.slane %v2823_v34, 7 }
 0x2f2   :  { %v10169_v0 = vpack.c.bf16 %v10753_v43, %v10753_v43  ;;  %v2772_v56 = vrot.slane %v2770_v26, 3  ;;  %v2773_v1 = vrot.slane %v2771_v10, 6  ;;  %v2774_v3 = vrot.slane %v2771_v10, 1  ;;  %v2809_v59 = vld [vmem:[#allocation1] sm:$0xff]  ;;  %v2811_v9 = vld [vmem:[#allocation1 + $0x8] sm:$0xf] }
 0x2f3   :  { %v10175_v33 = vpack.c.bf16 %v10755_v6, %v10754_v23  ;;  %v2829_v61 = vrot.slane %v2824_v48, 7  ;;  %v2861_v21 = vsel %vm844_vm2, %v2857_v24, %v2860_v11  ;;  %v2883_v58 = vunpack.c.l.b16 %v10076_v13 }
 0x2f4   :  { %v2884_v54 = vunpack.c.h.b16 %v10076_v13  ;;  %v2910_v35 = vrot.slane %v10104_v52, 3  ;;  %v2777_v27 = vsel %vm2608_vm7, %v2770_v26, %v2772_v56  ;;  %v2780_v19 = vsel %vm2612_vm8, %v2773_v1, %v2774_v3  ;;  %2869 = vst [vmem:[#allocation1] ss:$4 sm:$0xff] %v2861_v21 }
 0x2f5   :  { %v2911_v46 = vrot.slane %v10119_v17, 6  ;;  %v2912_v34 = vrot.slane %v10119_v17, 1  ;;  %v2781_v40 = vsel %vm844_vm2, %v2777_v27, %v2780_v19  ;;  %v2819_v20 = vunpack.c.l.b16 %v2809_v59 }
 0x2f6   :  { %v2820_v44 = vunpack.c.h.b16 %v2809_v59  ;;  %v2821_v14 = vunpack.c.l.b16 %v2811_v9  ;;  %v10756_v13 = vmax.f32 %v9970_v55, 0.0  ;;  %v10757_v42 = vmax.f32 %v9973_v57, 0.0  ;;  %2783 = vst [vmem:[#allocation2 + $0x6] sm:$0x7] %v2781_v40 }
 0x2f7   :  { %v10758_v63 = vmax.f32 %v9976_v37, 0.0  ;;  %v10759_v53 = vmax.f32 %v9979_v5, 0.0  ;;  %v10760_v15 = vmax.f32 %v9982_v49, 0.0  ;;  %v10761_v26 = vmax.f32 %v9985_v16, 0.0 }
 0x2f8   :  { %v10189_v48 = vpack.c.bf16 %v10756_v13, %v10756_v13  ;;  %v2826_v55 = vsel %vm2642_vm9, %v2825_v50, %v2819_v20  ;;  %v2828_v24 = vsel %vm2642_vm9, %v2827_v28, %v2820_v44  ;;  %v2830_v57 = vsel %vm2642_vm9, %v2829_v61, %v2821_v14 }
 0x2f9   :  { %v2590_v2 = vpack.c.bf16 %v10758_v63, %v10757_v42  ;;  %v2591_v17 = vpack.c.bf16 %v10759_v53, %v10759_v53  ;;  %v10202_v10 = vpack.c.bf16 %v10761_v26, %v10760_v15  ;;  %v2885_v37 = vunpack.c.l.b16 %v10078_v60 }
 0x2fa   :  { %v2831_v11 = vpack.c.b16 %v2828_v24, %v2826_v55  ;;  %v2832_v47 = vpack.c.b16 %v2830_v57, %v2830_v57  ;;  %v2918_v5 = vsel %vm2608_vm7, %v10104_v52, %v2910_v35  ;;  %v2921_v49 = vsel %vm2612_vm8, %v2911_v46, %v2912_v34 }
 0x2fb   :  { %v10762_v16 = vmax.f32 %v9988_v8, 0.0  ;;  %v2886_v23 = vrot.slane %v2883_v58, 7  ;;  %v2888_v6 = vrot.slane %v2884_v54, 7  ;;  %v2944_v50 = vunpack.c.l.b16 %v10109_v30  ;;  %v2870_v58 = vld [vmem:[#allocation1] sm:$0xff]  ;;  %v2872_v54 = vld [vmem:[#allocation1 + $0x8] sm:$0xf] }
 0x2fc   :  { %v2833_v28 = vrot.slane %v2831_v11, 3  ;;  %v2834_v56 = vrot.slane %v2832_v47, 6  ;;  %v2835_v1 = vrot.slane %v2832_v47, 1  ;;  %v2971_v60 = vrot.slane %v10125_v25, 3 }
 0x2fd   :  { %v10214_v43 = vpack.c.bf16 %v10762_v16, %v10762_v16  ;;  %v2890_v3 = vrot.slane %v2885_v37, 7  ;;  %v2922_v61 = vsel %vm844_vm2, %v2918_v5, %v2921_v49  ;;  %v2945_v52 = vunpack.c.h.b16 %v10109_v30  ;;  %v10243_v5 = vld [vmem:[#allocation1 + $0x20] sm:$0xff] }
 0x2fe   :  { %v2946_v21 = vunpack.c.l.b16 %v10111_v45  ;;  %v2838_v8 = vsel %vm2608_vm7, %v2831_v11, %v2833_v28  ;;  %v2841_v35 = vsel %vm2612_vm8, %v2834_v56, %v2835_v1  ;;  %v2972_v27 = vrot.slane %v10136_v51, 6  ;;  %2930 = vst [vmem:[#allocation1] ss:$4 sm:$0xff] %v2922_v61  ;;  %v10251_v56 = vld [vmem:[#allocation1 + $0x28] sm:$0xf] }
 0x2ff   :  { %v2973_v19 = vrot.slane %v10136_v51, 1  ;;  %v2842_v59 = vsel %vm844_vm2, %v2838_v8, %v2841_v35  ;;  %v2880_v9 = vunpack.c.l.b16 %v2870_v58  ;;  %v2881_v46 = vunpack.c.h.b16 %v2870_v58 }
 0x300   :  { %v2882_v34 = vunpack.c.l.b16 %v2872_v54  ;;  %v10763_v30 = vmax.f32 %v9991_v39, 0.0  ;;  %2844 = vst [vmem:[#allocation2 + $0x9] sm:$0x7] %v2842_v59  ;;  %v2947_v40 = vrot.slane %v2944_v50, 7  ;;  %v2979_v20 = vsel %vm2608_vm7, %v10125_v25, %v2971_v60 }
 0x301   :  { %v3096_v44 = vrot.slane %v2590_v2, 3  ;;  %v2887_v51 = vsel %vm2642_vm9, %v2886_v23, %v2880_v9  ;;  %v2889_v14 = vsel %vm2642_vm9, %v2888_v6, %v2881_v46  ;;  %v3097_v42 = vrot.slane %v2591_v17, 6 }
 0x302   :  { %v10230_v45 = vpack.c.bf16 %v2545_v12, %v10763_v30  ;;  %v2891_v13 = vsel %vm2642_vm9, %v2890_v3, %v2882_v34  ;;  %v2892_v63 = vpack.c.b16 %v2889_v14, %v2887_v51  ;;  %v2982_v39 = vsel %vm2612_vm8, %v2972_v27, %v2973_v19 }
 0x303   :  { %v2893_v53 = vpack.c.b16 %v2891_v13, %v2891_v13  ;;  %v3098_v36 = vrot.slane %v2591_v17, 1  ;;  %v2949_v12 = vrot.slane %v2945_v52, 7  ;;  %v2951_v15 = vrot.slane %v2946_v21, 7 }
 0x304   :  { %v3032_v26 = vrot.slane %v10142_v7, 3  ;;  %v3033_v55 = vrot.slane %v10147_v62, 6  ;;  %v2894_v25 = vrot.slane %v2892_v63, 3  ;;  %v3034_v37 = vrot.slane %v10147_v62, 1 }
 0x305   :  { %v2895_v24 = vrot.slane %v2893_v53, 6  ;;  %v2896_v57 = vrot.slane %v2893_v53, 1  ;;  %v2983_v11 = vsel %vm844_vm2, %v2979_v20, %v2982_v39  ;;  %v3005_v47 = vunpack.c.l.b16 %v10159_v18  ;;  %v2931_v6 = vld [vmem:[#allocation1] sm:$0xff]  ;;  %v2933_v50 = vld [vmem:[#allocation1 + $0x8] sm:$0xf] }
 0x306   :  { %v3108_v49 = vsel %vm2608_vm7, %v2590_v2, %v3096_v44  ;;  %v3111_v17 = vsel %vm2612_vm8, %v3097_v42, %v3098_v36  ;;  %v2899_v16 = vsel %vm2608_vm7, %v2892_v63, %v2894_v25  ;;  %v3006_v28 = vunpack.c.h.b16 %v10159_v18  ;;  %2991 = vst [vmem:[#allocation1] ss:$4 sm:$0xff] %v2983_v11 }
 0x307   :  { %v2902_v23 = vsel %vm2612_vm8, %v2895_v24, %v2896_v57  ;;  %v3007_v62 = vunpack.c.l.b16 %v10161_v31  ;;  %v2941_v60 = vunpack.c.l.b16 %v2931_v6  ;;  %v2942_v3 = vunpack.c.h.b16 %v2931_v6 }
 0x308   :  { %v2903_v1 = vsel %vm844_vm2, %v2899_v16, %v2902_v23  ;;  %v2943_v61 = vunpack.c.l.b16 %v2933_v50  ;;  %v3040_v2 = vsel %vm2608_vm7, %v10142_v7, %v3032_v26  ;;  %v3043_v52 = vsel %vm2612_vm8, %v3033_v55, %v3034_v37 }
 0x309   :  { %2905 = vst [vmem:[#allocation2 + $0xc] sm:$0x7] %v2903_v1  ;;  %v3112_v21 = vsel %vm844_vm2, %v3108_v49, %v3111_v17  ;;  %v3157_v18 = vrot.slane %v10202_v10, 3  ;;  %v2948_v31 = vsel %vm2642_vm9, %v2947_v40, %v2941_v60  ;;  %v2950_v8 = vsel %vm2642_vm9, %v2949_v12, %v2942_v3 }
 0x30a   :  { %v2952_v35 = vsel %vm2642_vm9, %v2951_v15, %v2943_v61  ;;  %3119 = vst [vmem:[#allocation1 + $0x20] ss:$4 sm:$0xff] %v3112_v21  ;;  %v3158_v58 = vrot.slane %v10214_v43, 6  ;;  %v10764_v54 = vmax.f32 %v9997_v32, 0.0  ;;  %v2953_v7 = vpack.c.b16 %v2950_v8, %v2948_v31 }
 0x30b   :  { %v2954_v19 = vpack.c.b16 %v2952_v35, %v2952_v35  ;;  %v3159_v59 = vrot.slane %v10214_v43, 1  ;;  %v3008_v9 = vrot.slane %v3005_v47, 7  ;;  %v3010_v46 = vrot.slane %v3006_v28, 7 }
 0x30c   :  { %v2595_v27 = vpack.c.bf16 %v10764_v54, %v10764_v54  ;;  %v3012_v34 = vrot.slane %v3007_v62, 7  ;;  %v3044_v30 = vsel %vm844_vm2, %v3040_v2, %v3043_v52  ;;  %v2955_v40 = vrot.slane %v2953_v7, 3 }
 0x30d   :  { %v2956_v20 = vrot.slane %v2954_v19, 6  ;;  %v2957_v44 = vrot.slane %v2954_v19, 1  ;;  %v3066_v51 = vunpack.c.l.b16 %v10243_v5  ;;  %v3067_v14 = vunpack.c.h.b16 %v10243_v5  ;;  %v2992_v53 = vld [vmem:[#allocation1] sm:$0xff]  ;;  %v2994_v39 = vld [vmem:[#allocation1 + $0x8] sm:$0xf] }
 0x30e   :  { %v3093_v32 = vrot.slane %v10154_v41, 3  ;;  %v3169_v13 = vsel %vm2608_vm7, %v10202_v10, %v3157_v18  ;;  %v3172_v42 = vsel %vm2612_vm8, %v3158_v58, %v3159_v59  ;;  %v2960_v43 = vsel %vm2608_vm7, %v2953_v7, %v2955_v40  ;;  %3052 = vst [vmem:[#allocation1] ss:$4 sm:$0xff] %v3044_v30 }
 0x30f   :  { %v2963_v63 = vsel %vm2612_vm8, %v2956_v20, %v2957_v44  ;;  %v3094_v36 = vrot.slane %v10169_v0, 6  ;;  %v3095_v12 = vrot.slane %v10169_v0, 1  ;;  %v3002_v26 = vunpack.c.l.b16 %v2992_v53 }
 0x310   :  { %v2964_v15 = vsel %vm844_vm2, %v2960_v43, %v2963_v63  ;;  %v3003_v55 = vunpack.c.h.b16 %v2992_v53  ;;  %v3004_v25 = vunpack.c.l.b16 %v2994_v39  ;;  %v10765_v10 = vmax.f32 %v10000_v29, 0.0 }
 0x311   :  { %v10766_v24 = vmax.f32 %v10003_v4, 0.0  ;;  %v10288_v37 = vpack.c.bf16 %v2549_v22, %v2549_v22  ;;  %2966 = vst [vmem:[#allocation2 + $0xf] sm:$0x7] %v2964_v15  ;;  %v3068_v0 = vunpack.c.l.b16 %v10251_v56  ;;  %v3120_v11 = vld [vmem:[#allocation1 + $0x20] sm:$0xff]  ;;  %v3122_v47 = vld [vmem:[#allocation1 + $0x28] sm:$0xf]  ;;  %v3173_v5 = vsel %vm844_vm2, %v3169_v13, %v3172_v42 }
 0x312   :  { %v3009_v49 = vsel %vm2642_vm9, %v3008_v9, %v3002_v26  ;;  %v3011_v29 = vsel %vm2642_vm9, %v3010_v46, %v3003_v55  ;;  %v3013_v4 = vsel %vm2642_vm9, %v3012_v34, %v3004_v25  ;;  %3180 = vst [vmem:[#allocation1 + $0x20] ss:$4 sm:$0xff] %v3173_v5  ;;  %v3218_v17 = vrot.slane %v10230_v45, 3  ;;  %v10771_v5 = vld [vmem:[#allocation94_spill] sm:$0xff] }
 0x313   :  { %v10283_v57 = vpack.c.bf16 %v10766_v24, %v10765_v10  ;;  %v3014_v38 = vpack.c.b16 %v3011_v29, %v3009_v49  ;;  %v3015_v16 = vpack.c.b16 %v3013_v4, %v3013_v4  ;;  %v3101_v22 = vsel %vm2608_vm7, %v10154_v41, %v3093_v32  ;;  %v10768_v32 = vld [vmem:[#allocation90_spill] sm:$0xff] }
 0x314   :  { %v3104_v23 = vsel %vm2612_vm8, %v3094_v36, %v3095_v12  ;;  %v3069_v6 = vrot.slane %v3066_v51, 7  ;;  %v3071_v50 = vrot.slane %v3067_v14, 7  ;;  %v3219_v28 = vrot.slane %v2595_v27, 6  ;;  %v10767_v51 = vld [vmem:[#allocation81_spill] sm:$0xff] }
 0x315   :  { %v3220_v62 = vrot.slane %v2595_v27, 1  ;;  %v3016_v56 = vrot.slane %v3014_v38, 3  ;;  %v3017_v1 = vrot.slane %v3015_v16, 6  ;;  %v3018_v60 = vrot.slane %v3015_v16, 1  ;;  %v3053_v31 = vld [vmem:[#allocation1] sm:$0xff] }
 0x316   :  { %v3073_v3 = vrot.slane %v3068_v0, 7  ;;  %v3105_v61 = vsel %vm844_vm2, %v3101_v22, %v3104_v23  ;;  %v3154_v2 = vrot.slane %v10175_v33, 3  ;;  %v3230_v52 = vsel %vm2608_vm7, %v10230_v45, %v3218_v17  ;;  %v3055_v8 = vld [vmem:[#allocation1 + $0x8] sm:$0xf] }
 0x317   :  { %v3233_v21 = vsel %vm2612_vm8, %v3219_v28, %v3220_v62  ;;  %v3021_v41 = vsel %vm2608_vm7, %v3014_v38, %v3016_v56  ;;  %v3024_v18 = vsel %vm2612_vm8, %v3017_v1, %v3018_v60  ;;  %v3155_v35 = vrot.slane %v10189_v48, 6  ;;  %3113 = vst [vmem:[#allocation1] ss:$4 sm:$0xff] %v3105_v61 }
 0x318   :  { %v3156_v58 = vrot.slane %v10189_v48, 1  ;;  %v3025_v54 = vsel %vm844_vm2, %v3021_v41, %v3024_v18  ;;  %v3063_v27 = vunpack.c.l.b16 %v3053_v31  ;;  %v3064_v7 = vunpack.c.h.b16 %v3053_v31  ;;  %v10774_v31 = vld [vmem:[#allocation89_spill] sm:$0xff] }
 0x319   :  { %v3065_v19 = vunpack.c.l.b16 %v3055_v8  ;;  %3027 = vst [vmem:[#allocation2 + $0x12] sm:$0x7] %v3025_v54  ;;  %v3127_v45 = vunpack.c.l.b16 %v3120_v11  ;;  %v3128_v59 = vunpack.c.h.b16 %v3120_v11  ;;  %v3129_v9 = vunpack.c.l.b16 %v3122_v47  ;;  %v3181_v46 = vld [vmem:[#allocation1 + $0x20] sm:$0xff]  ;;  %v3183_v34 = vld [vmem:[#allocation1 + $0x28] sm:$0xf] }
 0x31a   :  { %v3234_v30 = vsel %vm844_vm2, %v3230_v52, %v3233_v21  ;;  %v3070_v40 = vsel %vm2642_vm9, %v3069_v6, %v3063_v27  ;;  %v3072_v20 = vsel %vm2642_vm9, %v3071_v50, %v3064_v7  ;;  %v3279_v44 = vrot.slane %v10283_v57, 3  ;;  %v10772_v6 = vld [vmem:[#allocation86_spill] sm:$0xff] }
 0x31b   :  { %v3074_v48 = vsel %vm2642_vm9, %v3073_v3, %v3065_v19  ;;  %3241 = vst [vmem:[#allocation1 + $0x20] ss:$4 sm:$0xff] %v3234_v30  ;;  %v2512_v14 = vmax.f32 %v10767_v51, 0.0  ;;  %v10769_v13 = vrot.slane %v10768_v32, 1  ;;  %v10770_v42 = vrot.slane %v10768_v32, 6  ;;  %v7817_v32 = vld [vmem:[#allocation8 + $0x78] sm:$0xff] }
 0x31c   :  { %v3075_v63 = vpack.c.b16 %v3072_v20, %v3070_v40  ;;  %v3076_v53 = vpack.c.b16 %v3074_v48, %v3074_v48  ;;  %v3162_v39 = vsel %vm2608_vm7, %v10175_v33, %v3154_v2  ;;  %v3165_v36 = vsel %vm2612_vm8, %v3155_v35, %v3156_v58  ;;  %5741 = vmatpush.bf16.msra.mxu3 %v7817_v32 }
 0x31d   :  { %v3226_v43 = vsel %vm2612_vm8, %v10770_v42, %v10769_v13  ;;  %v3280_v12 = vrot.slane %v10288_v37, 6  ;;  %v3281_v15 = vrot.slane %v10288_v37, 1  ;;  %v3130_v10 = vrot.slane %v3127_v45, 7 }
 0x31e   :  { %v3077_v26 = vrot.slane %v3075_v63, 3  ;;  %v3078_v55 = vrot.slane %v3076_v53, 6  ;;  %v3079_v25 = vrot.slane %v3076_v53, 1  ;;  %v3132_v24 = vrot.slane %v3128_v59, 7  ;;  %v3114_v4 = vld [vmem:[#allocation1] sm:$0xff] }
 0x31f   :  { %v3134_v0 = vrot.slane %v3129_v9, 7  ;;  %v3291_v11 = vsel %vm2608_vm7, %v10283_v57, %v3279_v44  ;;  %v3294_v47 = vsel %vm2612_vm8, %v3280_v12, %v3281_v15  ;;  %v2513_v49 = vmax.f32 %v10771_v5, 0.0  ;;  %v3116_v17 = vld [vmem:[#allocation1 + $0x8] sm:$0xf]  ;;  %v7833_v12 = vld [vmem:[#allocation8 + $0xf8] sm:$0xff]  ;;  %v7808_v15 = vld [vmem:[#allocation8 + $0x30] sm:$0xff] }
 0x320   :  { %v3082_v33 = vsel %vm2608_vm7, %v3075_v63, %v3077_v26  ;;  %v3085_v29 = vsel %vm2612_vm8, %v3078_v55, %v3079_v25  ;;  %v3166_v37 = vsel %vm844_vm2, %v3162_v39, %v3165_v36  ;;  %v3124_v16 = vunpack.c.l.b16 %v3114_v4  ;;  %v7816_v26 = vld [vmem:[#allocation8 + $0x70] sm:$0xff]  ;;  %5767 = vmatpush.bf16.msrb.mxu2 %v7833_v12 }
 0x321   :  { %v3086_v38 = vsel %vm844_vm2, %v3082_v33, %v3085_v29  ;;  %v3125_v22 = vunpack.c.h.b16 %v3114_v4  ;;  %v3126_v23 = vunpack.c.l.b16 %v3116_v17  ;;  %3174 = vst [vmem:[#allocation1] ss:$4 sm:$0xff] %v3166_v37  ;;  %v10773_v57 = vmax.f32 %v10772_v6, 0.0  ;;  %5742 = vmatpush.bf16.msra.mxu3 %v7816_v26  ;;  %v7804_v12 = vld [vmem:[#allocation8 + $0x10] sm:$0xff] }
 0x322   :  { %3088 = vst [vmem:[#allocation2 + $0x15] sm:$0x7] %v3086_v38  ;;  %v3188_v28 = vunpack.c.l.b16 %v3181_v46  ;;  %v3189_v62 = vunpack.c.h.b16 %v3181_v46  ;;  %v3242_v56 = vld [vmem:[#allocation1 + $0x20] sm:$0xff]  ;;  %v3244_v1 = vld [vmem:[#allocation1 + $0x28] sm:$0xf]  ;;  %v3295_v60 = vsel %vm844_vm2, %v3291_v11, %v3294_v47  ;;  %v3131_v3 = vsel %vm2642_vm9, %v3130_v10, %v3124_v16  ;;  %v7824_v10 = vld [vmem:[#allocation8 + $0xb0] sm:$0xff] }
 0x323   :  { %v2572_v50 = vpack.c.bf16 %v2512_v14, %v10773_v57  ;;  %v3133_v61 = vsel %vm2642_vm9, %v3132_v24, %v3125_v22  ;;  %v3135_v2 = vsel %vm2642_vm9, %v3134_v0, %v3126_v23  ;;  %v3190_v52 = vunpack.c.l.b16 %v3183_v34  ;;  %3302 = vst [vmem:[#allocation1 + $0x20] ss:$4 sm:$0xff] %v3295_v60  ;;  %v7809_v14 = vld [vmem:[#allocation8 + $0x38] sm:$0xff]  ;;  %v7832_v11 = vld [vmem:[#allocation8 + $0xf0] sm:$0xff]  ;;  %v7807_v38 = vld [vmem:[#allocation8 + $0x28] sm:$0xff] }
 0x324   :  { %v2573_v21 = vpack.c.bf16 %v2513_v49, %v2513_v49  ;;  %v3136_v41 = vpack.c.b16 %v3133_v61, %v3131_v3  ;;  %v3137_v18 = vpack.c.b16 %v3135_v2, %v3135_v2  ;;  %v3227_v8 = vsel %vm844_vm2, %v10774_v31, %v3226_v43  ;;  %v7825_v43 = vld [vmem:[#allocation8 + $0xb8] sm:$0xff]  ;;  %5728 = vmatpush.bf16.msrb.mxu1 %v7809_v14  ;;  %v7815_v16 = vld [vmem:[#allocation8 + $0x68] sm:$0xff]  ;;  %v7806_v31 = vld [vmem:[#allocation8 + $0x20] sm:$0xff] }
 0x325   :  { %v3276_v27 = vrot.slane %v2572_v50, 3  ;;  %v3191_v7 = vrot.slane %v3188_v28, 7  ;;  %v3193_v19 = vrot.slane %v3189_v62, 7  ;;  %v3195_v45 = vrot.slane %v3190_v52, 7  ;;  %5754 = vmatpush.bf16.msrb.mxu0 %v7825_v43  ;;  %v7823_v28 = vld [vmem:[#allocation8 + $0xa8] sm:$0xff]  ;;  %5768 = vmatpush.bf16.msrb.mxu2 %v7832_v11  ;;  %v7821_v14 = vld [vmem:[#allocation8 + $0x98] sm:$0xff] }
 0x326   :  { %v3138_v35 = vrot.slane %v3136_v41, 3  ;;  %v3139_v58 = vrot.slane %v3137_v18, 6  ;;  %v3140_v54 = vrot.slane %v3137_v18, 1  ;;  %v3277_v59 = vrot.slane %v2573_v21, 6  ;;  %v7831_v3 = vld [vmem:[#allocation8 + $0xe8] sm:$0xff]  ;;  %5743 = vmatpush.bf16.msra.mxu3 %v7815_v16  ;;  %v7818_v16 = vld [vmem:[#allocation8 + $0x80] sm:$0xff] }
 0x327   :  { %v3278_v9 = vrot.slane %v2573_v21, 1  ;;  %v3249_v13 = vunpack.c.l.b16 %v3242_v56  ;;  %v3250_v42 = vunpack.c.h.b16 %v3242_v56  ;;  %v3251_v36 = vunpack.c.l.b16 %v3244_v1 }
 0x328   :  { %v3143_v46 = vsel %vm2608_vm7, %v3136_v41, %v3138_v35  ;;  %v3146_v34 = vsel %vm2612_vm8, %v3139_v58, %v3140_v54  ;;  %v3175_v30 = vld [vmem:[#allocation1] sm:$0xff]  ;;  %v3177_v40 = vld [vmem:[#allocation1 + $0x8] sm:$0xf]  ;;  %v3284_v24 = vsel %vm2608_vm7, %v2572_v50, %v3276_v27  ;;  %5729 = vmatpush.bf16.msrb.mxu1 %v7808_v15  ;;  %v7812_v15 = vld [vmem:[#allocation8 + $0x50] sm:$0xff] }
 0x329   :  { %v3147_v20 = vsel %vm844_vm2, %v3143_v46, %v3146_v34  ;;  %v3185_v48 = vunpack.c.l.b16 %v3175_v30  ;;  %v3186_v44 = vunpack.c.h.b16 %v3175_v30  ;;  %v3187_v51 = vunpack.c.l.b16 %v3177_v40  ;;  %3235 = vst [vmem:[#allocation1] ss:$4 sm:$0xff] %v3227_v8  ;;  %5755 = vmatpush.bf16.msrb.mxu0 %v7824_v10  ;;  %v7814_v8 = vld [vmem:[#allocation8 + $0x60] sm:$0xff]  ;;  %5769 = vmatpush.bf16.msrb.mxu2 %v7831_v3  ;;  %v3333_v34 = vld [vmem:[#allocation2] sm:$0xff]  ;;  %v7805_v30 = vld [vmem:[#allocation8 + $0x18] sm:$0xff] }
 0x32a   :  { %3149 = vst [vmem:[#allocation2 + $0x18] sm:$0x7] %v3147_v20  ;;  %v3287_v0 = vsel %vm2612_vm8, %v3277_v59, %v3278_v9  ;;  %v3252_v33 = vrot.slane %v3249_v13, 7  ;;  %v3303_v29 = vld [vmem:[#allocation1 + $0x20] sm:$0xff]  ;;  %v3254_v4 = vrot.slane %v3250_v42, 7  ;;  %v3256_v17 = vrot.slane %v3251_v36, 7  ;;  %5744 = vmatpush.bf16.msra.mxu3 %v7814_v8 }
 0x32b   :  { %v3192_v63 = vsel %vm2642_vm9, %v3191_v7, %v3185_v48  ;;  %v3194_v53 = vsel %vm2642_vm9, %v3193_v19, %v3186_v44  ;;  %v3196_v39 = vsel %vm2642_vm9, %v3195_v45, %v3187_v51  ;;  %v3305_v37 = vld [vmem:[#allocation1 + $0x28] sm:$0xf]  ;;  %v3288_v22 = vsel %vm844_vm2, %v3284_v24, %v3287_v0  ;;  %v7822_v54 = vld [vmem:[#allocation8 + $0xa0] sm:$0xff]  ;;  %v7813_v40 = vld [vmem:[#allocation8 + $0x58] sm:$0xff] }
 0x32c   :  { %v3197_v55 = vpack.c.b16 %v3194_v53, %v3192_v63  ;;  %v3198_v25 = vpack.c.b16 %v3196_v39, %v3196_v39  ;;  %v3310_v61 = vunpack.c.l.b16 %v3303_v29  ;;  %v3311_v2 = vunpack.c.h.b16 %v3303_v29  ;;  %5730 = vmatpush.bf16.msrb.mxu1 %v7807_v38  ;;  %v7830_v27 = vld [vmem:[#allocation8 + $0xe0] sm:$0xff]  ;;  %v7829_v63 = vld [vmem:[#allocation8 + $0xd8] sm:$0xff]  ;;  %v7828_v10 = vld [vmem:[#allocation8 + $0xd0] sm:$0xff] }
 0x32d   :  { %v3312_v18 = vunpack.c.l.b16 %v3305_v37  ;;  %5756 = vmatpush.bf16.msrb.mxu0 %v7823_v28  ;;  %5770 = vmatpush.bf16.msrb.mxu2 %v7830_v27  ;;  %v7819_v29 = vld [vmem:[#allocation8 + $0x88] sm:$0xff]  ;;  %v7802_v37 = vld [vmem:[#allocation8] sm:$0xff]  ;;  %v7840_v28 = vld [vmem:[#allocation8 + $0x130] sm:$0xff] }
 0x32e   :  { %v3199_v47 = vrot.slane %v3197_v55, 3  ;;  %v3200_v5 = vrot.slane %v3198_v25, 6  ;;  %v3201_v49 = vrot.slane %v3198_v25, 1  ;;  %v3313_v59 = vrot.slane %v3310_v61, 7  ;;  %5745 = vmatpush.bf16.msra.mxu3 %v7813_v40  ;;  %v7820_v25 = vld [vmem:[#allocation8 + $0x90] sm:$0xff]  ;;  %v7810_v38 = vld [vmem:[#allocation8 + $0x40] sm:$0xff] }
 0x32f   :  { %v3315_v9 = vrot.slane %v3311_v2, 7  ;;  %v3317_v46 = vrot.slane %v3312_v18, 7  ;;  %v7856_v3 = vld [vmem:[#allocation8 + $0x1b0] sm:$0xff]  ;;  %v7863_v18 = vld [vmem:[#allocation8 + $0x1e8] sm:$0xff]  ;;  %v7846_v8 = vld [vmem:[#allocation8 + $0x160] sm:$0xff] }
 0x330   :  { %v3204_v23 = vsel %vm2608_vm7, %v3197_v55, %v3199_v47  ;;  %v3207_v6 = vsel %vm2612_vm8, %v3200_v5, %v3201_v49  ;;  %v3236_v57 = vld [vmem:[#allocation1] sm:$0xff]  ;;  %v3238_v50 = vld [vmem:[#allocation1 + $0x8] sm:$0xf]  ;;  %5731 = vmatpush.bf16.msrb.mxu1 %v7806_v31  ;;  %v7864_v61 = vld [vmem:[#allocation8 + $0x1f0] sm:$0xff] }
 0x331   :  { %v3208_v62 = vsel %vm844_vm2, %v3204_v23, %v3207_v6  ;;  %v3246_v56 = vunpack.c.l.b16 %v3236_v57  ;;  %v3247_v1 = vunpack.c.h.b16 %v3236_v57  ;;  %v3248_v60 = vunpack.c.l.b16 %v3238_v50  ;;  %3296 = vst [vmem:[#allocation1] ss:$4 sm:$0xff] %v3288_v22  ;;  %5757 = vmatpush.bf16.msrb.mxu0 %v7822_v54  ;;  %5771 = vmatpush.bf16.msrb.mxu2 %v7829_v63  ;;  %v7803_v47 = vld [vmem:[#allocation8 + $0x8] sm:$0xff]  ;;  %v7841_v22 = vld [vmem:[#allocation8 + $0x138] sm:$0xff]  ;;  %v7826_v23 = vld [vmem:[#allocation8 + $0xc0] sm:$0xff] }
 0x332   :  { %3210 = vst [vmem:[#allocation2 + $0x1b] sm:$0x7] %v3208_v62  ;;  %5746 = vmatpush.bf16.msra.mxu3 %v7812_v15  ;;  %v7811_v5 = vld [vmem:[#allocation8 + $0x48] sm:$0xff]  ;;  %v7849_v6 = vld [vmem:[#allocation8 + $0x178] sm:$0xff]  ;;  %v7838_v31 = vld [vmem:[#allocation8 + $0x120] sm:$0xff] }
 0x333   :  { %v3253_v52 = vsel %vm2642_vm9, %v3252_v33, %v3246_v56  ;;  %v3255_v21 = vsel %vm2642_vm9, %v3254_v4, %v3247_v1  ;;  %v3257_v41 = vsel %vm2642_vm9, %v3256_v17, %v3248_v60  ;;  %v7827_v17 = vld [vmem:[#allocation8 + $0xc8] sm:$0xff]  ;;  %v7857_v57 = vld [vmem:[#allocation8 + $0x1b8] sm:$0xff]  ;;  %v7848_v1 = vld [vmem:[#allocation8 + $0x170] sm:$0xff] }
 0x334   :  { %v3258_v35 = vpack.c.b16 %v3255_v21, %v3253_v52  ;;  %v3259_v58 = vpack.c.b16 %v3257_v41, %v3257_v41  ;;  %5732 = vmatpush.bf16.msrb.mxu1 %v7805_v30  ;;  %v7865_v50 = vld [vmem:[#allocation8 + $0x1f8] sm:$0xff]  ;;  %v7839_v52 = vld [vmem:[#allocation8 + $0x128] sm:$0xff]  ;;  %v7836_v30 = vld [vmem:[#allocation8 + $0x110] sm:$0xff] }
 0x335   :  { %5758 = vmatpush.bf16.msrb.mxu0 %v7821_v14  ;;  %5772 = vmatpush.bf16.msrb.mxu2 %v7828_v10  ;;  %v7847_v21 = vld [vmem:[#allocation8 + $0x168] sm:$0xff]  ;;  %v7837_v54 = vld [vmem:[#allocation8 + $0x118] sm:$0xff]  ;;  %v7844_v40 = vld [vmem:[#allocation8 + $0x150] sm:$0xff] }
 0x336   :  { %v3260_v7 = vrot.slane %v3258_v35, 3  ;;  %v3261_v19 = vrot.slane %v3259_v58, 6  ;;  %v3262_v45 = vrot.slane %v3259_v58, 1  ;;  %5747 = vmatpush.bf16.msra.mxu3 %v7811_v5  ;;  %v7855_v41 = vld [vmem:[#allocation8 + $0x1a8] sm:$0xff]  ;;  %v7862_v58 = vld [vmem:[#allocation8 + $0x1e0] sm:$0xff]  ;;  %v7872_v15 = vld [vmem:[#allocation8 + $0x230] sm:$0xff] }
 0x337   :  { %v7851_v14 = vld [vmem:[#allocation8 + $0x188] sm:$0xff]  ;;  %v7850_v63 = vld [vmem:[#allocation8 + $0x180] sm:$0xff] }
 0x338   :  { %v3265_v20 = vsel %vm2608_vm7, %v3258_v35, %v3260_v7  ;;  %v3268_v48 = vsel %vm2612_vm8, %v3261_v19, %v3262_v45  ;;  %v3297_v44 = vld [vmem:[#allocation1] sm:$0xff]  ;;  %v3299_v51 = vld [vmem:[#allocation1 + $0x8] sm:$0xf]  ;;  %5733 = vmatpush.bf16.msrb.mxu1 %v7804_v12  ;;  %v3334_v45 = vld [vmem:[#allocation2 + $0x8] sm:$0xff] }
 0x339   :  { %v3269_v32 = vsel %vm844_vm2, %v3265_v20, %v3268_v48  ;;  %v3307_v13 = vunpack.c.l.b16 %v3297_v44  ;;  %v3308_v42 = vunpack.c.h.b16 %v3297_v44  ;;  %v3309_v43 = vunpack.c.l.b16 %v3299_v51  ;;  %3919 = vst [vmem:[#allocation1] ss:$9 sm:$0xff] %v3333_v34  ;;  %5759 = vmatpush.bf16.msrb.mxu0 %v7820_v25  ;;  %5773 = vmatpush.bf16.msrb.mxu2 %v7827_v17  ;;  %v7854_v35 = vld [vmem:[#allocation8 + $0x1a0] sm:$0xff]  ;;  %v7861_v34 = vld [vmem:[#allocation8 + $0x1d8] sm:$0xff]  ;;  %v7852_v20 = vld [vmem:[#allocation8 + $0x190] sm:$0xff] }
 0x33a   :  { %3271 = vst [vmem:[#allocation2 + $0x1e] sm:$0x7] %v3269_v32  ;;  %5748 = vmatpush.bf16.msra.mxu3 %v7810_v38  ;;  %v7860_v48 = vld [vmem:[#allocation8 + $0x1d0] sm:$0xff]  ;;  %v7835_v44 = vld [vmem:[#allocation8 + $0x108] sm:$0xff]  ;;  %v7897_v12 = vld [vmem:[#allocation8 + $0x2f8] sm:$0xff] }
 0x33b   :  { %v3314_v53 = vsel %vm2642_vm9, %v3313_v59, %v3307_v13  ;;  %v3316_v39 = vsel %vm2642_vm9, %v3315_v9, %v3308_v42  ;;  %v3318_v36 = vsel %vm2642_vm9, %v3317_v46, %v3309_v43  ;;  %v7845_v59 = vld [vmem:[#allocation8 + $0x158] sm:$0xff]  ;;  %v7843_v51 = vld [vmem:[#allocation8 + $0x148] sm:$0xff]  ;;  %v7834_v13 = vld [vmem:[#allocation8 + $0x100] sm:$0xff] }
 0x33c   :  { %v3319_v26 = vpack.c.b16 %v3316_v39, %v3314_v53  ;;  %v3320_v55 = vpack.c.b16 %v3318_v36, %v3318_v36  ;;  %5734 = vmatpush.bf16.msrb.mxu1 %v7803_v47  ;;  %v7853_v46 = vld [vmem:[#allocation8 + $0x198] sm:$0xff]  ;;  %v7859_v32 = vld [vmem:[#allocation8 + $0x1c8] sm:$0xff]  ;;  %v7842_v42 = vld [vmem:[#allocation8 + $0x140] sm:$0xff] }
 0x33d   :  { %5760 = vmatpush.bf16.msrb.mxu0 %v7819_v29  ;;  %5774 = vmatpush.bf16.msrb.mxu2 %v7826_v23  ;;  %v7873_v43 = vld [vmem:[#allocation8 + $0x238] sm:$0xff]  ;;  %v7858_v53 = vld [vmem:[#allocation8 + $0x1c0] sm:$0xff]  ;;  %v7896_v25 = vld [vmem:[#allocation8 + $0x2f0] sm:$0xff] }
 0x33e   :  { %v3321_v24 = vrot.slane %v3319_v26, 3  ;;  %v3322_v0 = vrot.slane %v3320_v55, 6  ;;  %v3323_v11 = vrot.slane %v3320_v55, 1  ;;  %5793 = vmatpush.bf16.msrb.mxu3 %v7849_v6  ;;  %v7881_v39 = vld [vmem:[#allocation8 + $0x278] sm:$0xff]  ;;  %v7888_v55 = vld [vmem:[#allocation8 + $0x2b0] sm:$0xff]  ;;  %v7871_v10 = vld [vmem:[#allocation8 + $0x228] sm:$0xff] }
 0x33f   :  { %v7889_v36 = vld [vmem:[#allocation8 + $0x2b8] sm:$0xff]  ;;  %v7870_v47 = vld [vmem:[#allocation8 + $0x220] sm:$0xff]  ;;  %v7868_v38 = vld [vmem:[#allocation8 + $0x210] sm:$0xff] }
 0x340   :  { %v3326_v49 = vsel %vm2608_vm7, %v3319_v26, %v3321_v24  ;;  %v3329_v33 = vsel %vm2612_vm8, %v3322_v0, %v3323_v11  ;;  %5735 = vmatpush.bf16.msrb.mxu1 %v7802_v37  ;;  %v3920_v62 = vld [vmem:[#allocation1] sm:$0xff]  ;;  %v3921_v56 = vld [vmem:[#allocation1 + $0x9] sm:$0xff]  ;;  %v3922_v60 = vld [vmem:[#allocation1 + $0x12] sm:$0xff] }
 0x341   :  { %v3330_v4 = vsel %vm844_vm2, %v3326_v49, %v3329_v33  ;;  %5761 = vmatpush.bf16.msrb.mxu0 %v7818_v16  ;;  %5819 = vmatpush.bf16.msra.mxu2 %v7865_v50  ;;  %v3923_v2 = vld [vmem:[#allocation1 + $0x1b] sm:$0xff]  ;;  %v3924_v27 = vld [vmem:[#allocation1 + $0x24] sm:$0xff]  ;;  %v3925_v7 = vld [vmem:[#allocation1 + $0x2d] sm:$0xff] }
 0x342   :  { %3332 = vst [vmem:[#allocation2 + $0x21] sm:$0x7] %v3330_v4  ;;  %5749 = vmatmul.bf16.vlgmr.msra.gmra.mxu3 %v3921_v56  ;;  %5775 = vmatmul.bf16.vlgmr.msrb.gmra.mxu2 %v3923_v2  ;;  %v3926_v19 = vld [vmem:[#allocation1 + $0x36] sm:$0xff]  ;;  %v3927_v9 = vld [vmem:[#allocation1 + $0x3f] sm:$0xff]  ;;  %v7879_v24 = vld [vmem:[#allocation8 + $0x268] sm:$0xff] }
 0x343   :  { %5736 = vmatmul.bf16.vlgmr.msrb.gmra.mxu1 %v3920_v62  ;;  %5794 = vmatpush.bf16.msrb.mxu3 %v7848_v1  ;;  %3929 = vst [vmem:[#allocation1] ss:$9 sm:$0xff] %v3334_v45  ;;  %v7880_v26 = vld [vmem:[#allocation8 + $0x270] sm:$0xff]  ;;  %v7887_v0 = vld [vmem:[#allocation8 + $0x2a8] sm:$0xff]  ;;  %v7878_v5 = vld [vmem:[#allocation8 + $0x260] sm:$0xff] }
 0x344   :  { %5780 = vmatpush.bf16.msra.mxu1 %v7841_v22  ;;  %5762 = vmatmul.bf16.vlgmr.msrb.gmra.mxu0 %v3922_v60  ;;  %v7895_v11 = vld [vmem:[#allocation8 + $0x2e8] sm:$0xff]  ;;  %v7886_v49 = vld [vmem:[#allocation8 + $0x2a0] sm:$0xff]  ;;  %v7869_v29 = vld [vmem:[#allocation8 + $0x218] sm:$0xff] }
 0x345   :  { %5806 = vmatpush.bf16.msra.mxu0 %v7857_v57  ;;  %5820 = vmatpush.bf16.msra.mxu2 %v7864_v61  ;;  %v7894_v33 = vld [vmem:[#allocation8 + $0x2e0] sm:$0xff]  ;;  %v7877_v4 = vld [vmem:[#allocation8 + $0x258] sm:$0xff]  ;;  %v7876_v16 = vld [vmem:[#allocation8 + $0x250] sm:$0xff] }
 0x346   :  { %v7885_v17 = vld [vmem:[#allocation8 + $0x298] sm:$0xff]  ;;  %v7884_v22 = vld [vmem:[#allocation8 + $0x290] sm:$0xff]  ;;  %v7867_v6 = vld [vmem:[#allocation8 + $0x208] sm:$0xff] }
 0x347   :  { %5795 = vmatpush.bf16.msrb.mxu3 %v7847_v21  ;;  %v7893_v37 = vld [vmem:[#allocation8 + $0x2d8] sm:$0xff]  ;;  %v7892_v23 = vld [vmem:[#allocation8 + $0x2d0] sm:$0xff]  ;;  %v7875_v57 = vld [vmem:[#allocation8 + $0x248] sm:$0xff] }
 0x348   :  { %5781 = vmatpush.bf16.msra.mxu1 %v7840_v28  ;;  %v7883_v50 = vld [vmem:[#allocation8 + $0x288] sm:$0xff]  ;;  %v7866_v62 = vld [vmem:[#allocation8 + $0x200] sm:$0xff]  ;;  %v7905_v56 = vld [vmem:[#allocation8 + $0x338] sm:$0xff] }
 0x349   :  { %5807 = vmatpush.bf16.msra.mxu0 %v7856_v3  ;;  %5821 = vmatpush.bf16.msra.mxu2 %v7863_v18  ;;  %v7891_v28 = vld [vmem:[#allocation8 + $0x2c8] sm:$0xff]  ;;  %v7874_v1 = vld [vmem:[#allocation8 + $0x240] sm:$0xff]  ;;  %v7913_v61 = vld [vmem:[#allocation8 + $0x378] sm:$0xff] }
 0x34a   :  { %v7882_v60 = vld [vmem:[#allocation8 + $0x280] sm:$0xff]  ;;  %v7921_v2 = vld [vmem:[#allocation8 + $0x3b8] sm:$0xff]  ;;  %v7928_v45 = vld [vmem:[#allocation8 + $0x3f0] sm:$0xff] }
 0x34b   :  { %5796 = vmatpush.bf16.msrb.mxu3 %v7846_v8  ;;  %v7890_v3 = vld [vmem:[#allocation8 + $0x2c0] sm:$0xff]  ;;  %v3932_v18 = vld [vmem:[#allocation1 + $0x12] sm:$0xff] }
 0x34c   :  { %5782 = vmatpush.bf16.msra.mxu1 %v7839_v52  ;;  %v7929_v52 = vld [vmem:[#allocation8 + $0x3f8] sm:$0xff]  ;;  %v3930_v21 = vld [vmem:[#allocation1] sm:$0xff] }
 0x34d   :  { %5808 = vmatpush.bf16.msra.mxu0 %v7855_v41  ;;  %5822 = vmatpush.bf16.msra.mxu2 %v7862_v58  ;;  %v3931_v41 = vld [vmem:[#allocation1 + $0x9] sm:$0xff]  ;;  %v3933_v8 = vld [vmem:[#allocation1 + $0x1b] sm:$0xff] }
 0x34e   :  { %v10365_v58 = vld [vmem:[#allocation1 + $0x24] sm:$0xff] }
 0x34f   :  { %5797 = vmatpush.bf16.msrb.mxu3 %v7845_v59  ;;  %v10371_v59 = vld [vmem:[#allocation1 + $0x3f] sm:$0xff] }
 0x350   :  { %5783 = vmatpush.bf16.msra.mxu1 %v7838_v31  ;;  %v3335_v31 = vld [vmem:[#allocation2 + $0x10] sm:$0xff] }
 0x351   :  { %5809 = vmatpush.bf16.msra.mxu0 %v7854_v35  ;;  %5823 = vmatpush.bf16.msra.mxu2 %v7861_v34  ;;  %v7904_v35 = vld [vmem:[#allocation8 + $0x330] sm:$0xff]  ;;  %v7919_v34 = vld [vmem:[#allocation8 + $0x3a8] sm:$0xff] }
 0x353   :  { %5798 = vmatpush.bf16.msrb.mxu3 %v7844_v40  ;;  %v7902_v40 = vld [vmem:[#allocation8 + $0x320] sm:$0xff] }
 0x354   :  { %5784 = vmatpush.bf16.msra.mxu1 %v7837_v54  ;;  %v7912_v54 = vld [vmem:[#allocation8 + $0x370] sm:$0xff] }
 0x355   :  { %5810 = vmatpush.bf16.msra.mxu0 %v7853_v46  ;;  %5824 = vmatpush.bf16.msra.mxu2 %v7860_v48  ;;  %v7911_v46 = vld [vmem:[#allocation8 + $0x368] sm:$0xff]  ;;  %v7918_v48 = vld [vmem:[#allocation8 + $0x3a0] sm:$0xff] }
 0x357   :  { %5799 = vmatpush.bf16.msrb.mxu3 %v7843_v51  ;;  %v7901_v51 = vld [vmem:[#allocation8 + $0x318] sm:$0xff] }
 0x358   :  { %5785 = vmatpush.bf16.msra.mxu1 %v7836_v30  ;;  %v7927_v30 = vld [vmem:[#allocation8 + $0x3e8] sm:$0xff] }
 0x359   :  { %5811 = vmatpush.bf16.msra.mxu0 %v7852_v20  ;;  %5825 = vmatpush.bf16.msra.mxu2 %v7859_v32  ;;  %v7910_v20 = vld [vmem:[#allocation8 + $0x360] sm:$0xff]  ;;  %v7917_v32 = vld [vmem:[#allocation8 + $0x398] sm:$0xff] }
 0x35b   :  { %5800 = vmatpush.bf16.msrb.mxu3 %v7842_v42  ;;  %v7900_v42 = vld [vmem:[#allocation8 + $0x310] sm:$0xff] }
 0x35c   :  { %5786 = vmatpush.bf16.msra.mxu1 %v7835_v44  ;;  %v7926_v44 = vld [vmem:[#allocation8 + $0x3e0] sm:$0xff] }
 0x35d   :  { %5812 = vmatpush.bf16.msra.mxu0 %v7851_v14  ;;  %5826 = vmatpush.bf16.msra.mxu2 %v7858_v53  ;;  %v7909_v14 = vld [vmem:[#allocation8 + $0x358] sm:$0xff]  ;;  %v7924_v53 = vld [vmem:[#allocation8 + $0x3d0] sm:$0xff] }
 0x35e   :  { %5801 = vmatmul.bf16.vlgmr.msrb.gmra.mxu3 %v3925_v7  ;;  %v10369_v7 = vld [vmem:[#allocation1 + $0x36] sm:$0xff] }
 0x35f   :  { %5845 = vmatpush.bf16.msra.mxu3 %v7881_v39  ;;  %v7899_v39 = vld [vmem:[#allocation8 + $0x308] sm:$0xff] }
 0x360   :  { %5787 = vmatpush.bf16.msra.mxu1 %v7834_v13  ;;  %5827 = vmatmul.bf16.vlgmr.msra.gmra.mxu2 %v3927_v9  ;;  %v7903_v9 = vld [vmem:[#allocation8 + $0x328] sm:$0xff]  ;;  %v7925_v13 = vld [vmem:[#allocation8 + $0x3d8] sm:$0xff] }
 0x361   :  { %5813 = vmatpush.bf16.msra.mxu0 %v7850_v63  ;;  %5871 = vmatpush.bf16.msrb.mxu2 %v7897_v12  ;;  %v7916_v63 = vld [vmem:[#allocation8 + $0x390] sm:$0xff]  ;;  %v7915_v12 = vld [vmem:[#allocation8 + $0x388] sm:$0xff] }
 0x363   :  { %5788 = vmatmul.bf16.vlgmr.msra.gmra.mxu1 %v3924_v27  ;;  %5846 = vmatpush.bf16.msra.mxu3 %v7880_v26  ;;  %v10367_v27 = vld [vmem:[#allocation1 + $0x2d] sm:$0xff]  ;;  %v7898_v26 = vld [vmem:[#allocation8 + $0x300] sm:$0xff] }
 0x364   :  { %5832 = vmatpush.bf16.msrb.mxu1 %v7873_v43  ;;  %5814 = vmatmul.bf16.vlgmr.msra.gmra.mxu0 %v3926_v19  ;;  %v7920_v19 = vld [vmem:[#allocation8 + $0x3b0] sm:$0xff]  ;;  %3939 = vst [vmem:[#allocation1] ss:$9 sm:$0xff] %v3335_v31  ;;  %v7946_v31 = vld [vmem:[#allocation8 + $0x480] sm:$0xff] }
 0x365   :  { %5858 = vmatpush.bf16.msrb.mxu0 %v7889_v36  ;;  %5872 = vmatpush.bf16.msrb.mxu2 %v7896_v25  ;;  %v7908_v43 = vld [vmem:[#allocation8 + $0x350] sm:$0xff]  ;;  %v7907_v36 = vld [vmem:[#allocation8 + $0x348] sm:$0xff]  ;;  %v7914_v25 = vld [vmem:[#allocation8 + $0x380] sm:$0xff] }
 0x367   :  { %5847 = vmatpush.bf16.msra.mxu3 %v7879_v24  ;;  %v7937_v24 = vld [vmem:[#allocation8 + $0x438] sm:$0xff] }
 0x368   :  { %5833 = vmatpush.bf16.msrb.mxu1 %v7872_v15  ;;  %v7923_v15 = vld [vmem:[#allocation8 + $0x3c8] sm:$0xff] }
 0x369   :  { %5859 = vmatpush.bf16.msrb.mxu0 %v7888_v55  ;;  %5873 = vmatpush.bf16.msrb.mxu2 %v7895_v11  ;;  %v7906_v55 = vld [vmem:[#allocation8 + $0x340] sm:$0xff]  ;;  %v7953_v11 = vld [vmem:[#allocation8 + $0x4b8] sm:$0xff] }
 0x36b   :  { %5848 = vmatpush.bf16.msra.mxu3 %v7878_v5  ;;  %v7936_v5 = vld [vmem:[#allocation8 + $0x430] sm:$0xff] }
 0x36c   :  { %5834 = vmatpush.bf16.msrb.mxu1 %v7871_v10  ;;  %v7922_v10 = vld [vmem:[#allocation8 + $0x3c0] sm:$0xff] }
 0x36d   :  { %5860 = vmatpush.bf16.msrb.mxu0 %v7887_v0  ;;  %5874 = vmatpush.bf16.msrb.mxu2 %v7894_v33  ;;  %v7945_v0 = vld [vmem:[#allocation8 + $0x478] sm:$0xff]  ;;  %v7952_v33 = vld [vmem:[#allocation8 + $0x4b0] sm:$0xff] }
 0x36f   :  { %5849 = vmatpush.bf16.msra.mxu3 %v7877_v4  ;;  %v7935_v4 = vld [vmem:[#allocation8 + $0x428] sm:$0xff] }
 0x370   :  { %5835 = vmatpush.bf16.msrb.mxu1 %v7870_v47  ;;  %v7961_v47 = vld [vmem:[#allocation8 + $0x4f8] sm:$0xff] }
 0x371   :  { %5861 = vmatpush.bf16.msrb.mxu0 %v7886_v49  ;;  %5875 = vmatpush.bf16.msrb.mxu2 %v7893_v37  ;;  %v7944_v49 = vld [vmem:[#allocation8 + $0x470] sm:$0xff]  ;;  %v7951_v37 = vld [vmem:[#allocation8 + $0x4a8] sm:$0xff] }
 0x373   :  { %5850 = vmatpush.bf16.msra.mxu3 %v7876_v16  ;;  %v7934_v16 = vld [vmem:[#allocation8 + $0x420] sm:$0xff] }
 0x374   :  { %5836 = vmatpush.bf16.msrb.mxu1 %v7869_v29  ;;  %v7960_v29 = vld [vmem:[#allocation8 + $0x4f0] sm:$0xff] }
 0x375   :  { %5862 = vmatpush.bf16.msrb.mxu0 %v7885_v17  ;;  %5876 = vmatpush.bf16.msrb.mxu2 %v7892_v23  ;;  %v7943_v17 = vld [vmem:[#allocation8 + $0x468] sm:$0xff]  ;;  %v7950_v23 = vld [vmem:[#allocation8 + $0x4a0] sm:$0xff] }
 0x377   :  { %5851 = vmatpush.bf16.msra.mxu3 %v7875_v57  ;;  %v7933_v57 = vld [vmem:[#allocation8 + $0x418] sm:$0xff] }
 0x378   :  { %5837 = vmatpush.bf16.msrb.mxu1 %v7868_v38  ;;  %v7959_v38 = vld [vmem:[#allocation8 + $0x4e8] sm:$0xff] }
 0x379   :  { %5863 = vmatpush.bf16.msrb.mxu0 %v7884_v22  ;;  %5877 = vmatpush.bf16.msrb.mxu2 %v7891_v28  ;;  %v7942_v22 = vld [vmem:[#allocation8 + $0x460] sm:$0xff]  ;;  %v7949_v28 = vld [vmem:[#allocation8 + $0x498] sm:$0xff] }
 0x37b   :  { %5852 = vmatpush.bf16.msra.mxu3 %v7874_v1  ;;  %v7940_v1 = vld [vmem:[#allocation8 + $0x450] sm:$0xff] }
 0x37c   :  { %5838 = vmatpush.bf16.msrb.mxu1 %v7867_v6  ;;  %v7958_v6 = vld [vmem:[#allocation8 + $0x4e0] sm:$0xff] }
 0x37d   :  { %5864 = vmatpush.bf16.msrb.mxu0 %v7883_v50  ;;  %5878 = vmatpush.bf16.msrb.mxu2 %v7890_v3  ;;  %v7941_v50 = vld [vmem:[#allocation8 + $0x458] sm:$0xff]  ;;  %v7956_v3 = vld [vmem:[#allocation8 + $0x4d0] sm:$0xff] }
 0x37e   :  { %5853 = vmatmul.bf16.vlgmr.msra.gmra.mxu3 %v3931_v41  ;;  %v7930_v41 = vld [vmem:[#allocation8 + $0x400] sm:$0xff] }
 0x37f   :  { %5897 = vmatpush.bf16.msrb.mxu3 %v7913_v61  ;;  %v7931_v61 = vld [vmem:[#allocation8 + $0x408] sm:$0xff] }
 0x380   :  { %5839 = vmatpush.bf16.msrb.mxu1 %v7866_v62  ;;  %5879 = vmatmul.bf16.vlgmr.msrb.gmra.mxu2 %v3933_v8  ;;  %v7957_v62 = vld [vmem:[#allocation8 + $0x4d8] sm:$0xff]  ;;  %v7954_v8 = vld [vmem:[#allocation8 + $0x4c0] sm:$0xff] }
 0x381   :  { %5865 = vmatpush.bf16.msrb.mxu0 %v7882_v60  ;;  %5923 = vmatpush.bf16.msra.mxu2 %v7929_v52  ;;  %v7948_v60 = vld [vmem:[#allocation8 + $0x490] sm:$0xff]  ;;  %v7947_v52 = vld [vmem:[#allocation8 + $0x488] sm:$0xff] }
 0x383   :  { %5840 = vmatmul.bf16.vlgmr.msrb.gmra.mxu1 %v3930_v21  ;;  %5898 = vmatpush.bf16.msrb.mxu3 %v7912_v54  ;;  %v7955_v21 = vld [vmem:[#allocation8 + $0x4c8] sm:$0xff]  ;;  %v7985_v54 = vld [vmem:[#allocation8 + $0x5b8] sm:$0xff] }
 0x384   :  { %5884 = vmatpush.bf16.msra.mxu1 %v7905_v56  ;;  %5866 = vmatmul.bf16.vlgmr.msrb.gmra.mxu0 %v3932_v18  ;;  %v7932_v56 = vld [vmem:[#allocation8 + $0x410] sm:$0xff]  ;;  %v7938_v18 = vld [vmem:[#allocation8 + $0x440] sm:$0xff] }
 0x385   :  { %5910 = vmatpush.bf16.msra.mxu0 %v7921_v2  ;;  %5924 = vmatpush.bf16.msra.mxu2 %v7928_v45  ;;  %v7939_v2 = vld [vmem:[#allocation8 + $0x448] sm:$0xff]  ;;  %v3942_v45 = vld [vmem:[#allocation1 + $0x12] sm:$0xff] }
 0x387   :  { %5899 = vmatpush.bf16.msrb.mxu3 %v7911_v46  ;;  %v7968_v46 = vld [vmem:[#allocation8 + $0x530] sm:$0xff] }
 0x388   :  { %5885 = vmatpush.bf16.msra.mxu1 %v7904_v35  ;;  %v7969_v35 = vld [vmem:[#allocation8 + $0x538] sm:$0xff] }
 0x389   :  { %5911 = vmatpush.bf16.msra.mxu0 %v7920_v19  ;;  %5925 = vmatpush.bf16.msra.mxu2 %v7927_v30  ;;  %v3941_v19 = vld [vmem:[#allocation1 + $0x9] sm:$0xff] }
 0x38a   :  { %v7976_v30 = vld [vmem:[#allocation8 + $0x570] sm:$0xff] }
 0x38b   :  { %5900 = vmatpush.bf16.msrb.mxu3 %v7910_v20  ;;  %v10381_v20 = vld [vmem:[#allocation1 + $0x36] sm:$0xff] }
 0x38c   :  { %5886 = vmatpush.bf16.msra.mxu1 %v7903_v9  ;;  %v3943_v9 = vld [vmem:[#allocation1 + $0x1b] sm:$0xff] }
 0x38d   :  { %5912 = vmatpush.bf16.msra.mxu0 %v7919_v34  ;;  %5926 = vmatpush.bf16.msra.mxu2 %v7926_v44  ;;  %v10377_v34 = vld [vmem:[#allocation1 + $0x24] sm:$0xff]  ;;  %v7992_v44 = vld [vmem:[#allocation8 + $0x5f0] sm:$0xff] }
 0x38f   :  { %5901 = vmatpush.bf16.msrb.mxu3 %v7909_v14  ;;  %v7967_v14 = vld [vmem:[#allocation8 + $0x528] sm:$0xff] }
 0x390   :  { %5887 = vmatpush.bf16.msra.mxu1 %v7902_v40  ;;  %v10379_v40 = vld [vmem:[#allocation1 + $0x2d] sm:$0xff] }
 0x391   :  { %5913 = vmatpush.bf16.msra.mxu0 %v7918_v48  ;;  %5927 = vmatpush.bf16.msra.mxu2 %v7925_v13  ;;  %v7984_v48 = vld [vmem:[#allocation8 + $0x5b0] sm:$0xff]  ;;  %v7983_v13 = vld [vmem:[#allocation8 + $0x5a8] sm:$0xff] }
 0x393   :  { %5902 = vmatpush.bf16.msrb.mxu3 %v7908_v43  ;;  %v7966_v43 = vld [vmem:[#allocation8 + $0x520] sm:$0xff] }
 0x394   :  { %5888 = vmatpush.bf16.msra.mxu1 %v7901_v51  ;;  %v10383_v51 = vld [vmem:[#allocation1 + $0x3f] sm:$0xff] }
 0x395   :  { %5914 = vmatpush.bf16.msra.mxu0 %v7917_v32  ;;  %5928 = vmatpush.bf16.msra.mxu2 %v7924_v53  ;;  %v7975_v32 = vld [vmem:[#allocation8 + $0x568] sm:$0xff] }
 0x397   :  { %5903 = vmatpush.bf16.msrb.mxu3 %v7907_v36  ;;  %v7990_v36 = vld [vmem:[#allocation8 + $0x5e0] sm:$0xff] }
 0x398   :  { %5889 = vmatpush.bf16.msra.mxu1 %v7900_v42  ;;  %v7991_v42 = vld [vmem:[#allocation8 + $0x5e8] sm:$0xff] }
 0x399   :  { %5915 = vmatpush.bf16.msra.mxu0 %v7916_v63  ;;  %5929 = vmatpush.bf16.msra.mxu2 %v7923_v15  ;;  %v7974_v63 = vld [vmem:[#allocation8 + $0x560] sm:$0xff] }
 0x39b   :  { %5904 = vmatpush.bf16.msrb.mxu3 %v7906_v55  ;;  %v7973_v55 = vld [vmem:[#allocation8 + $0x558] sm:$0xff] }
 0x39c   :  { %5890 = vmatpush.bf16.msra.mxu1 %v7899_v39  ;;  %v7982_v39 = vld [vmem:[#allocation8 + $0x5a0] sm:$0xff] }
 0x39d   :  { %5916 = vmatpush.bf16.msra.mxu0 %v7915_v12  ;;  %5930 = vmatpush.bf16.msra.mxu2 %v7922_v10  ;;  %v8110_v12 = vld [vmem:[#allocation9] ss:$0 sm:$0xff]  ;;  %v7989_v10 = vld [vmem:[#allocation8 + $0x5d8] sm:$0xff] }
 0x39e   :  { %5905 = vmatmul.bf16.vlgmr.msrb.gmra.mxu3 %v10367_v27  ;;  %v7993_v27 = vld [vmem:[#allocation8 + $0x5f8] sm:$0xff] }
 0x39f   :  { %5949 = vmatpush.bf16.msra.mxu3 %v7945_v0 }
 0x3a0   :  { %5891 = vmatpush.bf16.msra.mxu1 %v7898_v26  ;;  %5931 = vmatmul.bf16.vlgmr.msra.gmra.mxu2 %v10371_v59  ;;  %v3336_v59 = vld [vmem:[#allocation2 + $0x18] sm:$0xff]  ;;  %v7965_v26 = vld [vmem:[#allocation8 + $0x518] sm:$0xff] }
 0x3a1   :  { %5917 = vmatpush.bf16.msra.mxu0 %v7914_v25  ;;  %5975 = vmatpush.bf16.msrb.mxu2 %v7961_v47  ;;  %v7981_v25 = vld [vmem:[#allocation8 + $0x598] sm:$0xff]  ;;  %v7964_v47 = vld [vmem:[#allocation8 + $0x510] sm:$0xff] }
 0x3a3   :  { %5892 = vmatmul.bf16.vlgmr.msra.gmra.mxu1 %v10365_v58  ;;  %5950 = vmatpush.bf16.msra.mxu3 %v7944_v49  ;;  %v7977_v58 = vld [vmem:[#allocation8 + $0x578] sm:$0xff] }
 0x3a4   :  { %5936 = vmatpush.bf16.msrb.mxu1 %v7937_v24  ;;  %5918 = vmatmul.bf16.vlgmr.msra.gmra.mxu0 %v10369_v7  ;;  %v3940_v7 = vld [vmem:[#allocation1] sm:$0xff] }
 0x3a5   :  { %5962 = vmatpush.bf16.msrb.mxu0 %v7953_v11  ;;  %5976 = vmatpush.bf16.msrb.mxu2 %v7960_v29  ;;  %3949 = vst [vmem:[#allocation1] ss:$9 sm:$0xff] %v3336_v59  ;;  %v7980_v29 = vld [vmem:[#allocation8 + $0x590] sm:$0xff]  ;;  %v8022_v59 = vld [vmem:[#allocation8 + $0x6e0] sm:$0xff] }
 0x3a7   :  { %5951 = vmatpush.bf16.msra.mxu3 %v7943_v17 }
 0x3a8   :  { %5937 = vmatpush.bf16.msrb.mxu1 %v7936_v5  ;;  %v7972_v5 = vld [vmem:[#allocation8 + $0x550] sm:$0xff] }
 0x3a9   :  { %5963 = vmatpush.bf16.msrb.mxu0 %v7952_v33  ;;  %5977 = vmatpush.bf16.msrb.mxu2 %v7959_v38 }
 0x3ab   :  { %5952 = vmatpush.bf16.msra.mxu3 %v7942_v22  ;;  %v7971_v22 = vld [vmem:[#allocation8 + $0x548] sm:$0xff] }
 0x3ac   :  { %5938 = vmatpush.bf16.msrb.mxu1 %v7935_v4  ;;  %v7988_v4 = vld [vmem:[#allocation8 + $0x5d0] sm:$0xff] }
 0x3ad   :  { %5964 = vmatpush.bf16.msrb.mxu0 %v7951_v37  ;;  %5978 = vmatpush.bf16.msrb.mxu2 %v7958_v6  ;;  %v7987_v6 = vld [vmem:[#allocation8 + $0x5c8] sm:$0xff] }
 0x3af   :  { %5953 = vmatpush.bf16.msra.mxu3 %v7941_v50  ;;  %v7962_v50 = vld [vmem:[#allocation8 + $0x500] sm:$0xff] }
 0x3b0   :  { %5939 = vmatpush.bf16.msrb.mxu1 %v7934_v16  ;;  %v7963_v16 = vld [vmem:[#allocation8 + $0x508] sm:$0xff] }
 0x3b1   :  { %5965 = vmatpush.bf16.msrb.mxu0 %v7950_v23  ;;  %5979 = vmatpush.bf16.msrb.mxu2 %v7957_v62  ;;  %v7979_v23 = vld [vmem:[#allocation8 + $0x588] sm:$0xff] }
 0x3b3   :  { %5954 = vmatpush.bf16.msra.mxu3 %v7940_v1  ;;  %v7986_v1 = vld [vmem:[#allocation8 + $0x5c0] sm:$0xff] }
 0x3b4   :  { %5940 = vmatpush.bf16.msrb.mxu1 %v7933_v57 }
 0x3b5   :  { %5966 = vmatpush.bf16.msrb.mxu0 %v7949_v28  ;;  %5980 = vmatpush.bf16.msrb.mxu2 %v7956_v3  ;;  %v7970_v28 = vld [vmem:[#allocation8 + $0x540] sm:$0xff]  ;;  %v8009_v3 = vld [vmem:[#allocation8 + $0x678] sm:$0xff] }
 0x3b7   :  { %5955 = vmatpush.bf16.msra.mxu3 %v7939_v2  ;;  %v8025_v2 = vld [vmem:[#allocation8 + $0x6f8] sm:$0xff] }
 0x3b8   :  { %5941 = vmatpush.bf16.msrb.mxu1 %v7932_v56  ;;  %v7978_v56 = vld [vmem:[#allocation8 + $0x580] sm:$0xff] }
 0x3b9   :  { %5967 = vmatpush.bf16.msrb.mxu0 %v7948_v60  ;;  %5981 = vmatpush.bf16.msrb.mxu2 %v7955_v21  ;;  %v8001_v60 = vld [vmem:[#allocation8 + $0x638] sm:$0xff]  ;;  %v8008_v21 = vld [vmem:[#allocation8 + $0x670] sm:$0xff] }
 0x3bb   :  { %5956 = vmatpush.bf16.msra.mxu3 %v7938_v18  ;;  %v8024_v18 = vld [vmem:[#allocation8 + $0x6f0] sm:$0xff] }
 0x3bc   :  { %5942 = vmatpush.bf16.msrb.mxu1 %v7931_v61  ;;  %v8017_v61 = vld [vmem:[#allocation8 + $0x6b8] sm:$0xff] }
 0x3bd   :  { %5968 = vmatpush.bf16.msrb.mxu0 %v7947_v52  ;;  %5982 = vmatpush.bf16.msrb.mxu2 %v7954_v8  ;;  %v8000_v52 = vld [vmem:[#allocation8 + $0x630] sm:$0xff]  ;;  %v8007_v8 = vld [vmem:[#allocation8 + $0x668] sm:$0xff] }
 0x3be   :  { %5957 = vmatmul.bf16.vlgmr.msra.gmra.mxu3 %v3941_v19 }
 0x3bf   :  { %6001 = vmatpush.bf16.msrb.mxu3 %v7977_v58  ;;  %v8023_v58 = vld [vmem:[#allocation8 + $0x6e8] sm:$0xff] }
 0x3c0   :  { %5943 = vmatpush.bf16.msrb.mxu1 %v7930_v41  ;;  %5983 = vmatmul.bf16.vlgmr.msrb.gmra.mxu2 %v3943_v9  ;;  %v5737_v53 = vpop.f32.mrf.mxu1  ;;  %v8016_v41 = vld [vmem:[#allocation8 + $0x6b0] sm:$0xff] }
 0x3c1   :  { %5969 = vmatpush.bf16.msrb.mxu0 %v7946_v31  ;;  %6027 = vmatpush.bf16.msra.mxu2 %v7993_v27  ;;  %v5763_v15 = vpop.f32.mrf.mxu0  ;;  %v5738_v24 = vadd.f32 %v8110_v12, %v5737_v53  ;;  %v7999_v31 = vld [vmem:[#allocation8 + $0x628] sm:$0xff]  ;;  %v7998_v27 = vld [vmem:[#allocation8 + $0x620] sm:$0xff] }
 0x3c2   :  { %v8011_v12 = vld [vmem:[#allocation8 + $0x688] sm:$0xff] }
 0x3c3   :  { %5944 = vmatmul.bf16.vlgmr.msrb.gmra.mxu1 %v3940_v7  ;;  %6002 = vmatpush.bf16.msrb.mxu3 %v7976_v30  ;;  %v8006_v7 = vld [vmem:[#allocation8 + $0x660] sm:$0xff]  ;;  %v8013_v30 = vld [vmem:[#allocation8 + $0x698] sm:$0xff] }
 0x3c4   :  { %5988 = vmatpush.bf16.msra.mxu1 %v7969_v35  ;;  %5970 = vmatmul.bf16.vlgmr.msrb.gmra.mxu0 %v3942_v45  ;;  %v8015_v35 = vld [vmem:[#allocation8 + $0x6a8] sm:$0xff]  ;;  %v8014_v45 = vld [vmem:[#allocation8 + $0x6a0] sm:$0xff] }
 0x3c5   :  { %6014 = vmatpush.bf16.msra.mxu0 %v7985_v54  ;;  %6028 = vmatpush.bf16.msra.mxu2 %v7992_v44  ;;  %v5750_v0 = vpop.f32.mrf.mxu3  ;;  %v5776_v49 = vpop.f32.mrf.mxu2 }
 0x3c6   :  { %v5751_v11 = vadd.f32 %v5750_v0, %v5738_v24  ;;  %v8010_v24 = vld [vmem:[#allocation8 + $0x680] sm:$0xff] }
 0x3c7   :  { %6003 = vmatpush.bf16.msrb.mxu3 %v7975_v32  ;;  %v8004_v32 = vld [vmem:[#allocation8 + $0x650] sm:$0xff]  ;;  %v8018_v0 = vld [vmem:[#allocation8 + $0x6c0] sm:$0xff] }
 0x3c8   :  { %5989 = vmatpush.bf16.msra.mxu1 %v7968_v46  ;;  %v5739_v33 = vpop.f32.mrf.mxu1  ;;  %v5764_v17 = vadd.f32 %v5763_v15, %v5751_v11  ;;  %v7997_v46 = vld [vmem:[#allocation8 + $0x618] sm:$0xff]  ;;  %v8019_v15 = vld [vmem:[#allocation8 + $0x6c8] sm:$0xff] }
 0x3c9   :  { %6015 = vmatpush.bf16.msra.mxu0 %v7984_v48  ;;  %6029 = vmatpush.bf16.msra.mxu2 %v7991_v42  ;;  %v5765_v37 = vpop.f32.mrf.mxu0  ;;  %v8020_v42 = vld [vmem:[#allocation8 + $0x6d0] sm:$0xff]  ;;  %v8033_v11 = vld [vmem:[#allocation8 + $0x738] sm:$0xff]  ;;  %v3950_v33 = vld [vmem:[#allocation1] sm:$0xff] }
 0x3ca   :  { %v5777_v38 = vadd.f32 %v5776_v49, %v5764_v17  ;;  %v8057_v49 = vld [vmem:[#allocation8 + $0x7f8] sm:$0xff]  ;;  %v10389_v37 = vld [vmem:[#allocation1 + $0x24] sm:$0xff] }
 0x3cb   :  { %6004 = vmatpush.bf16.msrb.mxu3 %v7974_v63  ;;  %v3953_v17 = vld [vmem:[#allocation1 + $0x1b] sm:$0xff] }
 0x3cc   :  { %5990 = vmatpush.bf16.msra.mxu1 %v7967_v14  ;;  %v7996_v14 = vld [vmem:[#allocation8 + $0x610] sm:$0xff] }
 0x3cd   :  { %6016 = vmatpush.bf16.msra.mxu0 %v7983_v13  ;;  %6030 = vmatpush.bf16.msra.mxu2 %v7990_v36  ;;  %v5752_v57 = vpop.f32.mrf.mxu3  ;;  %v5778_v62 = vpop.f32.mrf.mxu2  ;;  %v8012_v13 = vld [vmem:[#allocation8 + $0x690] sm:$0xff]  ;;  %v8003_v36 = vld [vmem:[#allocation8 + $0x648] sm:$0xff] }
 0x3ce   :  { %v8040_v57 = vld [vmem:[#allocation8 + $0x770] sm:$0xff]  ;;  %v8031_v62 = vld [vmem:[#allocation8 + $0x728] sm:$0xff] }
 0x3cf   :  { %6005 = vmatpush.bf16.msrb.mxu3 %v7973_v55  ;;  %v7994_v55 = vld [vmem:[#allocation8 + $0x600] sm:$0xff] }
 0x3d0   :  { %5991 = vmatpush.bf16.msra.mxu1 %v7966_v43 }
 0x3d1   :  { %6017 = vmatpush.bf16.msra.mxu0 %v7982_v39  ;;  %6031 = vmatpush.bf16.msra.mxu2 %v7989_v10  ;;  %v7995_v39 = vld [vmem:[#allocation8 + $0x608] sm:$0xff] }
 0x3d3   :  { %6006 = vmatpush.bf16.msrb.mxu3 %v7972_v5  ;;  %v8049_v5 = vld [vmem:[#allocation8 + $0x7b8] sm:$0xff] }
 0x3d4   :  { %5992 = vmatpush.bf16.msra.mxu1 %v7965_v26 }
 0x3d5   :  { %6018 = vmatpush.bf16.msra.mxu0 %v7981_v25  ;;  %6032 = vmatpush.bf16.msra.mxu2 %v7988_v4  ;;  %v8002_v25 = vld [vmem:[#allocation8 + $0x640] sm:$0xff]  ;;  %v3952_v4 = vld [vmem:[#allocation1 + $0x12] sm:$0xff] }
 0x3d7   :  { %6007 = vmatpush.bf16.msrb.mxu3 %v7971_v22  ;;  %v3337_v22 = vld [vmem:[#allocation2 + $0x20] sm:$0xf] }
 0x3d8   :  { %5993 = vmatpush.bf16.msra.mxu1 %v7964_v47  ;;  %v8041_v47 = vld [vmem:[#allocation8 + $0x778] sm:$0xff] }
 0x3d9   :  { %6019 = vmatpush.bf16.msra.mxu0 %v7980_v29  ;;  %6033 = vmatpush.bf16.msra.mxu2 %v7987_v6  ;;  %v3951_v29 = vld [vmem:[#allocation1 + $0x9] sm:$0xff] }
 0x3da   :  { %v8032_v6 = vld [vmem:[#allocation8 + $0x730] sm:$0xff] }
 0x3db   :  { %6008 = vmatpush.bf16.msrb.mxu3 %v7970_v28  ;;  %v8056_v28 = vld [vmem:[#allocation8 + $0x7f0] sm:$0xff] }
 0x3dc   :  { %5994 = vmatpush.bf16.msra.mxu1 %v7963_v16  ;;  %v10393_v16 = vld [vmem:[#allocation1 + $0x36] sm:$0xff] }
 0x3dd   :  { %6020 = vmatpush.bf16.msra.mxu0 %v7979_v23  ;;  %6034 = vmatpush.bf16.msra.mxu2 %v7986_v1  ;;  %v10395_v23 = vld [vmem:[#allocation1 + $0x3f] sm:$0xff]  ;;  %v8047_v1 = vld [vmem:[#allocation8 + $0x7a8] sm:$0xff] }
 0x3de   :  { %6009 = vmatmul.bf16.vlgmr.msrb.gmra.mxu3 %v10379_v40  ;;  %v8021_v40 = vld [vmem:[#allocation8 + $0x6d8] sm:$0xff] }
 0x3df   :  { %6053 = vmatpush.bf16.msra.mxu3 %v8009_v3 }
 0x3e0   :  { %5995 = vmatpush.bf16.msra.mxu1 %v7962_v50  ;;  %6035 = vmatmul.bf16.vlgmr.msra.gmra.mxu2 %v10383_v51  ;;  %v5789_v54 = vpop.f32.mrf.mxu1  ;;  %v8048_v50 = vld [vmem:[#allocation8 + $0x7b0] sm:$0xff] }
 0x3e1   :  { %6021 = vmatpush.bf16.msra.mxu0 %v7978_v56  ;;  %6079 = vmatpush.bf16.msrb.mxu2 %v8025_v2  ;;  %v5790_v19 = vadd.f32 %v5789_v54, %v5777_v38  ;;  %v5815_v9 = vpop.f32.mrf.mxu0  ;;  %v10391_v38 = vld [vmem:[#allocation1 + $0x2d] sm:$0xff] }
 0x3e2   :  { %3959 = vst [vmem:[#allocation1] ss:$9 sm:$0xff] %v3337_v22  ;;  %v8039_v56 = vld [vmem:[#allocation8 + $0x768] sm:$0xff]  ;;  %v8085_v22 = vld [vmem:[#allocation8 + $0x8d8] sm:$0xff] }
 0x3e3   :  { %5996 = vmatmul.bf16.vlgmr.msra.gmra.mxu1 %v10377_v34  ;;  %6054 = vmatpush.bf16.msra.mxu3 %v8008_v21  ;;  %v8005_v34 = vld [vmem:[#allocation8 + $0x658] sm:$0xff]  ;;  %v5828_v44 = vpop.f32.mrf.mxu2  ;;  %v8038_v21 = vld [vmem:[#allocation8 + $0x760] sm:$0xff] }
 0x3e4   :  { %6040 = vmatpush.bf16.msrb.mxu1 %v8001_v60  ;;  %6022 = vmatmul.bf16.vlgmr.msra.gmra.mxu0 %v10381_v20  ;;  %v5802_v20 = vpop.f32.mrf.mxu3  ;;  %v8055_v60 = vld [vmem:[#allocation8 + $0x7e8] sm:$0xff] }
 0x3e5   :  { %6066 = vmatpush.bf16.msrb.mxu0 %v8017_v61  ;;  %6080 = vmatpush.bf16.msrb.mxu2 %v8024_v18  ;;  %v5803_v48 = vadd.f32 %v5802_v20, %v5790_v19  ;;  %v8054_v18 = vld [vmem:[#allocation8 + $0x7e0] sm:$0xff]  ;;  %v8027_v20 = vld [vmem:[#allocation8 + $0x708] sm:$0xff] }
 0x3e7   :  { %6055 = vmatpush.bf16.msra.mxu3 %v8007_v8  ;;  %v5816_v43 = vadd.f32 %v5815_v9, %v5803_v48  ;;  %v8037_v8 = vld [vmem:[#allocation8 + $0x758] sm:$0xff]  ;;  %v8028_v9 = vld [vmem:[#allocation8 + $0x710] sm:$0xff]  ;;  %v8035_v48 = vld [vmem:[#allocation8 + $0x748] sm:$0xff] }
 0x3e8   :  { %6041 = vmatpush.bf16.msrb.mxu1 %v8000_v52  ;;  %v5791_v51 = vpop.f32.mrf.mxu1  ;;  %v8030_v52 = vld [vmem:[#allocation8 + $0x720] sm:$0xff] }
 0x3e9   :  { %6067 = vmatpush.bf16.msrb.mxu0 %v8016_v41  ;;  %6081 = vmatpush.bf16.msrb.mxu2 %v8023_v58  ;;  %v5817_v63 = vpop.f32.mrf.mxu0  ;;  %v5829_v53 = vadd.f32 %v5828_v44, %v5816_v43  ;;  %v8046_v41 = vld [vmem:[#allocation8 + $0x7a0] sm:$0xff]  ;;  %v8053_v58 = vld [vmem:[#allocation8 + $0x7d8] sm:$0xff]  ;;  %v8043_v44 = vld [vmem:[#allocation8 + $0x788] sm:$0xff] }
 0x3ea   :  { %v8051_v51 = vld [vmem:[#allocation8 + $0x7c8] sm:$0xff]  ;;  %v8042_v43 = vld [vmem:[#allocation8 + $0x780] sm:$0xff] }
 0x3eb   :  { %6056 = vmatpush.bf16.msra.mxu3 %v8006_v7  ;;  %v5830_v10 = vpop.f32.mrf.mxu2  ;;  %v8050_v63 = vld [vmem:[#allocation8 + $0x7c0] sm:$0xff] }
 0x3ec   :  { %6042 = vmatpush.bf16.msrb.mxu1 %v7999_v31  ;;  %v5804_v26 = vpop.f32.mrf.mxu3  ;;  %v8029_v31 = vld [vmem:[#allocation8 + $0x718] sm:$0xff]  ;;  %v8063_v10 = vld [vmem:[#allocation8 + $0x828] sm:$0xff] }
 0x3ed   :  { %6068 = vmatpush.bf16.msrb.mxu0 %v8015_v35  ;;  %6082 = vmatpush.bf16.msrb.mxu2 %v8022_v59  ;;  %v8045_v35 = vld [vmem:[#allocation8 + $0x798] sm:$0xff]  ;;  %v8072_v26 = vld [vmem:[#allocation8 + $0x870] sm:$0xff] }
 0x3ef   :  { %6057 = vmatpush.bf16.msra.mxu3 %v8005_v34  ;;  %v8044_v34 = vld [vmem:[#allocation8 + $0x790] sm:$0xff] }
 0x3f0   :  { %6043 = vmatpush.bf16.msrb.mxu1 %v7998_v27 }
 0x3f1   :  { %6069 = vmatpush.bf16.msrb.mxu0 %v8014_v45  ;;  %6083 = vmatpush.bf16.msrb.mxu2 %v8021_v40 }
 0x3f3   :  { %6058 = vmatpush.bf16.msra.mxu3 %v8004_v32 }
 0x3f4   :  { %6044 = vmatpush.bf16.msrb.mxu1 %v7997_v46  ;;  %v8036_v46 = vld [vmem:[#allocation8 + $0x750] sm:$0xff] }
 0x3f5   :  { %6070 = vmatpush.bf16.msrb.mxu0 %v8013_v30  ;;  %6084 = vmatpush.bf16.msrb.mxu2 %v8020_v42  ;;  %v8052_v30 = vld [vmem:[#allocation8 + $0x7d0] sm:$0xff]  ;;  %v8034_v42 = vld [vmem:[#allocation8 + $0x740] sm:$0xff] }
 0x3f7   :  { %6059 = vmatpush.bf16.msra.mxu3 %v8003_v36  ;;  %v8081_v36 = vld [vmem:[#allocation8 + $0x8b8] sm:$0xff] }
 0x3f8   :  { %6045 = vmatpush.bf16.msrb.mxu1 %v7996_v14 }
 0x3f9   :  { %6071 = vmatpush.bf16.msrb.mxu0 %v8012_v13  ;;  %6085 = vmatpush.bf16.msrb.mxu2 %v8019_v15  ;;  %v8026_v13 = vld [vmem:[#allocation8 + $0x700] sm:$0xff]  ;;  %v8064_v15 = vld [vmem:[#allocation8 + $0x830] sm:$0xff] }
 0x3fb   :  { %6060 = vmatpush.bf16.msra.mxu3 %v8002_v25  ;;  %v8088_v25 = vld [vmem:[#allocation8 + $0x8f0] sm:$0xff] }
 0x3fc   :  { %6046 = vmatpush.bf16.msrb.mxu1 %v7995_v39  ;;  %v8073_v39 = vld [vmem:[#allocation8 + $0x878] sm:$0xff] }
 0x3fd   :  { %6072 = vmatpush.bf16.msrb.mxu0 %v8011_v12  ;;  %6086 = vmatpush.bf16.msrb.mxu2 %v8018_v0  ;;  %v8089_v12 = vld [vmem:[#allocation8 + $0x8f8] sm:$0xff]  ;;  %v8079_v0 = vld [vmem:[#allocation8 + $0x8a8] sm:$0xff] }
 0x3fe   :  { %6061 = vmatmul.bf16.vlgmr.msra.gmra.mxu3 %v3951_v29  ;;  %v8070_v29 = vld [vmem:[#allocation8 + $0x860] sm:$0xff] }
 0x3ff   :  { %6105 = vmatpush.bf16.msrb.mxu3 %v8041_v47 }
 0x400   :  { %6047 = vmatpush.bf16.msrb.mxu1 %v7994_v55  ;;  %6087 = vmatmul.bf16.vlgmr.msrb.gmra.mxu2 %v3953_v17  ;;  %v5841_v3 = vpop.f32.mrf.mxu1  ;;  %v8080_v55 = vld [vmem:[#allocation8 + $0x8b0] sm:$0xff]  ;;  %v8086_v17 = vld [vmem:[#allocation8 + $0x8e0] sm:$0xff] }
 0x401   :  { %6073 = vmatpush.bf16.msrb.mxu0 %v8010_v24  ;;  %6131 = vmatpush.bf16.msra.mxu2 %v8057_v49  ;;  %v5842_v61 = vadd.f32 %v5841_v3, %v5829_v53  ;;  %v5867_v2 = vpop.f32.mrf.mxu0  ;;  %v5854_v54 = vpop.f32.mrf.mxu3  ;;  %v8065_v53 = vld [vmem:[#allocation8 + $0x838] sm:$0xff]  ;;  %v8071_v24 = vld [vmem:[#allocation8 + $0x868] sm:$0xff]  ;;  %v8084_v3 = vld [vmem:[#allocation8 + $0x8d0] sm:$0xff] }
 0x403   :  { %6048 = vmatmul.bf16.vlgmr.msrb.gmra.mxu1 %v3950_v33  ;;  %6106 = vmatpush.bf16.msrb.mxu3 %v8040_v57  ;;  %v5855_v27 = vadd.f32 %v5854_v54, %v5842_v61  ;;  %v5880_v7 = vpop.f32.mrf.mxu2  ;;  %v8062_v33 = vld [vmem:[#allocation8 + $0x820] sm:$0xff] }
 0x404   :  { %6092 = vmatpush.bf16.msra.mxu1 %v8033_v11  ;;  %6074 = vmatmul.bf16.vlgmr.msrb.gmra.mxu0 %v3952_v4  ;;  %v8087_v11 = vld [vmem:[#allocation8 + $0x8e8] sm:$0xff]  ;;  %v8078_v4 = vld [vmem:[#allocation8 + $0x8a0] sm:$0xff] }
 0x405   :  { %6118 = vmatpush.bf16.msra.mxu0 %v8049_v5  ;;  %6132 = vmatpush.bf16.msra.mxu2 %v8056_v28  ;;  %v5868_v45 = vadd.f32 %v5867_v2, %v5855_v27  ;;  %v8059_v2 = vld [vmem:[#allocation8 + $0x808] sm:$0xff]  ;;  %v8082_v54 = vld [vmem:[#allocation8 + $0x8c0] sm:$0xff] }
 0x406   :  { %v3960_v27 = vld [vmem:[#allocation1] sm:$0xff] }
 0x407   :  { %6107 = vmatpush.bf16.msrb.mxu3 %v8039_v56  ;;  %v5881_v40 = vadd.f32 %v5880_v7, %v5868_v45  ;;  %v8060_v56 = vld [vmem:[#allocation8 + $0x810] sm:$0xff]  ;;  %v3963_v45 = vld [vmem:[#allocation1 + $0x1b] sm:$0xff] }
 0x408   :  { %6093 = vmatpush.bf16.msra.mxu1 %v8032_v6  ;;  %v5843_v19 = vpop.f32.mrf.mxu1  ;;  %v3961_v7 = vld [vmem:[#allocation1 + $0x9] sm:$0xff] }
 0x409   :  { %6119 = vmatpush.bf16.msra.mxu0 %v8048_v50  ;;  %6133 = vmatpush.bf16.msra.mxu2 %v8055_v60  ;;  %v5869_v59 = vpop.f32.mrf.mxu0  ;;  %v5856_v14 = vpop.f32.mrf.mxu3  ;;  %v8076_v60 = vld [vmem:[#allocation8 + $0x890] sm:$0xff] }
 0x40a   :  { %v3962_v19 = vld [vmem:[#allocation1 + $0x12] sm:$0xff] }
 0x40b   :  { %6108 = vmatpush.bf16.msrb.mxu3 %v8038_v21  ;;  %v5882_v32 = vpop.f32.mrf.mxu2  ;;  %v8075_v21 = vld [vmem:[#allocation8 + $0x888] sm:$0xff] }
 0x40c   :  { %6094 = vmatpush.bf16.msra.mxu1 %v8031_v62 }
 0x40d   :  { %6120 = vmatpush.bf16.msra.mxu0 %v8047_v1  ;;  %6134 = vmatpush.bf16.msra.mxu2 %v8054_v18  ;;  %v8068_v1 = vld [vmem:[#allocation8 + $0x850] sm:$0xff] }
 0x40f   :  { %6109 = vmatpush.bf16.msrb.mxu3 %v8037_v8  ;;  %v8058_v8 = vld [vmem:[#allocation8 + $0x800] sm:$0xff] }
 0x410   :  { %6095 = vmatpush.bf16.msra.mxu1 %v8030_v52  ;;  %v8067_v52 = vld [vmem:[#allocation8 + $0x848] sm:$0xff] }
 0x411   :  { %6121 = vmatpush.bf16.msra.mxu0 %v8046_v41  ;;  %6135 = vmatpush.bf16.msra.mxu2 %v8053_v58  ;;  %v8083_v41 = vld [vmem:[#allocation8 + $0x8c8] sm:$0xff]  ;;  %v8074_v58 = vld [vmem:[#allocation8 + $0x880] sm:$0xff] }
 0x413   :  { %6110 = vmatpush.bf16.msrb.mxu3 %v8036_v46 }
 0x414   :  { %6096 = vmatpush.bf16.msra.mxu1 %v8029_v31 }
 0x415   :  { %6122 = vmatpush.bf16.msra.mxu0 %v8045_v35  ;;  %6136 = vmatpush.bf16.msra.mxu2 %v8052_v30  ;;  %v8066_v35 = vld [vmem:[#allocation8 + $0x840] sm:$0xff] }
 0x417   :  { %6111 = vmatpush.bf16.msrb.mxu3 %v8035_v48 }
 0x418   :  { %6097 = vmatpush.bf16.msra.mxu1 %v8028_v9 }
 0x419   :  { %6123 = vmatpush.bf16.msra.mxu0 %v8044_v34  ;;  %6137 = vmatpush.bf16.msra.mxu2 %v8051_v51 }
 0x41b   :  { %6112 = vmatpush.bf16.msrb.mxu3 %v8034_v42 }
 0x41c   :  { %6098 = vmatpush.bf16.msra.mxu1 %v8027_v20 }
 0x41d   :  { %6124 = vmatpush.bf16.msra.mxu0 %v8043_v44  ;;  %6138 = vmatpush.bf16.msra.mxu2 %v8050_v63 }
 0x41e   :  { %6113 = vmatmul.bf16.vlgmr.msrb.gmra.mxu3 %v10391_v38  ;;  %v8069_v38 = vld [vmem:[#allocation8 + $0x858] sm:$0xff] }
 0x41f   :  { %6157 = vmatpush.bf16.msra.mxu3 %v8073_v39 }
 0x420   :  { %6099 = vmatpush.bf16.msra.mxu1 %v8026_v13  ;;  %6139 = vmatmul.bf16.vlgmr.msra.gmra.mxu2 %v10395_v23  ;;  %v5893_v47 = vpop.f32.mrf.mxu1 }
 0x421   :  { %6125 = vmatpush.bf16.msra.mxu0 %v8042_v43  ;;  %6183 = vmatpush.bf16.msrb.mxu2 %v8089_v12  ;;  %v5894_v5 = vadd.f32 %v5893_v47, %v5881_v40  ;;  %v5919_v49 = vpop.f32.mrf.mxu0  ;;  %v5906_v23 = vpop.f32.mrf.mxu3 }
 0x423   :  { %6100 = vmatmul.bf16.vlgmr.msra.gmra.mxu1 %v10389_v37  ;;  %6158 = vmatpush.bf16.msra.mxu3 %v8072_v26  ;;  %v8061_v37 = vld [vmem:[#allocation8 + $0x818] sm:$0xff]  ;;  %v5907_v6 = vadd.f32 %v5906_v23, %v5894_v5  ;;  %v5932_v57 = vpop.f32.mrf.mxu2 }
 0x424   :  { %6144 = vmatpush.bf16.msrb.mxu1 %v8065_v53  ;;  %6126 = vmatmul.bf16.vlgmr.msra.gmra.mxu0 %v10393_v16  ;;  %v8077_v16 = vld [vmem:[#allocation8 + $0x898] sm:$0xff] }
 0x425   :  { %6170 = vmatpush.bf16.msrb.mxu0 %v8081_v36  ;;  %6184 = vmatpush.bf16.msrb.mxu2 %v8088_v25  ;;  %v5920_v28 = vadd.f32 %v5919_v49, %v5907_v6  ;;  %v8097_v49 = vld [vmem:[#allocation11 + $0x38] sm:$0xff] }
 0x427   :  { %6159 = vmatpush.bf16.msra.mxu3 %v8071_v24  ;;  %v5933_v61 = vadd.f32 %v5932_v57, %v5920_v28 }
 0x428   :  { %6145 = vmatpush.bf16.msrb.mxu1 %v8064_v15  ;;  %v5895_v50 = vpop.f32.mrf.mxu1 }
 0x429   :  { %6171 = vmatpush.bf16.msrb.mxu0 %v8080_v55  ;;  %6185 = vmatpush.bf16.msrb.mxu2 %v8087_v11  ;;  %v5921_v62 = vpop.f32.mrf.mxu0  ;;  %v5908_v18 = vpop.f32.mrf.mxu3 }
 0x42b   :  { %6160 = vmatpush.bf16.msra.mxu3 %v8070_v29  ;;  %v5934_v31 = vpop.f32.mrf.mxu2 }
 0x42c   :  { %6146 = vmatpush.bf16.msrb.mxu1 %v8063_v10 }
 0x42d   :  { %6172 = vmatpush.bf16.msrb.mxu0 %v8079_v0  ;;  %6186 = vmatpush.bf16.msrb.mxu2 %v8086_v17  ;;  %v8095_v17 = vld [vmem:[#allocation11 + $0x28] sm:$0xff] }
 0x42f   :  { %6161 = vmatpush.bf16.msra.mxu3 %v8069_v38  ;;  %v8093_v38 = vld [vmem:[#allocation11 + $0x18] sm:$0xff] }
 0x430   :  { %6147 = vmatpush.bf16.msrb.mxu1 %v8062_v33 }
 0x431   :  { %6173 = vmatpush.bf16.msrb.mxu0 %v8078_v4  ;;  %6187 = vmatpush.bf16.msrb.mxu2 %v8085_v22  ;;  %v8096_v4 = vld [vmem:[#allocation11 + $0x30] sm:$0xff] }
 0x433   :  { %6162 = vmatpush.bf16.msra.mxu3 %v8068_v1 }
 0x434   :  { %6148 = vmatpush.bf16.msrb.mxu1 %v8061_v37  ;;  %v8094_v37 = vld [vmem:[#allocation11 + $0x20] sm:$0xff] }
 0x435   :  { %6174 = vmatpush.bf16.msrb.mxu0 %v8077_v16  ;;  %6188 = vmatpush.bf16.msrb.mxu2 %v8084_v3 }
 0x437   :  { %6163 = vmatpush.bf16.msra.mxu3 %v8067_v52 }
 0x438   :  { %6149 = vmatpush.bf16.msrb.mxu1 %v8060_v56  ;;  %v8092_v56 = vld [vmem:[#allocation11 + $0x10] sm:$0xff] }
 0x439   :  { %6175 = vmatpush.bf16.msrb.mxu0 %v8076_v60  ;;  %6189 = vmatpush.bf16.msrb.mxu2 %v8083_v41  ;;  %v8091_v60 = vld [vmem:[#allocation11 + $0x8] sm:$0xff] }
 0x43b   :  { %6164 = vmatpush.bf16.msra.mxu3 %v8066_v35 }
 0x43c   :  { %6150 = vmatpush.bf16.msrb.mxu1 %v8059_v2  ;;  %v8090_v2 = vld [vmem:[#allocation11] sm:$0xff] }
 0x43d   :  { %6176 = vmatpush.bf16.msrb.mxu0 %v8075_v21  ;;  %6190 = vmatpush.bf16.msrb.mxu2 %v8082_v54 }
 0x43e   :  { %6165 = vmatmul.bf16.vlgmr.msra.gmra.mxu3 %v3961_v7 }
 0x440   :  { %6151 = vmatpush.bf16.msrb.mxu1 %v8058_v8  ;;  %6191 = vmatmul.bf16.vlgmr.msrb.gmra.mxu2 %v3963_v45  ;;  %v5945_v59 = vpop.f32.mrf.mxu1 }
 0x441   :  { %6177 = vmatpush.bf16.msrb.mxu0 %v8074_v58  ;;  %v5946_v9 = vadd.f32 %v5945_v59, %v5933_v61  ;;  %v5971_v46 = vpop.f32.mrf.mxu0  ;;  %v5958_v34 = vpop.f32.mrf.mxu3 }
 0x443   :  { %6152 = vmatmul.bf16.vlgmr.msrb.gmra.mxu1 %v3960_v27  ;;  %v5959_v30 = vadd.f32 %v5958_v34, %v5946_v9  ;;  %v5984_v40 = vpop.f32.mrf.mxu2 }
 0x444   :  { %6178 = vmatmul.bf16.vlgmr.msrb.gmra.mxu0 %v3962_v19  ;;  %6266 = vmatpush.bf16.msra.mxu1 %v8097_v49 }
 0x445   :  { %v5972_v48 = vadd.f32 %v5971_v46, %v5959_v30 }
 0x447   :  { %v5985_v51 = vadd.f32 %v5984_v40, %v5972_v48 }
 0x448   :  { %v5947_v20 = vpop.f32.mrf.mxu1  ;;  %6267 = vmatpush.bf16.msra.mxu1 %v8096_v4 }
 0x449   :  { %v5973_v44 = vpop.f32.mrf.mxu0  ;;  %v5960_v14 = vpop.f32.mrf.mxu3  ;;  %v8111_v20 = vld [vmem:[#allocation12] ss:$0 sm:$0xff] }
 0x44b   :  { %v5986_v32 = vpop.f32.mrf.mxu2 }
 0x44c   :  { %6268 = vmatpush.bf16.msra.mxu1 %v8095_v17 }
 0x450   :  { %6269 = vmatpush.bf16.msra.mxu1 %v8094_v37 }
 0x454   :  { %6270 = vmatpush.bf16.msra.mxu1 %v8093_v38 }
 0x458   :  { %6271 = vmatpush.bf16.msra.mxu1 %v8092_v56 }
 0x45c   :  { %6272 = vmatpush.bf16.msra.mxu1 %v8091_v60 }
 0x460   :  { %v5997_v13 = vpop.f32.mrf.mxu1  ;;  %6273 = vmatpush.bf16.msra.mxu1 %v8090_v2 }
 0x461   :  { %v5998_v42 = vadd.f32 %v5997_v13, %v5985_v51  ;;  %v6023_v43 = vpop.f32.mrf.mxu0  ;;  %v6010_v63 = vpop.f32.mrf.mxu3 }
 0x463   :  { %v6011_v53 = vadd.f32 %v6010_v63, %v5998_v42  ;;  %v6036_v39 = vpop.f32.mrf.mxu2 }
 0x465   :  { %v6024_v12 = vadd.f32 %v6023_v43, %v6011_v53 }
 0x467   :  { %v6037_v26 = vadd.f32 %v6036_v39, %v6024_v12 }
 0x468   :  { %v5999_v36 = vpop.f32.mrf.mxu1 }
 0x469   :  { %v6025_v15 = vpop.f32.mrf.mxu0  ;;  %v6012_v55 = vpop.f32.mrf.mxu3 }
 0x46b   :  { %v6038_v25 = vpop.f32.mrf.mxu2 }
 0x480   :  { %v6049_v10 = vpop.f32.mrf.mxu1 }
 0x481   :  { %v6075_v24 = vpop.f32.mrf.mxu0  ;;  %v6062_v0 = vpop.f32.mrf.mxu3  ;;  %v6050_v28 = vadd.f32 %v6049_v10, %v6037_v26 }
 0x483   :  { %v6088_v11 = vpop.f32.mrf.mxu2  ;;  %v6063_v62 = vadd.f32 %v6062_v0, %v6050_v28 }
 0x485   :  { %v6076_v61 = vadd.f32 %v6075_v24, %v6063_v62 }
 0x487   :  { %v6089_v52 = vadd.f32 %v6088_v11, %v6076_v61 }
 0x488   :  { %v6051_v47 = vpop.f32.mrf.mxu1 }
 0x489   :  { %v6077_v5 = vpop.f32.mrf.mxu0  ;;  %v6064_v33 = vpop.f32.mrf.mxu3 }
 0x48b   :  { %v6090_v29 = vpop.f32.mrf.mxu2 }
 0x4a0   :  { %v6101_v16 = vpop.f32.mrf.mxu1 }
 0x4a1   :  { %v6127_v22 = vpop.f32.mrf.mxu0  ;;  %v6114_v23 = vpop.f32.mrf.mxu3  ;;  %v6102_v21 = vadd.f32 %v6101_v16, %v6089_v52 }
 0x4a3   :  { %v6140_v6 = vpop.f32.mrf.mxu2  ;;  %v6115_v41 = vadd.f32 %v6114_v23, %v6102_v21 }
 0x4a5   :  { %v6128_v18 = vadd.f32 %v6127_v22, %v6115_v41 }
 0x4a7   :  { %v6141_v35 = vadd.f32 %v6140_v6, %v6128_v18 }
 0x4a8   :  { %v6103_v57 = vpop.f32.mrf.mxu1 }
 0x4a9   :  { %v6129_v50 = vpop.f32.mrf.mxu0  ;;  %v6116_v1 = vpop.f32.mrf.mxu3 }
 0x4ab   :  { %v6142_v3 = vpop.f32.mrf.mxu2 }
 0x4c0   :  { %v6153_v31 = vpop.f32.mrf.mxu1 }
 0x4c1   :  { %v6179_v8 = vpop.f32.mrf.mxu0  ;;  %v6154_v58 = vadd.f32 %v6153_v31, %v6141_v35  ;;  %v6166_v54 = vpop.f32.mrf.mxu3 }
 0x4c3   :  { %v6167_v27 = vadd.f32 %v6166_v54, %v6154_v58  ;;  %v6192_v7 = vpop.f32.mrf.mxu2 }
 0x4c5   :  { %v6180_v45 = vadd.f32 %v6179_v8, %v6167_v27 }
 0x4c7   :  { %v6193_v9 = vadd.f32 %v6192_v7, %v6180_v45 }
 0x4c8   :  { %v6155_v19 = vpop.f32.mrf.mxu1 }
 0x4c9   :  { %v6181_v59 = vpop.f32.mrf.mxu0  ;;  %v6196_v46 = vmax.f32 %v6193_v9, 0.0  ;;  %v6168_v34 = vpop.f32.mrf.mxu3 }
 0x4cb   :  { %v6197_v30 = vpack.c.bf16 %v6196_v46, %v6196_v46  ;;  %v6194_v40 = vpop.f32.mrf.mxu2 }
 0x4cd   :  { %6274 = vmatmul.bf16.vlgmr.msra.gmra.mxu1 %v6197_v30 }
 0x54a   :  { %v6275_v48 = vpop.f32.mrf.mxu1 }
 0x54b   :  { %v6276_v44 = vadd.f32 %v8111_v20, %v6275_v48 }
 0x54d   :  { %6279 = vst [vmem:[#allocation14] sm:$0x3] %v6276_v44 }
 0x54e   :  { %6290 = dma.vmem_to_hbm [thread:$0]  %s6286_s27, 32, %s6288_s29, [#allocation5]  }
 0x552   :  { %v6277_v51 = vpop.f32.mrf.mxu1 }
 0x553   :  { %8288 = dma.done.wait [#allocation5], 32  }
 0x554   :  { %8289 = vsyncadd [#allocation5], 4294967264 }
 0x555   :  { %6295 = vsyncpa [#allocation4], 1 }
 0x556   :  { %6296 = vsyncpa [#allocation7], 1 }
 0x557   :  { %6297 = vsyncpa [#allocation10], 1 }
 0x558   :  { %6298 = vsyncpa [#allocation13], 1 }
 0x559   :  { %6299 = vsyncpa [#allocation5], 1 }

</bundles_post_ra>
